<compile_context>
chip_gen: v5e
topology: v5e:2x2
jax: 0.10.0
libtpu: 0.0.40
codegen_flags: <defaults>
</compile_context>

<pallas_src>
import numpy as np
import jax
import jax.numpy as jnp
from jax import lax
from jax.experimental import pallas as pl
from jax.experimental.pallas import tpu as pltpu

LEAKY_SLOPE = 0.01   # nn.LeakyReLU default
BN_EPS = 1e-5        # nn.BatchNorm default
CP = 8               # channel count padded to a full sublane group


# ------------------------------ fused kernel ------------------------------- #

def _encoder_kernel(x_ref, w1_ref, s1_ref, t1_ref, shift_ref, wconv_ref,
                    sconv_ref, tconv_ref, w3_ref, b3_ref, o_ref,
                    patch_ref, act_ref):
    """Whole Encoder forward on a VMEM-resident (CP, N) activation.

    Layout: act[c, n] with c = channel (sublanes, padded to CP=8) and
    n = b*lat*lat + h*lat + w (lanes; 128 for the demo config).
    """
    nl, cp, n = sconv_ref.shape      # (#conv layers, padded channels, B*H*W)
    f32 = jnp.float32

    # ---- layer1: Linear + folded BatchNorm1d + LeakyReLU --------------------
    # w1 was pre-arranged block-diagonally so this matmul lands directly in the
    # lane-major layout (no in-kernel transpose / lane-crossing reshape).
    r = jnp.dot(x_ref[...], w1_ref[...], preferred_element_type=f32)   # (1, n)
    r = r * s1_ref[...] + t1_ref[...]
    r = jnp.where(r > 0, r, LEAKY_SLOPE * r)
    cidx = lax.broadcasted_iota(jnp.int32, (cp, n), 0)
    act = jnp.where(cidx == 0, jnp.broadcast_to(r, (cp, n)), 0.0)      # (cp, n)

    # ---- layer2: conv stack, each layer = ONE im2col matmul -----------------
    for layer in range(nl):
        # All 9 spatially shifted, halo-masked taps in one matmul:
        # (cp, n) @ (n, 9n) -> (cp, 9n).  The shift matrices bake in the
        # zero padding, so no jnp.pad / boundary handling is needed here.
        taps = jnp.dot(act, shift_ref[...], preferred_element_type=f32)
        for k in range(9):           # sublane/lane aligned tile copies
            patch_ref[k * cp:(k + 1) * cp, :] = taps[:, k * n:(k + 1) * n]
        # Single im2col matmul: (cp, 9*cp) @ (9*cp, n) -> (cp, n)
        y = jnp.dot(wconv_ref[layer], patch_ref[...],
                    preferred_element_type=f32)
        y = y * sconv_ref[layer] + tconv_ref[layer]     # folded BN (+ conv bias)
        act = jnp.where(y > 0, y, LEAKY_SLOPE * y)

    # ---- layer3: plain Linear on the NCHW-flattened activation --------------
    # The channel-major flatten is folded into w3map host-side; bias only
    # (no ones-scale multiply).
    act_ref[...] = act
    acc = b3_ref[...]                                   # (1, B*z_dim)
    for c in range(cp):
        acc = acc + jnp.dot(act_ref[c:c + 1, :], w3_ref[c],
                            preferred_element_type=f32)
    o_ref[...] = acc


def encoder_forward(x, prep):
    """x: (B, x_shape) float32; prep: output of prepare_params."""
    batch = x.shape[0]
    n = prep["shift"].shape[0]                 # B * lat_dim**2
    bz = prep["b3row"].shape[1]                # B * z_dim
    out = pl.pallas_call(
        _encoder_kernel,
        out_shape=jax.ShapeDtypeStruct((1, bz), jnp.float32),
        in_specs=[pl.BlockSpec(memory_space=pltpu.MemorySpace.VMEM)] * 10,
        out_specs=pl.BlockSpec(memory_space=pltpu.MemorySpace.VMEM),
        scratch_shapes=[pltpu.VMEM((9 * CP, n), jnp.float32),   # im2col patches
                        pltpu.VMEM((CP, n), jnp.float32)],      # final activation
    )(x.reshape(1, -1), prep["w1blk"], prep["s1row"], prep["t1row"],
      prep["shift"], prep["wconv"], prep["sconv"], prep["tconv"],
      prep["w3map"], prep["b3row"])
    return out.reshape(batch, bz // batch)


# --------------------------- parameter preparation ------------------------- #

def fold_bn(bias, gamma, beta, mean, var):
    """Fold (x + bias) -> eval-mode BatchNorm into y = x * scale + shift."""
    s = gamma / jnp.sqrt(var + BN_EPS)
    return s, s * (bias - mean) + beta


def _shift_matrices(batch, height, width):
    """(N, 9N): the k-th N-column block maps act lanes to conv tap k's source
    lane (same batch image), zeroing the padding halo.  Built once host-side."""
    n = batch * height * width
    mats = np.zeros((9, n, n), np.float32)
    for k in range(9):
        dh, dw = k // 3 - 1, k % 3 - 1
        for b in range(batch):
            for h in range(height):
                for w in range(width):
                    hh, ww = h + dh, w + dw
                    if 0 <= hh < height and 0 <= ww < width:
                        src = (b * height + hh) * width + ww
                        dst = (b * height + h) * width + w
                        mats[k, src, dst] = 1.0
    return jnp.asarray(np.transpose(mats, (1, 0, 2)).reshape(n, 9 * n))


def prepare_params(params, *, hidden_list, lat_dim, z_dim, batch):
    """Fold BN, pad channels to CP and re-arrange every weight so the fused
    kernel runs entirely in the lane-major (channels, B*H*W) layout."""
    assert hidden_list[0] == 1, "BatchNorm1d(lat_dim**2) forces hidden_list[0]==1"
    assert max(hidden_list) <= CP
    hw = lat_dim * lat_dim
    n = batch * hw
    eye_b = jnp.eye(batch, dtype=jnp.float32)

    s1, t1 = fold_bn(params["b1"], params["bn1_g"], params["bn1_b"],
                     params["bn1_m"], params["bn1_v"])
    prep = {
        "w1blk": jnp.kron(eye_b, params["w1"]),             # (B*xs, B*lat^2)
        "s1row": jnp.tile(s1, batch).reshape(1, n),
        "t1row": jnp.tile(t1, batch).reshape(1, n),
        "shift": _shift_matrices(batch, lat_dim, lat_dim),  # (n, 9n)
    }

    wcs, scs, tcs = [], [], []
    for p in params["conv"]:
        _, _, ci, co = p["w"].shape                          # HWIO
        wt = jnp.transpose(p["w"], (3, 0, 1, 2)).reshape(co, 9, ci)
        wt = jnp.pad(wt, ((0, CP - co), (0, 0), (0, CP - ci)))
        wcs.append(wt.reshape(CP, 9 * CP))                   # col = k*CP + ci
        s, t = fold_bn(p["b"], p["g"], p["be"], p["m"], p["v"])
        scs.append(jnp.broadcast_to(jnp.pad(s, (0, CP - co))[:, None], (CP, n)))
        tcs.append(jnp.broadcast_to(jnp.pad(t, (0, CP - co))[:, None], (CP, n)))
    prep["wconv"] = jnp.stack(wcs)                           # (nl, CP, 9*CP)
    prep["sconv"] = jnp.stack(scs)                           # (nl, CP, n)
    prep["tconv"] = jnp.stack(tcs)                           # (nl, CP, n)

    c_last = hidden_list[-1]
    w3r = params["w3"].reshape(c_last, hw, z_dim)
    w3r = jnp.pad(w3r, ((0, CP - c_last), (0, 0), (0, 0)))
    prep["w3map"] = jnp.einsum("ab,chz->cahbz", eye_b, w3r
                               ).reshape(CP, n, batch * z_dim)
    prep["b3row"] = jnp.tile(params["b3"], batch).reshape(1, batch * z_dim)
    return prep


# ------------------------------- init / reference -------------------------- #

def init_params(key, hidden_list, lat_dim, z_dim, x_shape):
    def nrm(k, shape, scale=0.05):
        return scale * jax.random.normal(k, shape, jnp.float32)

    ks = iter(jax.random.split(key, 64))
    f1 = hidden_list[0] * lat_dim ** 2
    params = {
        "w1": nrm(next(ks), (x_shape, f1)),
        "b1": nrm(next(ks), (f1,)),
        "bn1_g": 1.0 + nrm(next(ks), (f1,), 0.1),
        "bn1_b": nrm(next(ks), (f1,), 0.1),
        "bn1_m": nrm(next(ks), (f1,), 0.05),
        "bn1_v": 1.0 + 0.1 * jax.random.uniform(next(ks), (f1,), jnp.float32),
    }
    convs = []
    ci = hidden_list[0]
    for co in hidden_list:
        convs.append({
            "w": nrm(next(ks), (3, 3, ci, co), 0.1),   # HWIO
            "b": nrm(next(ks), (co,), 0.1),
            "g": 1.0 + nrm(next(ks), (co,), 0.1),
            "be": nrm(next(ks), (co,), 0.1),
            "m": nrm(next(ks), (co,), 0.05),
            "v": 1.0 + 0.1 * jax.random.uniform(next(ks), (co,), jnp.float32),
        })
        ci = co
    params["conv"] = convs
    f3 = hidden_list[-1] * lat_dim ** 2
    params["w3"] = nrm(next(ks), (f3, z_dim))
    params["b3"] = nrm(next(ks), (z_dim,))
    return params


def encoder_reference(x, params, *, hidden_list, lat_dim):
    """Pure jax.numpy / lax reference for correctness check."""
    B = x.shape[0]
    s1, t1 = fold_bn(params["b1"], params["bn1_g"], params["bn1_b"],
                     params["bn1_m"], params["bn1_v"])
    h = x.reshape(B, -1) @ params["w1"] * s1 + t1
    h = jnp.where(h > 0, h, LEAKY_SLOPE * h)
    h = h.reshape(B, hidden_list[0], lat_dim, lat_dim).transpose(0, 2, 3, 1)
    for p in params["conv"]:
        s, t = fold_bn(p["b"], p["g"], p["be"], p["m"], p["v"])
        y = lax.conv_general_dilated(
            h, p["w"], window_strides=(1, 1), padding="SAME",
            dimension_numbers=("NHWC", "HWIO", "NHWC"))
        y = y * s + t
        h = jnp.where(y > 0, y, LEAKY_SLOPE * y)
    h = h.transpose(0, 3, 1, 2).reshape(B, -1)
    return h @ params["w3"] + params["b3"]


if __name__ == "__main__":
    # Small, self-consistent configuration (hidden_list[0] == 1 so the torch
    # module's BatchNorm1d(lat_dim**2) is shape-consistent).
    hidden_list = [1, 2, 4, 8]
    lat_dim = 8
    z_dim = 16
    x_shape = 32
    batch = 2

    key = jax.random.PRNGKey(0)
    pkey, xkey = jax.random.split(key)
    params = init_params(pkey, hidden_list, lat_dim, z_dim, x_shape)
    x = jax.random.normal(xkey, (batch, x_shape), jnp.float32)

    prep = prepare_params(params, hidden_list=hidden_list, lat_dim=lat_dim,
                          z_dim=z_dim, batch=batch)
    fwd = jax.jit(encoder_forward)
    out = jax.block_until_ready(fwd(x, prep))

    ref = encoder_reference(x, params, hidden_list=hidden_list, lat_dim=lat_dim)
    assert out.shape == (batch, z_dim), out.shape
    if not np.allclose(np.asarray(out), np.asarray(ref), rtol=1e-4, atol=1e-4):
        raise AssertionError("Pallas output does not match JAX reference")
    print("KERNEL_OK")
</pallas_src>

<mosaic_0001>
module attributes {stable_mosaic.version = 11 : i64} {
  func.func @_encoder_kernel(%arg0: memref<1x64xf32, #tpu.memory_space<vmem>>, %arg1: memref<64x128xf32, #tpu.memory_space<vmem>>, %arg2: memref<1x128xf32, #tpu.memory_space<vmem>>, %arg3: memref<1x128xf32, #tpu.memory_space<vmem>>, %arg4: memref<128x1152xf32, #tpu.memory_space<vmem>>, %arg5: memref<4x8x72xf32, #tpu.memory_space<vmem>>, %arg6: memref<4x8x128xf32, #tpu.memory_space<vmem>>, %arg7: memref<4x8x128xf32, #tpu.memory_space<vmem>>, %arg8: memref<8x128x32xf32, #tpu.memory_space<vmem>>, %arg9: memref<1x32xf32, #tpu.memory_space<vmem>>, %arg10: memref<1x32xf32, #tpu.memory_space<vmem>>, %arg11: memref<72x128xf32, #tpu.memory_space<vmem>>, %arg12: memref<8x128xf32, #tpu.memory_space<vmem>>) attributes {dimension_semantics = [], scalar_prefetch = 0 : i64, scratch_operands = 2 : i64, tpu.core_type = #tpu.core_type<tc>} {
    %c0 = arith.constant 0 : index
    %c0_0 = arith.constant 0 : index
    %0 = vector.load %arg0[%c0, %c0_0] : memref<1x64xf32, #tpu.memory_space<vmem>>, vector<1x64xf32>
    %c0_1 = arith.constant 0 : index
    %c0_2 = arith.constant 0 : index
    %1 = vector.load %arg1[%c0_1, %c0_2] : memref<64x128xf32, #tpu.memory_space<vmem>>, vector<64x128xf32>
    %cst = arith.constant dense<0.000000e+00> : vector<1x128xf32>
    %2 = tpu.matmul %0, %1, %cst {dimension_numbers = #tpu.dot_dimension_numbers<[1], [0], [0], [1], [0, 0, 1, 1], [], []>} : vector<1x64xf32>, vector<64x128xf32>, vector<1x128xf32> -> vector<1x128xf32>
    %c0_3 = arith.constant 0 : index
    %c0_4 = arith.constant 0 : index
    %3 = vector.load %arg2[%c0_3, %c0_4] : memref<1x128xf32, #tpu.memory_space<vmem>>, vector<1x128xf32>
    %4 = arith.mulf %2, %3 : vector<1x128xf32>
    %c0_5 = arith.constant 0 : index
    %c0_6 = arith.constant 0 : index
    %5 = vector.load %arg3[%c0_5, %c0_6] : memref<1x128xf32, #tpu.memory_space<vmem>>, vector<1x128xf32>
    %6 = arith.addf %4, %5 : vector<1x128xf32>
    %cst_7 = arith.constant 0.000000e+00 : f32
    %7 = vector.broadcast %cst_7 : f32 to vector<1x128xf32>
    %8 = arith.cmpf ogt, %6, %7 : vector<1x128xf32>
    %cst_8 = arith.constant 0.00999999977 : f32
    %9 = vector.broadcast %cst_8 : f32 to vector<1x128xf32>
    %10 = arith.mulf %9, %6 : vector<1x128xf32>
    %11 = arith.select %8, %6, %10 : vector<1x128xi1>, vector<1x128xf32>
    %12 = tpu.iota {dimensions = array<i32: 0>} : vector<8x128xi32>
    %c0_i32 = arith.constant 0 : i32
    %13 = vector.broadcast %c0_i32 : i32 to vector<8x128xi32>
    %14 = arith.cmpi eq, %12, %13 : vector<8x128xi32>
    %15 = vector.shape_cast %11 : vector<1x128xf32> to vector<1x128xf32>
    %16 = vector.broadcast %15 : vector<1x128xf32> to vector<8x128xf32>
    %cst_9 = arith.constant 0.000000e+00 : f32
    %17 = vector.broadcast %cst_9 : f32 to vector<8x128xf32>
    %18 = arith.select %14, %16, %17 : vector<8x128xi1>, vector<8x128xf32>
    %c0_10 = arith.constant 0 : index
    %c0_11 = arith.constant 0 : index
    %19 = vector.load %arg4[%c0_10, %c0_11] : memref<128x1152xf32, #tpu.memory_space<vmem>>, vector<128x1152xf32>
    %cst_12 = arith.constant dense<0.000000e+00> : vector<8x1152xf32>
    %20 = tpu.matmul %18, %19, %cst_12 {dimension_numbers = #tpu.dot_dimension_numbers<[1], [0], [0], [1], [0, 0, 1, 1], [], []>} : vector<8x128xf32>, vector<128x1152xf32>, vector<8x1152xf32> -> vector<8x1152xf32>
    %21 = vector.extract_strided_slice %20 {offsets = [0, 0], sizes = [8, 128], strides = [1, 1]} : vector<8x1152xf32> to vector<8x128xf32>
    %c0_13 = arith.constant 0 : index
    %c0_14 = arith.constant 0 : index
    %22 = vector.load %arg11[%c0_13, %c0_14] : memref<72x128xf32, #tpu.memory_space<vmem>>, vector<8x128xf32>
    tpu.vector_store %arg11[%c0_13, %c0_14], %21 {strides = array<i32>} : memref<72x128xf32, #tpu.memory_space<vmem>>, vector<8x128xf32>,
    %23 = vector.extract_strided_slice %20 {offsets = [0, 128], sizes = [8, 128], strides = [1, 1]} : vector<8x1152xf32> to vector<8x128xf32>
    %c8 = arith.constant 8 : index
    %c0_15 = arith.constant 0 : index
    %24 = vector.load %arg11[%c8, %c0_15] : memref<72x128xf32, #tpu.memory_space<vmem>>, vector<8x128xf32>
    tpu.vector_store %arg11[%c8, %c0_15], %23 {strides = array<i32>} : memref<72x128xf32, #tpu.memory_space<vmem>>, vector<8x128xf32>,
    %25 = vector.extract_strided_slice %20 {offsets = [0, 256], sizes = [8, 128], strides = [1, 1]} : vector<8x1152xf32> to vector<8x128xf32>
    %c16 = arith.constant 16 : index
    %c0_16 = arith.constant 0 : index
    %26 = vector.load %arg11[%c16, %c0_16] : memref<72x128xf32, #tpu.memory_space<vmem>>, vector<8x128xf32>
    tpu.vector_store %arg11[%c16, %c0_16], %25 {strides = array<i32>} : memref<72x128xf32, #tpu.memory_space<vmem>>, vector<8x128xf32>,
    %27 = vector.extract_strided_slice %20 {offsets = [0, 384], sizes = [8, 128], strides = [1, 1]} : vector<8x1152xf32> to vector<8x128xf32>
    %c24 = arith.constant 24 : index
    %c0_17 = arith.constant 0 : index
    %28 = vector.load %arg11[%c24, %c0_17] : memref<72x128xf32, #tpu.memory_space<vmem>>, vector<8x128xf32>
    tpu.vector_store %arg11[%c24, %c0_17], %27 {strides = array<i32>} : memref<72x128xf32, #tpu.memory_space<vmem>>, vector<8x128xf32>,
    %29 = vector.extract_strided_slice %20 {offsets = [0, 512], sizes = [8, 128], strides = [1, 1]} : vector<8x1152xf32> to vector<8x128xf32>
    %c32 = arith.constant 32 : index
    %c0_18 = arith.constant 0 : index
    %30 = vector.load %arg11[%c32, %c0_18] : memref<72x128xf32, #tpu.memory_space<vmem>>, vector<8x128xf32>
    tpu.vector_store %arg11[%c32, %c0_18], %29 {strides = array<i32>} : memref<72x128xf32, #tpu.memory_space<vmem>>, vector<8x128xf32>,
    %31 = vector.extract_strided_slice %20 {offsets = [0, 640], sizes = [8, 128], strides = [1, 1]} : vector<8x1152xf32> to vector<8x128xf32>
    %c40 = arith.constant 40 : index
    %c0_19 = arith.constant 0 : index
    %32 = vector.load %arg11[%c40, %c0_19] : memref<72x128xf32, #tpu.memory_space<vmem>>, vector<8x128xf32>
    tpu.vector_store %arg11[%c40, %c0_19], %31 {strides = array<i32>} : memref<72x128xf32, #tpu.memory_space<vmem>>, vector<8x128xf32>,
    %33 = vector.extract_strided_slice %20 {offsets = [0, 768], sizes = [8, 128], strides = [1, 1]} : vector<8x1152xf32> to vector<8x128xf32>
    %c48 = arith.constant 48 : index
    %c0_20 = arith.constant 0 : index
    %34 = vector.load %arg11[%c48, %c0_20] : memref<72x128xf32, #tpu.memory_space<vmem>>, vector<8x128xf32>
    tpu.vector_store %arg11[%c48, %c0_20], %33 {strides = array<i32>} : memref<72x128xf32, #tpu.memory_space<vmem>>, vector<8x128xf32>,
    %35 = vector.extract_strided_slice %20 {offsets = [0, 896], sizes = [8, 128], strides = [1, 1]} : vector<8x1152xf32> to vector<8x128xf32>
    %c56 = arith.constant 56 : index
    %c0_21 = arith.constant 0 : index
    %36 = vector.load %arg11[%c56, %c0_21] : memref<72x128xf32, #tpu.memory_space<vmem>>, vector<8x128xf32>
    tpu.vector_store %arg11[%c56, %c0_21], %35 {strides = array<i32>} : memref<72x128xf32, #tpu.memory_space<vmem>>, vector<8x128xf32>,
    %37 = vector.extract_strided_slice %20 {offsets = [0, 1024], sizes = [8, 128], strides = [1, 1]} : vector<8x1152xf32> to vector<8x128xf32>
    %c64 = arith.constant 64 : index
    %c0_22 = arith.constant 0 : index
    %38 = vector.load %arg11[%c64, %c0_22] : memref<72x128xf32, #tpu.memory_space<vmem>>, vector<8x128xf32>
    tpu.vector_store %arg11[%c64, %c0_22], %37 {strides = array<i32>} : memref<72x128xf32, #tpu.memory_space<vmem>>, vector<8x128xf32>,
    %c0_23 = arith.constant 0 : index
    %c0_24 = arith.constant 0 : index
    %c0_25 = arith.constant 0 : index
    %39 = vector.load %arg5[%c0_23, %c0_24, %c0_25] : memref<4x8x72xf32, #tpu.memory_space<vmem>>, vector<1x8x72xf32>
    %40 = vector.shape_cast %39 : vector<1x8x72xf32> to vector<8x72xf32>
    %c0_26 = arith.constant 0 : index
    %c0_27 = arith.constant 0 : index
    %41 = vector.load %arg11[%c0_26, %c0_27] : memref<72x128xf32, #tpu.memory_space<vmem>>, vector<72x128xf32>
    %cst_28 = arith.constant dense<0.000000e+00> : vector<8x128xf32>
    %42 = tpu.matmul %40, %41, %cst_28 {dimension_numbers = #tpu.dot_dimension_numbers<[1], [0], [0], [1], [0, 0, 1, 1], [], []>} : vector<8x72xf32>, vector<72x128xf32>, vector<8x128xf32> -> vector<8x128xf32>
    %c0_29 = arith.constant 0 : index
    %c0_30 = arith.constant 0 : index
    %c0_31 = arith.constant 0 : index
    %43 = vector.load %arg6[%c0_29, %c0_30, %c0_31] : memref<4x8x128xf32, #tpu.memory_space<vmem>>, vector<1x8x128xf32>
    %44 = vector.shape_cast %43 : vector<1x8x128xf32> to vector<8x128xf32>
    %45 = arith.mulf %42, %44 : vector<8x128xf32>
    %c0_32 = arith.constant 0 : index
    %c0_33 = arith.constant 0 : index
    %c0_34 = arith.constant 0 : index
    %46 = vector.load %arg7[%c0_32, %c0_33, %c0_34] : memref<4x8x128xf32, #tpu.memory_space<vmem>>, vector<1x8x128xf32>
    %47 = vector.shape_cast %46 : vector<1x8x128xf32> to vector<8x128xf32>
    %48 = arith.addf %45, %47 : vector<8x128xf32>
    %cst_35 = arith.constant 0.000000e+00 : f32
    %49 = vector.broadcast %cst_35 : f32 to vector<8x128xf32>
    %50 = arith.cmpf ogt, %48, %49 : vector<8x128xf32>
    %cst_36 = arith.constant 0.00999999977 : f32
    %51 = vector.broadcast %cst_36 : f32 to vector<8x128xf32>
    %52 = arith.mulf %51, %48 : vector<8x128xf32>
    %53 = arith.select %50, %48, %52 : vector<8x128xi1>, vector<8x128xf32>
    %c0_37 = arith.constant 0 : index
    %c0_38 = arith.constant 0 : index
    %54 = vector.load %arg4[%c0_37, %c0_38] : memref<128x1152xf32, #tpu.memory_space<vmem>>, vector<128x1152xf32>
    %cst_39 = arith.constant dense<0.000000e+00> : vector<8x1152xf32>
    %55 = tpu.matmul %53, %54, %cst_39 {dimension_numbers = #tpu.dot_dimension_numbers<[1], [0], [0], [1], [0, 0, 1, 1], [], []>} : vector<8x128xf32>, vector<128x1152xf32>, vector<8x1152xf32> -> vector<8x1152xf32>
    %56 = vector.extract_strided_slice %55 {offsets = [0, 0], sizes = [8, 128], strides = [1, 1]} : vector<8x1152xf32> to vector<8x128xf32>
    %c0_40 = arith.constant 0 : index
    %c0_41 = arith.constant 0 : index
    %57 = vector.load %arg11[%c0_40, %c0_41] : memref<72x128xf32, #tpu.memory_space<vmem>>, vector<8x128xf32>
    tpu.vector_store %arg11[%c0_40, %c0_41], %56 {strides = array<i32>} : memref<72x128xf32, #tpu.memory_space<vmem>>, vector<8x128xf32>,
    %58 = vector.extract_strided_slice %55 {offsets = [0, 128], sizes = [8, 128], strides = [1, 1]} : vector<8x1152xf32> to vector<8x128xf32>
    %c8_42 = arith.constant 8 : index
    %c0_43 = arith.constant 0 : index
    %59 = vector.load %arg11[%c8_42, %c0_43] : memref<72x128xf32, #tpu.memory_space<vmem>>, vector<8x128xf32>
    tpu.vector_store %arg11[%c8_42, %c0_43], %58 {strides = array<i32>} : memref<72x128xf32, #tpu.memory_space<vmem>>, vector<8x128xf32>,
    %60 = vector.extract_strided_slice %55 {offsets = [0, 256], sizes = [8, 128], strides = [1, 1]} : vector<8x1152xf32> to vector<8x128xf32>
    %c16_44 = arith.constant 16 : index
    %c0_45 = arith.constant 0 : index
    %61 = vector.load %arg11[%c16_44, %c0_45] : memref<72x128xf32, #tpu.memory_space<vmem>>, vector<8x128xf32>
    tpu.vector_store %arg11[%c16_44, %c0_45], %60 {strides = array<i32>} : memref<72x128xf32, #tpu.memory_space<vmem>>, vector<8x128xf32>,
    %62 = vector.extract_strided_slice %55 {offsets = [0, 384], sizes = [8, 128], strides = [1, 1]} : vector<8x1152xf32> to vector<8x128xf32>
    %c24_46 = arith.constant 24 : index
    %c0_47 = arith.constant 0 : index
    %63 = vector.load %arg11[%c24_46, %c0_47] : memref<72x128xf32, #tpu.memory_space<vmem>>, vector<8x128xf32>
    tpu.vector_store %arg11[%c24_46, %c0_47], %62 {strides = array<i32>} : memref<72x128xf32, #tpu.memory_space<vmem>>, vector<8x128xf32>,
    %64 = vector.extract_strided_slice %55 {offsets = [0, 512], sizes = [8, 128], strides = [1, 1]} : vector<8x1152xf32> to vector<8x128xf32>
    %c32_48 = arith.constant 32 : index
    %c0_49 = arith.constant 0 : index
    %65 = vector.load %arg11[%c32_48, %c0_49] : memref<72x128xf32, #tpu.memory_space<vmem>>, vector<8x128xf32>
    tpu.vector_store %arg11[%c32_48, %c0_49], %64 {strides = array<i32>} : memref<72x128xf32, #tpu.memory_space<vmem>>, vector<8x128xf32>,
    %66 = vector.extract_strided_slice %55 {offsets = [0, 640], sizes = [8, 128], strides = [1, 1]} : vector<8x1152xf32> to vector<8x128xf32>
    %c40_50 = arith.constant 40 : index
    %c0_51 = arith.constant 0 : index
    %67 = vector.load %arg11[%c40_50, %c0_51] : memref<72x128xf32, #tpu.memory_space<vmem>>, vector<8x128xf32>
    tpu.vector_store %arg11[%c40_50, %c0_51], %66 {strides = array<i32>} : memref<72x128xf32, #tpu.memory_space<vmem>>, vector<8x128xf32>,
    %68 = vector.extract_strided_slice %55 {offsets = [0, 768], sizes = [8, 128], strides = [1, 1]} : vector<8x1152xf32> to vector<8x128xf32>
    %c48_52 = arith.constant 48 : index
    %c0_53 = arith.constant 0 : index
    %69 = vector.load %arg11[%c48_52, %c0_53] : memref<72x128xf32, #tpu.memory_space<vmem>>, vector<8x128xf32>
    tpu.vector_store %arg11[%c48_52, %c0_53], %68 {strides = array<i32>} : memref<72x128xf32, #tpu.memory_space<vmem>>, vector<8x128xf32>,
    %70 = vector.extract_strided_slice %55 {offsets = [0, 896], sizes = [8, 128], strides = [1, 1]} : vector<8x1152xf32> to vector<8x128xf32>
    %c56_54 = arith.constant 56 : index
    %c0_55 = arith.constant 0 : index
    %71 = vector.load %arg11[%c56_54, %c0_55] : memref<72x128xf32, #tpu.memory_space<vmem>>, vector<8x128xf32>
    tpu.vector_store %arg11[%c56_54, %c0_55], %70 {strides = array<i32>} : memref<72x128xf32, #tpu.memory_space<vmem>>, vector<8x128xf32>,
    %72 = vector.extract_strided_slice %55 {offsets = [0, 1024], sizes = [8, 128], strides = [1, 1]} : vector<8x1152xf32> to vector<8x128xf32>
    %c64_56 = arith.constant 64 : index
    %c0_57 = arith.constant 0 : index
    %73 = vector.load %arg11[%c64_56, %c0_57] : memref<72x128xf32, #tpu.memory_space<vmem>>, vector<8x128xf32>
    tpu.vector_store %arg11[%c64_56, %c0_57], %72 {strides = array<i32>} : memref<72x128xf32, #tpu.memory_space<vmem>>, vector<8x128xf32>,
    %c1 = arith.constant 1 : index
    %c0_58 = arith.constant 0 : index
    %c0_59 = arith.constant 0 : index
    %74 = vector.load %arg5[%c1, %c0_58, %c0_59] : memref<4x8x72xf32, #tpu.memory_space<vmem>>, vector<1x8x72xf32>
    %75 = vector.shape_cast %74 : vector<1x8x72xf32> to vector<8x72xf32>
    %c0_60 = arith.constant 0 : index
    %c0_61 = arith.constant 0 : index
    %76 = vector.load %arg11[%c0_60, %c0_61] : memref<72x128xf32, #tpu.memory_space<vmem>>, vector<72x128xf32>
    %cst_62 = arith.constant dense<0.000000e+00> : vector<8x128xf32>
    %77 = tpu.matmul %75, %76, %cst_62 {dimension_numbers = #tpu.dot_dimension_numbers<[1], [0], [0], [1], [0, 0, 1, 1], [], []>} : vector<8x72xf32>, vector<72x128xf32>, vector<8x128xf32> -> vector<8x128xf32>
    %c1_63 = arith.constant 1 : index
    %c0_64 = arith.constant 0 : index
    %c0_65 = arith.constant 0 : index
    %78 = vector.load %arg6[%c1_63, %c0_64, %c0_65] : memref<4x8x128xf32, #tpu.memory_space<vmem>>, vector<1x8x128xf32>
    %79 = vector.shape_cast %78 : vector<1x8x128xf32> to vector<8x128xf32>
    %80 = arith.mulf %77, %79 : vector<8x128xf32>
    %c1_66 = arith.constant 1 : index
    %c0_67 = arith.constant 0 : index
    %c0_68 = arith.constant 0 : index
    %81 = vector.load %arg7[%c1_66, %c0_67, %c0_68] : memref<4x8x128xf32, #tpu.memory_space<vmem>>, vector<1x8x128xf32>
    %82 = vector.shape_cast %81 : vector<1x8x128xf32> to vector<8x128xf32>
    %83 = arith.addf %80, %82 : vector<8x128xf32>
    %cst_69 = arith.constant 0.000000e+00 : f32
    %84 = vector.broadcast %cst_69 : f32 to vector<8x128xf32>
    %85 = arith.cmpf ogt, %83, %84 : vector<8x128xf32>
    %cst_70 = arith.constant 0.00999999977 : f32
    %86 = vector.broadcast %cst_70 : f32 to vector<8x128xf32>
    %87 = arith.mulf %86, %83 : vector<8x128xf32>
    %88 = arith.select %85, %83, %87 : vector<8x128xi1>, vector<8x128xf32>
    %c0_71 = arith.constant 0 : index
    %c0_72 = arith.constant 0 : index
    %89 = vector.load %arg4[%c0_71, %c0_72] : memref<128x1152xf32, #tpu.memory_space<vmem>>, vector<128x1152xf32>
    %cst_73 = arith.constant dense<0.000000e+00> : vector<8x1152xf32>
    %90 = tpu.matmul %88, %89, %cst_73 {dimension_numbers = #tpu.dot_dimension_numbers<[1], [0], [0], [1], [0, 0, 1, 1], [], []>} : vector<8x128xf32>, vector<128x1152xf32>, vector<8x1152xf32> -> vector<8x1152xf32>
    %91 = vector.extract_strided_slice %90 {offsets = [0, 0], sizes = [8, 128], strides = [1, 1]} : vector<8x1152xf32> to vector<8x128xf32>
    %c0_74 = arith.constant 0 : index
    %c0_75 = arith.constant 0 : index
    %92 = vector.load %arg11[%c0_74, %c0_75] : memref<72x128xf32, #tpu.memory_space<vmem>>, vector<8x128xf32>
    tpu.vector_store %arg11[%c0_74, %c0_75], %91 {strides = array<i32>} : memref<72x128xf32, #tpu.memory_space<vmem>>, vector<8x128xf32>,
    %93 = vector.extract_strided_slice %90 {offsets = [0, 128], sizes = [8, 128], strides = [1, 1]} : vector<8x1152xf32> to vector<8x128xf32>
    %c8_76 = arith.constant 8 : index
    %c0_77 = arith.constant 0 : index
    %94 = vector.load %arg11[%c8_76, %c0_77] : memref<72x128xf32, #tpu.memory_space<vmem>>, vector<8x128xf32>
    tpu.vector_store %arg11[%c8_76, %c0_77], %93 {strides = array<i32>} : memref<72x128xf32, #tpu.memory_space<vmem>>, vector<8x128xf32>,
    %95 = vector.extract_strided_slice %90 {offsets = [0, 256], sizes = [8, 128], strides = [1, 1]} : vector<8x1152xf32> to vector<8x128xf32>
    %c16_78 = arith.constant 16 : index
    %c0_79 = arith.constant 0 : index
    %96 = vector.load %arg11[%c16_78, %c0_79] : memref<72x128xf32, #tpu.memory_space<vmem>>, vector<8x128xf32>
    tpu.vector_store %arg11[%c16_78, %c0_79], %95 {strides = array<i32>} : memref<72x128xf32, #tpu.memory_space<vmem>>, vector<8x128xf32>,
    %97 = vector.extract_strided_slice %90 {offsets = [0, 384], sizes = [8, 128], strides = [1, 1]} : vector<8x1152xf32> to vector<8x128xf32>
    %c24_80 = arith.constant 24 : index
    %c0_81 = arith.constant 0 : index
    %98 = vector.load %arg11[%c24_80, %c0_81] : memref<72x128xf32, #tpu.memory_space<vmem>>, vector<8x128xf32>
    tpu.vector_store %arg11[%c24_80, %c0_81], %97 {strides = array<i32>} : memref<72x128xf32, #tpu.memory_space<vmem>>, vector<8x128xf32>,
    %99 = vector.extract_strided_slice %90 {offsets = [0, 512], sizes = [8, 128], strides = [1, 1]} : vector<8x1152xf32> to vector<8x128xf32>
    %c32_82 = arith.constant 32 : index
    %c0_83 = arith.constant 0 : index
    %100 = vector.load %arg11[%c32_82, %c0_83] : memref<72x128xf32, #tpu.memory_space<vmem>>, vector<8x128xf32>
    tpu.vector_store %arg11[%c32_82, %c0_83], %99 {strides = array<i32>} : memref<72x128xf32, #tpu.memory_space<vmem>>, vector<8x128xf32>,
    %101 = vector.extract_strided_slice %90 {offsets = [0, 640], sizes = [8, 128], strides = [1, 1]} : vector<8x1152xf32> to vector<8x128xf32>
    %c40_84 = arith.constant 40 : index
    %c0_85 = arith.constant 0 : index
    %102 = vector.load %arg11[%c40_84, %c0_85] : memref<72x128xf32, #tpu.memory_space<vmem>>, vector<8x128xf32>
    tpu.vector_store %arg11[%c40_84, %c0_85], %101 {strides = array<i32>} : memref<72x128xf32, #tpu.memory_space<vmem>>, vector<8x128xf32>,
    %103 = vector.extract_strided_slice %90 {offsets = [0, 768], sizes = [8, 128], strides = [1, 1]} : vector<8x1152xf32> to vector<8x128xf32>
    %c48_86 = arith.constant 48 : index
    %c0_87 = arith.constant 0 : index
    %104 = vector.load %arg11[%c48_86, %c0_87] : memref<72x128xf32, #tpu.memory_space<vmem>>, vector<8x128xf32>
    tpu.vector_store %arg11[%c48_86, %c0_87], %103 {strides = array<i32>} : memref<72x128xf32, #tpu.memory_space<vmem>>, vector<8x128xf32>,
    %105 = vector.extract_strided_slice %90 {offsets = [0, 896], sizes = [8, 128], strides = [1, 1]} : vector<8x1152xf32> to vector<8x128xf32>
    %c56_88 = arith.constant 56 : index
    %c0_89 = arith.constant 0 : index
    %106 = vector.load %arg11[%c56_88, %c0_89] : memref<72x128xf32, #tpu.memory_space<vmem>>, vector<8x128xf32>
    tpu.vector_store %arg11[%c56_88, %c0_89], %105 {strides = array<i32>} : memref<72x128xf32, #tpu.memory_space<vmem>>, vector<8x128xf32>,
    %107 = vector.extract_strided_slice %90 {offsets = [0, 1024], sizes = [8, 128], strides = [1, 1]} : vector<8x1152xf32> to vector<8x128xf32>
    %c64_90 = arith.constant 64 : index
    %c0_91 = arith.constant 0 : index
    %108 = vector.load %arg11[%c64_90, %c0_91] : memref<72x128xf32, #tpu.memory_space<vmem>>, vector<8x128xf32>
    tpu.vector_store %arg11[%c64_90, %c0_91], %107 {strides = array<i32>} : memref<72x128xf32, #tpu.memory_space<vmem>>, vector<8x128xf32>,
    %c2 = arith.constant 2 : index
    %c0_92 = arith.constant 0 : index
    %c0_93 = arith.constant 0 : index
    %109 = vector.load %arg5[%c2, %c0_92, %c0_93] : memref<4x8x72xf32, #tpu.memory_space<vmem>>, vector<1x8x72xf32>
    %110 = vector.shape_cast %109 : vector<1x8x72xf32> to vector<8x72xf32>
    %c0_94 = arith.constant 0 : index
    %c0_95 = arith.constant 0 : index
    %111 = vector.load %arg11[%c0_94, %c0_95] : memref<72x128xf32, #tpu.memory_space<vmem>>, vector<72x128xf32>
    %cst_96 = arith.constant dense<0.000000e+00> : vector<8x128xf32>
    %112 = tpu.matmul %110, %111, %cst_96 {dimension_numbers = #tpu.dot_dimension_numbers<[1], [0], [0], [1], [0, 0, 1, 1], [], []>} : vector<8x72xf32>, vector<72x128xf32>, vector<8x128xf32> -> vector<8x128xf32>
    %c2_97 = arith.constant 2 : index
    %c0_98 = arith.constant 0 : index
    %c0_99 = arith.constant 0 : index
    %113 = vector.load %arg6[%c2_97, %c0_98, %c0_99] : memref<4x8x128xf32, #tpu.memory_space<vmem>>, vector<1x8x128xf32>
    %114 = vector.shape_cast %113 : vector<1x8x128xf32> to vector<8x128xf32>
    %115 = arith.mulf %112, %114 : vector<8x128xf32>
    %c2_100 = arith.constant 2 : index
    %c0_101 = arith.constant 0 : index
    %c0_102 = arith.constant 0 : index
    %116 = vector.load %arg7[%c2_100, %c0_101, %c0_102] : memref<4x8x128xf32, #tpu.memory_space<vmem>>, vector<1x8x128xf32>
    %117 = vector.shape_cast %116 : vector<1x8x128xf32> to vector<8x128xf32>
    %118 = arith.addf %115, %117 : vector<8x128xf32>
    %cst_103 = arith.constant 0.000000e+00 : f32
    %119 = vector.broadcast %cst_103 : f32 to vector<8x128xf32>
    %120 = arith.cmpf ogt, %118, %119 : vector<8x128xf32>
    %cst_104 = arith.constant 0.00999999977 : f32
    %121 = vector.broadcast %cst_104 : f32 to vector<8x128xf32>
    %122 = arith.mulf %121, %118 : vector<8x128xf32>
    %123 = arith.select %120, %118, %122 : vector<8x128xi1>, vector<8x128xf32>
    %c0_105 = arith.constant 0 : index
    %c0_106 = arith.constant 0 : index
    %124 = vector.load %arg4[%c0_105, %c0_106] : memref<128x1152xf32, #tpu.memory_space<vmem>>, vector<128x1152xf32>
    %cst_107 = arith.constant dense<0.000000e+00> : vector<8x1152xf32>
    %125 = tpu.matmul %123, %124, %cst_107 {dimension_numbers = #tpu.dot_dimension_numbers<[1], [0], [0], [1], [0, 0, 1, 1], [], []>} : vector<8x128xf32>, vector<128x1152xf32>, vector<8x1152xf32> -> vector<8x1152xf32>
    %126 = vector.extract_strided_slice %125 {offsets = [0, 0], sizes = [8, 128], strides = [1, 1]} : vector<8x1152xf32> to vector<8x128xf32>
    %c0_108 = arith.constant 0 : index
    %c0_109 = arith.constant 0 : index
    %127 = vector.load %arg11[%c0_108, %c0_109] : memref<72x128xf32, #tpu.memory_space<vmem>>, vector<8x128xf32>
    tpu.vector_store %arg11[%c0_108, %c0_109], %126 {strides = array<i32>} : memref<72x128xf32, #tpu.memory_space<vmem>>, vector<8x128xf32>,
    %128 = vector.extract_strided_slice %125 {offsets = [0, 128], sizes = [8, 128], strides = [1, 1]} : vector<8x1152xf32> to vector<8x128xf32>
    %c8_110 = arith.constant 8 : index
    %c0_111 = arith.constant 0 : index
    %129 = vector.load %arg11[%c8_110, %c0_111] : memref<72x128xf32, #tpu.memory_space<vmem>>, vector<8x128xf32>
    tpu.vector_store %arg11[%c8_110, %c0_111], %128 {strides = array<i32>} : memref<72x128xf32, #tpu.memory_space<vmem>>, vector<8x128xf32>,
    %130 = vector.extract_strided_slice %125 {offsets = [0, 256], sizes = [8, 128], strides = [1, 1]} : vector<8x1152xf32> to vector<8x128xf32>
    %c16_112 = arith.constant 16 : index
    %c0_113 = arith.constant 0 : index
    %131 = vector.load %arg11[%c16_112, %c0_113] : memref<72x128xf32, #tpu.memory_space<vmem>>, vector<8x128xf32>
    tpu.vector_store %arg11[%c16_112, %c0_113], %130 {strides = array<i32>} : memref<72x128xf32, #tpu.memory_space<vmem>>, vector<8x128xf32>,
    %132 = vector.extract_strided_slice %125 {offsets = [0, 384], sizes = [8, 128], strides = [1, 1]} : vector<8x1152xf32> to vector<8x128xf32>
    %c24_114 = arith.constant 24 : index
    %c0_115 = arith.constant 0 : index
    %133 = vector.load %arg11[%c24_114, %c0_115] : memref<72x128xf32, #tpu.memory_space<vmem>>, vector<8x128xf32>
    tpu.vector_store %arg11[%c24_114, %c0_115], %132 {strides = array<i32>} : memref<72x128xf32, #tpu.memory_space<vmem>>, vector<8x128xf32>,
    %134 = vector.extract_strided_slice %125 {offsets = [0, 512], sizes = [8, 128], strides = [1, 1]} : vector<8x1152xf32> to vector<8x128xf32>
    %c32_116 = arith.constant 32 : index
    %c0_117 = arith.constant 0 : index
    %135 = vector.load %arg11[%c32_116, %c0_117] : memref<72x128xf32, #tpu.memory_space<vmem>>, vector<8x128xf32>
    tpu.vector_store %arg11[%c32_116, %c0_117], %134 {strides = array<i32>} : memref<72x128xf32, #tpu.memory_space<vmem>>, vector<8x128xf32>,
    %136 = vector.extract_strided_slice %125 {offsets = [0, 640], sizes = [8, 128], strides = [1, 1]} : vector<8x1152xf32> to vector<8x128xf32>
    %c40_118 = arith.constant 40 : index
    %c0_119 = arith.constant 0 : index
    %137 = vector.load %arg11[%c40_118, %c0_119] : memref<72x128xf32, #tpu.memory_space<vmem>>, vector<8x128xf32>
    tpu.vector_store %arg11[%c40_118, %c0_119], %136 {strides = array<i32>} : memref<72x128xf32, #tpu.memory_space<vmem>>, vector<8x128xf32>,
    %138 = vector.extract_strided_slice %125 {offsets = [0, 768], sizes = [8, 128], strides = [1, 1]} : vector<8x1152xf32> to vector<8x128xf32>
    %c48_120 = arith.constant 48 : index
    %c0_121 = arith.constant 0 : index
    %139 = vector.load %arg11[%c48_120, %c0_121] : memref<72x128xf32, #tpu.memory_space<vmem>>, vector<8x128xf32>
    tpu.vector_store %arg11[%c48_120, %c0_121], %138 {strides = array<i32>} : memref<72x128xf32, #tpu.memory_space<vmem>>, vector<8x128xf32>,
    %140 = vector.extract_strided_slice %125 {offsets = [0, 896], sizes = [8, 128], strides = [1, 1]} : vector<8x1152xf32> to vector<8x128xf32>
    %c56_122 = arith.constant 56 : index
    %c0_123 = arith.constant 0 : index
    %141 = vector.load %arg11[%c56_122, %c0_123] : memref<72x128xf32, #tpu.memory_space<vmem>>, vector<8x128xf32>
    tpu.vector_store %arg11[%c56_122, %c0_123], %140 {strides = array<i32>} : memref<72x128xf32, #tpu.memory_space<vmem>>, vector<8x128xf32>,
    %142 = vector.extract_strided_slice %125 {offsets = [0, 1024], sizes = [8, 128], strides = [1, 1]} : vector<8x1152xf32> to vector<8x128xf32>
    %c64_124 = arith.constant 64 : index
    %c0_125 = arith.constant 0 : index
    %143 = vector.load %arg11[%c64_124, %c0_125] : memref<72x128xf32, #tpu.memory_space<vmem>>, vector<8x128xf32>
    tpu.vector_store %arg11[%c64_124, %c0_125], %142 {strides = array<i32>} : memref<72x128xf32, #tpu.memory_space<vmem>>, vector<8x128xf32>,
    %c3 = arith.constant 3 : index
    %c0_126 = arith.constant 0 : index
    %c0_127 = arith.constant 0 : index
    %144 = vector.load %arg5[%c3, %c0_126, %c0_127] : memref<4x8x72xf32, #tpu.memory_space<vmem>>, vector<1x8x72xf32>
    %145 = vector.shape_cast %144 : vector<1x8x72xf32> to vector<8x72xf32>
    %c0_128 = arith.constant 0 : index
    %c0_129 = arith.constant 0 : index
    %146 = vector.load %arg11[%c0_128, %c0_129] : memref<72x128xf32, #tpu.memory_space<vmem>>, vector<72x128xf32>
    %cst_130 = arith.constant dense<0.000000e+00> : vector<8x128xf32>
    %147 = tpu.matmul %145, %146, %cst_130 {dimension_numbers = #tpu.dot_dimension_numbers<[1], [0], [0], [1], [0, 0, 1, 1], [], []>} : vector<8x72xf32>, vector<72x128xf32>, vector<8x128xf32> -> vector<8x128xf32>
    %c3_131 = arith.constant 3 : index
    %c0_132 = arith.constant 0 : index
    %c0_133 = arith.constant 0 : index
    %148 = vector.load %arg6[%c3_131, %c0_132, %c0_133] : memref<4x8x128xf32, #tpu.memory_space<vmem>>, vector<1x8x128xf32>
    %149 = vector.shape_cast %148 : vector<1x8x128xf32> to vector<8x128xf32>
    %150 = arith.mulf %147, %149 : vector<8x128xf32>
    %c3_134 = arith.constant 3 : index
    %c0_135 = arith.constant 0 : index
    %c0_136 = arith.constant 0 : index
    %151 = vector.load %arg7[%c3_134, %c0_135, %c0_136] : memref<4x8x128xf32, #tpu.memory_space<vmem>>, vector<1x8x128xf32>
    %152 = vector.shape_cast %151 : vector<1x8x128xf32> to vector<8x128xf32>
    %153 = arith.addf %150, %152 : vector<8x128xf32>
    %cst_137 = arith.constant 0.000000e+00 : f32
    %154 = vector.broadcast %cst_137 : f32 to vector<8x128xf32>
    %155 = arith.cmpf ogt, %153, %154 : vector<8x128xf32>
    %cst_138 = arith.constant 0.00999999977 : f32
    %156 = vector.broadcast %cst_138 : f32 to vector<8x128xf32>
    %157 = arith.mulf %156, %153 : vector<8x128xf32>
    %158 = arith.select %155, %153, %157 : vector<8x128xi1>, vector<8x128xf32>
    %c0_139 = arith.constant 0 : index
    %c0_140 = arith.constant 0 : index
    %159 = vector.load %arg12[%c0_139, %c0_140] : memref<8x128xf32, #tpu.memory_space<vmem>>, vector<8x128xf32>
    tpu.vector_store %arg12[%c0_139, %c0_140], %158 {strides = array<i32>} : memref<8x128xf32, #tpu.memory_space<vmem>>, vector<8x128xf32>,
    %c0_141 = arith.constant 0 : index
    %c0_142 = arith.constant 0 : index
    %160 = vector.load %arg9[%c0_141, %c0_142] : memref<1x32xf32, #tpu.memory_space<vmem>>, vector<1x32xf32>
    %c0_143 = arith.constant 0 : index
    %c0_144 = arith.constant 0 : index
    %161 = vector.load %arg12[%c0_143, %c0_144] : memref<8x128xf32, #tpu.memory_space<vmem>>, vector<1x128xf32>
    %c0_145 = arith.constant 0 : index
    %c0_146 = arith.constant 0 : index
    %c0_147 = arith.constant 0 : index
    %162 = vector.load %arg8[%c0_145, %c0_146, %c0_147] : memref<8x128x32xf32, #tpu.memory_space<vmem>>, vector<1x128x32xf32>
    %163 = vector.shape_cast %162 : vector<1x128x32xf32> to vector<128x32xf32>
    %cst_148 = arith.constant dense<0.000000e+00> : vector<1x32xf32>
    %164 = tpu.matmul %161, %163, %cst_148 {dimension_numbers = #tpu.dot_dimension_numbers<[1], [0], [0], [1], [0, 0, 1, 1], [], []>} : vector<1x128xf32>, vector<128x32xf32>, vector<1x32xf32> -> vector<1x32xf32>
    %165 = arith.addf %160, %164 : vector<1x32xf32>
    %c1_149 = arith.constant 1 : index
    %c0_150 = arith.constant 0 : index
    %166 = vector.load %arg12[%c1_149, %c0_150] : memref<8x128xf32, #tpu.memory_space<vmem>>, vector<1x128xf32>
    %c1_151 = arith.constant 1 : index
    %c0_152 = arith.constant 0 : index
    %c0_153 = arith.constant 0 : index
    %167 = vector.load %arg8[%c1_151, %c0_152, %c0_153] : memref<8x128x32xf32, #tpu.memory_space<vmem>>, vector<1x128x32xf32>
    %168 = vector.shape_cast %167 : vector<1x128x32xf32> to vector<128x32xf32>
    %cst_154 = arith.constant dense<0.000000e+00> : vector<1x32xf32>
    %169 = tpu.matmul %166, %168, %cst_154 {dimension_numbers = #tpu.dot_dimension_numbers<[1], [0], [0], [1], [0, 0, 1, 1], [], []>} : vector<1x128xf32>, vector<128x32xf32>, vector<1x32xf32> -> vector<1x32xf32>
    %170 = arith.addf %165, %169 : vector<1x32xf32>
    %c2_155 = arith.constant 2 : index
    %c0_156 = arith.constant 0 : index
    %171 = vector.load %arg12[%c2_155, %c0_156] : memref<8x128xf32, #tpu.memory_space<vmem>>, vector<1x128xf32>
    %c2_157 = arith.constant 2 : index
    %c0_158 = arith.constant 0 : index
    %c0_159 = arith.constant 0 : index
    %172 = vector.load %arg8[%c2_157, %c0_158, %c0_159] : memref<8x128x32xf32, #tpu.memory_space<vmem>>, vector<1x128x32xf32>
    %173 = vector.shape_cast %172 : vector<1x128x32xf32> to vector<128x32xf32>
    %cst_160 = arith.constant dense<0.000000e+00> : vector<1x32xf32>
    %174 = tpu.matmul %171, %173, %cst_160 {dimension_numbers = #tpu.dot_dimension_numbers<[1], [0], [0], [1], [0, 0, 1, 1], [], []>} : vector<1x128xf32>, vector<128x32xf32>, vector<1x32xf32> -> vector<1x32xf32>
    %175 = arith.addf %170, %174 : vector<1x32xf32>
    %c3_161 = arith.constant 3 : index
    %c0_162 = arith.constant 0 : index
    %176 = vector.load %arg12[%c3_161, %c0_162] : memref<8x128xf32, #tpu.memory_space<vmem>>, vector<1x128xf32>
    %c3_163 = arith.constant 3 : index
    %c0_164 = arith.constant 0 : index
    %c0_165 = arith.constant 0 : index
    %177 = vector.load %arg8[%c3_163, %c0_164, %c0_165] : memref<8x128x32xf32, #tpu.memory_space<vmem>>, vector<1x128x32xf32>
    %178 = vector.shape_cast %177 : vector<1x128x32xf32> to vector<128x32xf32>
    %cst_166 = arith.constant dense<0.000000e+00> : vector<1x32xf32>
    %179 = tpu.matmul %176, %178, %cst_166 {dimension_numbers = #tpu.dot_dimension_numbers<[1], [0], [0], [1], [0, 0, 1, 1], [], []>} : vector<1x128xf32>, vector<128x32xf32>, vector<1x32xf32> -> vector<1x32xf32>
    %180 = arith.addf %175, %179 : vector<1x32xf32>
    %c4 = arith.constant 4 : index
    %c0_167 = arith.constant 0 : index
    %181 = vector.load %arg12[%c4, %c0_167] : memref<8x128xf32, #tpu.memory_space<vmem>>, vector<1x128xf32>
    %c4_168 = arith.constant 4 : index
    %c0_169 = arith.constant 0 : index
    %c0_170 = arith.constant 0 : index
    %182 = vector.load %arg8[%c4_168, %c0_169, %c0_170] : memref<8x128x32xf32, #tpu.memory_space<vmem>>, vector<1x128x32xf32>
    %183 = vector.shape_cast %182 : vector<1x128x32xf32> to vector<128x32xf32>
    %cst_171 = arith.constant dense<0.000000e+00> : vector<1x32xf32>
    %184 = tpu.matmul %181, %183, %cst_171 {dimension_numbers = #tpu.dot_dimension_numbers<[1], [0], [0], [1], [0, 0, 1, 1], [], []>} : vector<1x128xf32>, vector<128x32xf32>, vector<1x32xf32> -> vector<1x32xf32>
    %185 = arith.addf %180, %184 : vector<1x32xf32>
    %c5 = arith.constant 5 : index
    %c0_172 = arith.constant 0 : index
    %186 = vector.load %arg12[%c5, %c0_172] : memref<8x128xf32, #tpu.memory_space<vmem>>, vector<1x128xf32>
    %c5_173 = arith.constant 5 : index
    %c0_174 = arith.constant 0 : index
    %c0_175 = arith.constant 0 : index
    %187 = vector.load %arg8[%c5_173, %c0_174, %c0_175] : memref<8x128x32xf32, #tpu.memory_space<vmem>>, vector<1x128x32xf32>
    %188 = vector.shape_cast %187 : vector<1x128x32xf32> to vector<128x32xf32>
    %cst_176 = arith.constant dense<0.000000e+00> : vector<1x32xf32>
    %189 = tpu.matmul %186, %188, %cst_176 {dimension_numbers = #tpu.dot_dimension_numbers<[1], [0], [0], [1], [0, 0, 1, 1], [], []>} : vector<1x128xf32>, vector<128x32xf32>, vector<1x32xf32> -> vector<1x32xf32>
    %190 = arith.addf %185, %189 : vector<1x32xf32>
    %c6 = arith.constant 6 : index
    %c0_177 = arith.constant 0 : index
    %191 = vector.load %arg12[%c6, %c0_177] : memref<8x128xf32, #tpu.memory_space<vmem>>, vector<1x128xf32>
    %c6_178 = arith.constant 6 : index
    %c0_179 = arith.constant 0 : index
    %c0_180 = arith.constant 0 : index
    %192 = vector.load %arg8[%c6_178, %c0_179, %c0_180] : memref<8x128x32xf32, #tpu.memory_space<vmem>>, vector<1x128x32xf32>
    %193 = vector.shape_cast %192 : vector<1x128x32xf32> to vector<128x32xf32>
    %cst_181 = arith.constant dense<0.000000e+00> : vector<1x32xf32>
    %194 = tpu.matmul %191, %193, %cst_181 {dimension_numbers = #tpu.dot_dimension_numbers<[1], [0], [0], [1], [0, 0, 1, 1], [], []>} : vector<1x128xf32>, vector<128x32xf32>, vector<1x32xf32> -> vector<1x32xf32>
    %195 = arith.addf %190, %194 : vector<1x32xf32>
    %c7 = arith.constant 7 : index
    %c0_182 = arith.constant 0 : index
    %196 = vector.load %arg12[%c7, %c0_182] : memref<8x128xf32, #tpu.memory_space<vmem>>, vector<1x128xf32>
    %c7_183 = arith.constant 7 : index
    %c0_184 = arith.constant 0 : index
    %c0_185 = arith.constant 0 : index
    %197 = vector.load %arg8[%c7_183, %c0_184, %c0_185] : memref<8x128x32xf32, #tpu.memory_space<vmem>>, vector<1x128x32xf32>
    %198 = vector.shape_cast %197 : vector<1x128x32xf32> to vector<128x32xf32>
    %cst_186 = arith.constant dense<0.000000e+00> : vector<1x32xf32>
    %199 = tpu.matmul %196, %198, %cst_186 {dimension_numbers = #tpu.dot_dimension_numbers<[1], [0], [0], [1], [0, 0, 1, 1], [], []>} : vector<1x128xf32>, vector<128x32xf32>, vector<1x32xf32> -> vector<1x32xf32>
    %200 = arith.addf %195, %199 : vector<1x32xf32>
    %c0_187 = arith.constant 0 : index
    %c0_188 = arith.constant 0 : index
    %201 = vector.load %arg10[%c0_187, %c0_188] : memref<1x32xf32, #tpu.memory_space<vmem>>, vector<1x32xf32>
    tpu.vector_store %arg10[%c0_187, %c0_188], %200 {strides = array<i32>} : memref<1x32xf32, #tpu.memory_space<vmem>>, vector<1x32xf32>,
    return
  }
}

</mosaic_0001>

<bundles_post_ra>
// kernel: encoder_forward.1
= control target key start
LH: loop header
LB: loop body
LE: loop exit
PB: predicated region body
PF: predicated region fallthrough
CT: control target
= control target key end

     0   :  { %15 = vsyncpa [#allocation5], 0  ;;  %s2079_s16 = smov [#allocation4]   ;;  %s2080_s18 = smov 128   ;;  %s4674_s0 = inlined_call_operand.vmem [shape: f32[1,64], index: 0, kind: input, shape index: {}]   ;;  %s4675_s1 = inlined_call_operand.vmem [shape: f32[64,128], index: 1, kind: input, shape index: {}]   ;;  %s4676_s2 = inlined_call_operand.vmem [shape: f32[1,128], index: 2, kind: input, shape index: {}]   ;;  %s4677_s3 = inlined_call_operand.vmem [shape: f32[1,128], index: 3, kind: input, shape index: {}]   ;;  %s4678_s4 = inlined_call_operand.vmem [shape: f32[128,1152], index: 4, kind: input, shape index: {}]   ;;  %s4679_s5 = inlined_call_operand.vmem [shape: f32[4,8,72], index: 5, kind: input, shape index: {}]   ;;  %s4680_s6 = inlined_call_operand.vmem [shape: f32[4,8,128], index: 6, kind: input, shape index: {}]   ;;  %s4681_s7 = inlined_call_operand.hbm [shape: f32[4,8,128], index: 7, kind: input, shape index: {}]   ;;  %s4682_s8 = inlined_call_operand.vmem [shape: f32[8,128,32], index: 8, kind: input, shape index: {}]   ;;  %s4683_s9 = inlined_call_operand.vmem [shape: f32[1,32], index: 9, kind: input, shape index: {}]   ;;  %s4684_s10 = inlined_call_operand.vmem [shape: f32[1,32], index: 10, kind: output, shape index: {}]  }
   0x1   :  { %s34_s15 = sshll.u32 %s4681_s7, 4  ;;  %s36_s17 = sshll.u32 %s2079_s16, 4  ;;  %s35_s15 = int_to_ptr.hbm [resolvable:$true] %s34_s15  ;;  %s37_s17 = int_to_ptr.vmem [resolvable:$true] %s36_s17 }
   0x2   :  { %s2081_s19 = smov 8  }
   0x3   :  { %42 = dma.hbm_to_vmem [thread:$0]  %s35_s15, 512, %s37_s17, [#allocation5], %s2080_s18, %s2080_s18, %s2081_s19  }
   0x4   :  { %2077 = dma.done.wait [#allocation5], 512  }
   0x5   :  { %2078 = vsyncadd [#allocation5], 4294966784  ;;  %v59_v0 = vld [vmem:[%s4675_s1 + $0x38] sm:$0xff]  ;;  %v58_v1 = vld [vmem:[%s4675_s1 + $0x30] sm:$0xff]  ;;  %vm60_vm0 = vcmask 523264   ;;  %vm439_vm3 = vcmask 588800  }
   0x6   :  { %72 = vmatpush.msra.mxu0 %v59_v0  ;;  %v57_v2 = vld [vmem:[%s4675_s1 + $0x28] sm:$0xff]  ;;  %v2152_v3 = vld [vmem:[%s4678_s4 + $0x438] sm:$0xff]  ;;  %v2157_v4 = vld [vmem:[%s4678_s4 + $0x3f0] sm:$0xff]  ;;  %vm1911_vm8 = vcmask 253952  }
   0x7   :  { %v56_v5 = vld [vmem:[%s4675_s1 + $0x20] sm:$0xff]  ;;  %240 = vmatpush.msra.mxu1 %v2152_v3  ;;  %v2171_v7 = vld [vmem:[%s4678_s4 + $0x3a8] sm:$0xff]  ;;  %v55_v9 = vld [vmem:[%s4675_s1 + $0x18] sm:$0xff] }
   0x8   :  { %73 = vmatpush.msra.mxu0 %v58_v1  ;;  %v2166_v6 = vld [vmem:[%s4678_s4 + $0x440] sm:$0xff]  ;;  %v2177_v8 = vld [vmem:[%s4678_s4 + $0x448] sm:$0xff]  ;;  %v2187_v10 = vld [vmem:[%s4678_s4 + $0x3f8] sm:$0xff] }
   0x9   :  { %260 = vmatpush.msra.mxu2 %v2166_v6  ;;  %4832 = vst [vmem:[#allocation7_spill] sm:$0xff] %v2177_v8  ;;  %241 = vmatpush.msra.mxu1 %v2157_v4  ;;  %v2192_v11 = vld [vmem:[%s4678_s4 + $0x400] sm:$0xff]  ;;  %v2203_v13 = vld [vmem:[%s4678_s4 + $0x3b0] sm:$0xff]  ;;  %v2208_v14 = vld [vmem:[%s4678_s4 + $0x3b8] sm:$0xff] }
   0xa   :  { %74 = vmatpush.msra.mxu0 %v57_v2  ;;  %280 = vmatpush.msra.mxu3 %v2177_v8  ;;  %4833 = vst [vmem:[#allocation8_spill] sm:$0xff] %v2192_v11  ;;  %v2197_v12 = vld [vmem:[%s4678_s4 + $0x360] sm:$0xff]  ;;  %v54_v15 = vld [vmem:[%s4675_s1 + $0x10] sm:$0xff]  ;;  %v2218_v16 = vld [vmem:[%s4678_s4 + $0x368] sm:$0xff] }
   0xb   :  { %261 = vmatpush.msra.mxu2 %v2187_v10  ;;  %4834 = vst [vmem:[#allocation9_spill] sm:$0xff] %v2208_v14  ;;  %242 = vmatpush.msra.mxu1 %v2171_v7  ;;  %v2223_v17 = vld [vmem:[%s4678_s4 + $0x318] sm:$0xff]  ;;  %v2229_v18 = vld [vmem:[%s4678_s4 + $0x370] sm:$0xff]  ;;  %v53_v19 = vld [vmem:[%s4675_s1 + $0x8] sm:$0xff] }
   0xc   :  { %75 = vmatpush.msra.mxu0 %v56_v5  ;;  %281 = vmatpush.msra.mxu3 %v2192_v11  ;;  %4835 = vst [vmem:[#allocation10_spill] sm:$0xff] %v2229_v18  ;;  %v2239_v20 = vld [vmem:[%s4678_s4 + $0x320] sm:$0xff]  ;;  %v2244_v21 = vld [vmem:[%s4678_s4 + $0x2d0] sm:$0xff]  ;;  %v2250_v22 = vld [vmem:[%s4678_s4 + $0x328] sm:$0xff] }
   0xd   :  { %262 = vmatpush.msra.mxu2 %v2203_v13  ;;  %243 = vmatpush.msra.mxu1 %v2197_v12  ;;  %4836 = vst [vmem:[#allocation11_spill] sm:$0xff] %v2250_v22  ;;  %v52_v23 = vld [vmem:[%s4675_s1] sm:$0xff]  ;;  %v2260_v24 = vld [vmem:[%s4678_s4 + $0x2d8] sm:$0xff]  ;;  %v2268_v26 = vld [vmem:[%s4678_s4 + $0x288] sm:$0xff] }
   0xe   :  { %76 = vmatpush.msra.mxu0 %v55_v9  ;;  %282 = vmatpush.msra.mxu3 %v2208_v14  ;;  %v51_v25 = vld [vmem:[%s4674_s0] sm:$0x1]  ;;  %v2274_v27 = vld [vmem:[%s4678_s4 + $0x450] sm:$0xff]  ;;  %v2297_v31 = vld [vmem:[%s4678_s4 + $0x408] sm:$0xff] }
   0xf   :  { %263 = vmatpush.msra.mxu2 %v2218_v16  ;;  %244 = vmatpush.msra.mxu1 %v2223_v17  ;;  %v2281_v28 = vld [vmem:[%s4678_s4 + $0x2e0] sm:$0xff]  ;;  %v2292_v30 = vld [vmem:[%s4678_s4 + $0x290] sm:$0xff]  ;;  %v2303_v32 = vld [vmem:[%s4678_s4 + $0x298] sm:$0xff] }
  0x10   :  { %77 = vmatpush.msra.mxu0 %v54_v15  ;;  %283 = vmatpush.msra.mxu3 %v2229_v18  ;;  %4837 = vst [vmem:[#allocation12_spill] sm:$0xff] %v2281_v28  ;;  %v2286_v29 = vld [vmem:[%s4678_s4 + $0x240] sm:$0xff]  ;;  %v2309_v33 = vld [vmem:[%s4678_s4 + $0x1f8] sm:$0xff]  ;;  %v2315_v34 = vld [vmem:[%s4678_s4 + $0x248] sm:$0xff] }
  0x11   :  { %264 = vmatpush.msra.mxu2 %v2239_v20  ;;  %245 = vmatpush.msra.mxu1 %v2244_v21  ;;  %4838 = vst [vmem:[#allocation13_spill] sm:$0xff] %v2303_v32  ;;  %v2320_v35 = vld [vmem:[%s4678_s4 + $0x3c0] sm:$0xff]  ;;  %v2327_v36 = vld [vmem:[%s4678_s4 + $0x250] sm:$0xff]  ;;  %v2344_v39 = vld [vmem:[%s4678_s4 + $0x378] sm:$0xff] }
  0x12   :  { %78 = vmatpush.msra.mxu0 %v53_v19  ;;  %284 = vmatpush.msra.mxu3 %v2250_v22  ;;  %4839 = vst [vmem:[#allocation14_spill] sm:$0xff] %v2327_v36  ;;  %v2333_v37 = vld [vmem:[%s4678_s4 + $0x1b0] sm:$0xff]  ;;  %v2339_v38 = vld [vmem:[%s4678_s4 + $0x200] sm:$0xff]  ;;  %v2351_v40 = vld [vmem:[%s4678_s4 + $0x208] sm:$0xff] }
  0x13   :  { %265 = vmatpush.msra.mxu2 %v2260_v24  ;;  %246 = vmatpush.msra.mxu1 %v2268_v26  ;;  %4840 = vst [vmem:[#allocation15_spill] sm:$0xff] %v2351_v40  ;;  %v2357_v41 = vld [vmem:[%s4678_s4 + $0x168] sm:$0xff]  ;;  %v2363_v42 = vld [vmem:[%s4678_s4 + $0x1b8] sm:$0xff]  ;;  %v2368_v43 = vld [vmem:[%s4678_s4 + $0x330] sm:$0xff] }
  0x14   :  { %79 = vmatpush.msra.mxu0 %v52_v23  ;;  %285 = vmatpush.msra.mxu3 %v2281_v28  ;;  %v2375_v44 = vld [vmem:[%s4678_s4 + $0x1c0] sm:$0xff]  ;;  %v2387_v46 = vld [vmem:[%s4678_s4 + $0x170] sm:$0xff]  ;;  %v2392_v47 = vld [vmem:[%s4678_s4 + $0x2e8] sm:$0xff] }
  0x15   :  { %1918 = vmatmul.msk.f32.vlgmr.msra.gmra.mxu0 %vm60_vm0, %v51_v25  ;;  %247 = vmatpush.msra.mxu1 %v2286_v29  ;;  %4841 = vst [vmem:[#allocation16_spill] sm:$0xff] %v2375_v44  ;;  %v2381_v45 = vld [vmem:[%s4678_s4 + $0x120] sm:$0xff]  ;;  %v2399_v48 = vld [vmem:[%s4678_s4 + $0x178] sm:$0xff]  ;;  %v2411_v50 = vld [vmem:[%s4678_s4 + $0x128] sm:$0xff] }
  0x16   :  { %300 = vmatpush.msrb.mxu0 %v2274_v27  ;;  %266 = vmatpush.msra.mxu2 %v2292_v30  ;;  %4842 = vst [vmem:[#allocation17_spill] sm:$0xff] %v2399_v48  ;;  %v2405_v49 = vld [vmem:[%s4678_s4 + $0xd8] sm:$0xff]  ;;  %v2416_v51 = vld [vmem:[%s4678_s4 + $0x2a0] sm:$0xff]  ;;  %v2423_v52 = vld [vmem:[%s4678_s4 + $0x130] sm:$0xff] }
  0x17   :  { %286 = vmatpush.msra.mxu3 %v2303_v32  ;;  %248 = vmatpush.msra.mxu1 %v2309_v33  ;;  %4843 = vst [vmem:[#allocation18_spill] sm:$0xff] %v2423_v52  ;;  %v2429_v53 = vld [vmem:[%s4678_s4 + $0x90] sm:$0xff]  ;;  %v2435_v54 = vld [vmem:[%s4678_s4 + $0xe0] sm:$0xff]  ;;  %v2440_v55 = vld [vmem:[%s4678_s4 + $0x258] sm:$0xff] }
  0x18   :  { %301 = vmatpush.msrb.mxu0 %v2297_v31  ;;  %267 = vmatpush.msra.mxu2 %v2315_v34  ;;  %v2447_v56 = vld [vmem:[%s4678_s4 + $0xe8] sm:$0xff]  ;;  %v2459_v58 = vld [vmem:[%s4678_s4 + $0x98] sm:$0xff]  ;;  %v2464_v59 = vld [vmem:[%s4678_s4 + $0x210] sm:$0xff] }
  0x19   :  { %287 = vmatpush.msra.mxu3 %v2327_v36  ;;  %249 = vmatpush.msra.mxu1 %v2333_v37  ;;  %4844 = vst [vmem:[#allocation19_spill] sm:$0xff] %v2447_v56  ;;  %v2453_v57 = vld [vmem:[%s4678_s4 + $0x48] sm:$0xff]  ;;  %v2471_v60 = vld [vmem:[%s4678_s4 + $0xa0] sm:$0xff]  ;;  %v2483_v62 = vld [vmem:[%s4678_s4 + $0x50] sm:$0xff] }
  0x1a   :  { %302 = vmatpush.msrb.mxu0 %v2320_v35  ;;  %268 = vmatpush.msra.mxu2 %v2339_v38  ;;  %4845 = vst [vmem:[#allocation20_spill] sm:$0xff] %v2464_v59  ;;  %v2477_v61 = vld [vmem:[%s4678_s4] sm:$0xff]  ;;  %v2488_v63 = vld [vmem:[%s4678_s4 + $0x1c8] sm:$0xff]  ;;  %v2494_v0 = vld [vmem:[%s4678_s4 + $0x458] sm:$0xff] }
  0x1b   :  { %288 = vmatpush.msra.mxu3 %v2351_v40  ;;  %250 = vmatpush.msra.mxu1 %v2357_v41  ;;  %4846 = vst [vmem:[#allocation21_spill] sm:$0xff] %v2471_v60  ;;  %v2502_v1 = vld [vmem:[%s4678_s4 + $0x58] sm:$0xff]  ;;  %v2507_v2 = vld [vmem:[%s4678_s4 + $0x8] sm:$0xff]  ;;  %v2512_v5 = vld [vmem:[%s4678_s4 + $0x180] sm:$0xff] }
  0x1c   :  { %303 = vmatpush.msrb.mxu0 %v2344_v39  ;;  %269 = vmatpush.msra.mxu2 %v2363_v42  ;;  %4847 = vst [vmem:[#allocation22_spill] sm:$0xff] %v2488_v63  ;;  %v2518_v9 = vld [vmem:[%s4678_s4 + $0x410] sm:$0xff]  ;;  %v2531_v19 = vld [vmem:[%s4678_s4 + $0x460] sm:$0xff]  ;;  %v2536_v23 = vld [vmem:[%s4678_s4 + $0x138] sm:$0xff] }
  0x1d   :  { %289 = vmatpush.msra.mxu3 %v2375_v44  ;;  %251 = vmatpush.msra.mxu1 %v2381_v45  ;;  %4848 = vst [vmem:[#allocation23_spill] sm:$0xff] %v2502_v1  ;;  %v2526_v15 = vld [vmem:[%s4678_s4 + $0x10] sm:$0xff]  ;;  %v2541_v25 = vld [vmem:[%s4678_s4 + $0x3c8] sm:$0xff]  ;;  %v2589_v40 = vld [vmem:[%s4678_s4 + $0x338] sm:$0xff] }
  0x1e   :  { %304 = vmatpush.msrb.mxu0 %v2368_v43  ;;  %270 = vmatpush.msra.mxu2 %v2387_v46  ;;  %4849 = vst [vmem:[#allocation24_spill] sm:$0xff] %v2512_v5  ;;  %v2579_v44 = vld [vmem:[%s4678_s4 + $0x3d0] sm:$0xff]  ;;  %v2598_v36 = vld [vmem:[%s4678_s4 + $0x3d8] sm:$0xff]  ;;  %v2603_v32 = vld [vmem:[%s4678_s4 + $0x388] sm:$0xff] }
  0x1f   :  { %290 = vmatpush.msra.mxu3 %v2399_v48  ;;  %252 = vmatpush.msra.mxu1 %v2405_v49  ;;  %4850 = vst [vmem:[#allocation25_spill] sm:$0xff] %v2526_v15  ;;  %v2574_v48 = vld [vmem:[%s4678_s4 + $0x420] sm:$0xff]  ;;  %v2613_v28 = vld [vmem:[%s4678_s4 + $0x2f0] sm:$0xff]  ;;  %v2637_v14 = vld [vmem:[%s4678_s4 + $0x2a8] sm:$0xff] }
  0x20   :  { %305 = vmatpush.msrb.mxu0 %v2392_v47  ;;  %271 = vmatpush.msra.mxu2 %v2411_v50  ;;  %4851 = vst [vmem:[#allocation26_spill] sm:$0xff] %v2536_v23  ;;  %v2622_v22 = vld [vmem:[%s4678_s4 + $0x390] sm:$0xff]  ;;  %v2627_v18 = vld [vmem:[%s4678_s4 + $0x340] sm:$0xff]  ;;  %v2651_v8 = vld [vmem:[%s4678_s4 + $0x348] sm:$0xff] }
  0x21   :  { %291 = vmatpush.msra.mxu3 %v2423_v52  ;;  %253 = vmatpush.msra.mxu1 %v2429_v53  ;;  %v2565_v52 = vld [vmem:[%s4678_s4 + $0x380] sm:$0xff]  ;;  %4854 = vst [vmem:[#allocation29_spill] sm:$0xff] %v2574_v48  ;;  %v2645_v11 = vld [vmem:[%s4678_s4 + $0x470] sm:$0xff] }
  0x22   :  { %306 = vmatpush.msrb.mxu0 %v2416_v51  ;;  %272 = vmatpush.msra.mxu2 %v2435_v54  ;;  %4856 = vst [vmem:[#allocation31_spill] sm:$0xff] %v2598_v36 }
  0x23   :  { %292 = vmatpush.msra.mxu3 %v2447_v56  ;;  %254 = vmatpush.msra.mxu1 %v2453_v57  ;;  %v2555_v56 = vld [vmem:[%s4678_s4 + $0x418] sm:$0xff]  ;;  %4858 = vst [vmem:[#allocation33_spill] sm:$0xff] %v2622_v22 }
  0x24   :  { %307 = vmatpush.msrb.mxu0 %v2440_v55  ;;  %273 = vmatpush.msra.mxu2 %v2459_v58  ;;  %4860 = vst [vmem:[#allocation35_spill] sm:$0xff] %v2645_v11 }
  0x25   :  { %293 = vmatpush.msra.mxu3 %v2471_v60  ;;  %255 = vmatpush.msra.mxu1 %v2477_v61  ;;  %v2550_v60 = vld [vmem:[%s4678_s4 + $0x468] sm:$0xff]  ;;  %4861 = vst [vmem:[#allocation36_spill] sm:$0xff] %v2651_v8 }
  0x26   :  { %308 = vmatpush.msrb.mxu0 %v2464_v59  ;;  %274 = vmatpush.msra.mxu2 %v2483_v62  ;;  %4852 = vst [vmem:[#allocation27_spill] sm:$0xff] %v2550_v60 }
  0x27   :  { %320 = vmatpush.msrb.mxu1 %v2494_v0  ;;  %294 = vmatpush.msra.mxu3 %v2502_v1  ;;  %v2560_v1 = vld [vmem:[%s4678_s4 + $0xf0] sm:$0xff] }
  0x28   :  { %309 = vmatpush.msrb.mxu0 %v2488_v63  ;;  %275 = vmatpush.msra.mxu2 %v2507_v2  ;;  %4853 = vst [vmem:[#allocation28_spill] sm:$0xff] %v2560_v1 }
  0x29   :  { %321 = vmatpush.msrb.mxu1 %v2518_v9  ;;  %295 = vmatpush.msra.mxu3 %v2526_v15  ;;  %v2584_v15 = vld [vmem:[%s4678_s4 + $0xa8] sm:$0xff] }
  0x2a   :  { %310 = vmatpush.msrb.mxu0 %v2512_v5  ;;  %340 = vmatpush.msrb.mxu2 %v2531_v19  ;;  %4855 = vst [vmem:[#allocation30_spill] sm:$0xff] %v2584_v15  ;;  %v2711_v5 = vld [vmem:[%s4678_s4 + $0x398] sm:$0xff] }
  0x2b   :  { %322 = vmatpush.msrb.mxu1 %v2541_v25  ;;  %360 = vmatpush.msrb.mxu3 %v2550_v60  ;;  %v2608_v60 = vld [vmem:[%s4678_s4 + $0x60] sm:$0xff]  ;;  %4870 = vst [vmem:[#allocation45_spill] sm:$0xff] %v2711_v5 }
  0x2c   :  { %311 = vmatpush.msrb.mxu0 %v2536_v23  ;;  %341 = vmatpush.msrb.mxu2 %v2555_v56  ;;  %4857 = vst [vmem:[#allocation32_spill] sm:$0xff] %v2608_v60  ;;  %v2692_v23 = vld [vmem:[%s4678_s4 + $0x3e0] sm:$0xff] }
  0x2d   :  { %323 = vmatpush.msrb.mxu1 %v2565_v52  ;;  %361 = vmatpush.msrb.mxu3 %v2574_v48  ;;  %v2632_v48 = vld [vmem:[%s4678_s4 + $0x18] sm:$0xff]  ;;  %4867 = vst [vmem:[#allocation42_spill] sm:$0xff] %v2692_v23 }
  0x2e   :  { %312 = vmatpush.msrb.mxu0 %v2560_v1  ;;  %342 = vmatpush.msrb.mxu2 %v2579_v44  ;;  %4859 = vst [vmem:[#allocation34_spill] sm:$0xff] %v2632_v48  ;;  %v2681_v1 = vld [vmem:[%s4678_s4 + $0x218] sm:$0xff] }
  0x2f   :  { %324 = vmatpush.msrb.mxu1 %v2589_v40  ;;  %362 = vmatpush.msrb.mxu3 %v2598_v36  ;;  %v2656_v36 = vld [vmem:[%s4678_s4 + $0x260] sm:$0xff]  ;;  %4865 = vst [vmem:[#allocation40_spill] sm:$0xff] %v2681_v1 }
  0x30   :  { %313 = vmatpush.msrb.mxu0 %v2584_v15  ;;  %343 = vmatpush.msrb.mxu2 %v2603_v32  ;;  %4862 = vst [vmem:[#allocation37_spill] sm:$0xff] %v2656_v36  ;;  %v2669_v15 = vld [vmem:[%s4678_s4 + $0x428] sm:$0xff] }
  0x31   :  { %325 = vmatpush.msrb.mxu1 %v2613_v28  ;;  %363 = vmatpush.msrb.mxu3 %v2622_v22  ;;  %4863 = vst [vmem:[#allocation38_spill] sm:$0xff] %v2669_v15  ;;  %v2675_v22 = vld [vmem:[%s4678_s4 + $0x300] sm:$0xff] }
  0x32   :  { %314 = vmatpush.msrb.mxu0 %v2608_v60  ;;  %344 = vmatpush.msrb.mxu2 %v2627_v18  ;;  %v2663_v60 = vld [vmem:[%s4678_s4 + $0x2f8] sm:$0xff]  ;;  %4864 = vst [vmem:[#allocation39_spill] sm:$0xff] %v2675_v22 }
  0x33   :  { %326 = vmatpush.msrb.mxu1 %v2637_v14  ;;  %364 = vmatpush.msrb.mxu3 %v2651_v8  ;;  %v2705_v8 = vld [vmem:[%s4678_s4 + $0x1d0] sm:$0xff] }
  0x34   :  { %315 = vmatpush.msrb.mxu0 %v2632_v48  ;;  %v2687_v48 = vld [vmem:[%s4678_s4 + $0x2b0] sm:$0xff]  ;;  %345 = vmatpush.msrb.mxu2 %v2663_v60  ;;  %4869 = vst [vmem:[#allocation44_spill] sm:$0xff] %v2705_v8 }
  0x35   :  { %4866 = vst [vmem:[#allocation41_spill] sm:$0xff] %v2687_v48  ;;  %327 = vmatpush.msrb.mxu1 %v2656_v36  ;;  %365 = vmatpush.msrb.mxu3 %v2675_v22  ;;  %v2725_v22 = vld [vmem:[%s4678_s4 + $0x350] sm:$0xff] }
  0x36   :  { %380 = vmatpush.msra.mxu0 %v2645_v11  ;;  %v2699_v11 = vld [vmem:[%s4678_s4 + $0x2b8] sm:$0xff]  ;;  %346 = vmatpush.msrb.mxu2 %v2687_v48  ;;  %4872 = vst [vmem:[#allocation47_spill] sm:$0xff] %v2725_v22 }
  0x37   :  { %4868 = vst [vmem:[#allocation43_spill] sm:$0xff] %v2699_v11  ;;  %328 = vmatpush.msrb.mxu1 %v2681_v1  ;;  %366 = vmatpush.msrb.mxu3 %v2699_v11  ;;  %v2739_v11 = vld [vmem:[%s4678_s4 + $0x2c0] sm:$0xff] }
  0x38   :  { %381 = vmatpush.msra.mxu0 %v2669_v15  ;;  %v2719_v15 = vld [vmem:[%s4678_s4 + $0x188] sm:$0xff]  ;;  %4874 = vst [vmem:[#allocation49_spill] sm:$0xff] %v2739_v11  ;;  %v86_v1 = vld [vmem:[%s4677_s3] sm:$0x1] }
  0x39   :  { %4871 = vst [vmem:[#allocation46_spill] sm:$0xff] %v2719_v15  ;;  %329 = vmatpush.msrb.mxu1 %v2705_v8  ;;  %v2780_v8 = vld [vmem:[%s4678_s4 + $0x228] sm:$0xff] }
  0x3a   :  { %382 = vmatpush.msra.mxu0 %v2692_v23  ;;  %v2732_v23 = vld [vmem:[%s4678_s4 + $0x308] sm:$0xff]  ;;  %4881 = vst [vmem:[#allocation56_spill] sm:$0xff] %v2780_v8 }
  0x3b   :  { %4873 = vst [vmem:[#allocation48_spill] sm:$0xff] %v2732_v23  ;;  %330 = vmatpush.msrb.mxu1 %v2719_v15  ;;  %v2751_v15 = vld [vmem:[%s4678_s4 + $0x268] sm:$0xff] }
  0x3c   :  { %383 = vmatpush.msra.mxu0 %v2711_v5  ;;  %v2746_v5 = vld [vmem:[%s4678_s4 + $0x140] sm:$0xff]  ;;  %4876 = vst [vmem:[#allocation51_spill] sm:$0xff] %v2751_v15  ;;  %347 = vmatpush.msrb.mxu2 %v2751_v15  ;;  %v2894_v15 = vld [vmem:[%s4678_s4 + $0xc8] sm:$0xff] }
  0x3d   :  { %4875 = vst [vmem:[#allocation50_spill] sm:$0xff] %v2746_v5  ;;  %331 = vmatpush.msrb.mxu1 %v2746_v5  ;;  %v2775_v5 = vld [vmem:[%s4678_s4 + $0x220] sm:$0xff] }
  0x3e   :  { %384 = vmatpush.msra.mxu0 %v2725_v22  ;;  %v2770_v22 = vld [vmem:[%s4678_s4 + $0xf8] sm:$0xff]  ;;  %4880 = vst [vmem:[#allocation55_spill] sm:$0xff] %v2775_v5  ;;  %348 = vmatpush.msrb.mxu2 %v2775_v5  ;;  %v2804_v5 = vld [vmem:[%s4678_s4 + $0x1e0] sm:$0xff] }
  0x3f   :  { %4879 = vst [vmem:[#allocation54_spill] sm:$0xff] %v2770_v22  ;;  %332 = vmatpush.msrb.mxu1 %v2770_v22  ;;  %v2799_v22 = vld [vmem:[%s4678_s4 + $0x1d8] sm:$0xff] }
  0x40   :  { %385 = vmatpush.msra.mxu0 %v2732_v23  ;;  %v2758_v23 = vld [vmem:[%s4678_s4 + $0x270] sm:$0xff]  ;;  %4884 = vst [vmem:[#allocation59_spill] sm:$0xff] %v2799_v22  ;;  %349 = vmatpush.msrb.mxu2 %v2799_v22  ;;  %v2828_v22 = vld [vmem:[%s4678_s4 + $0x198] sm:$0xff] }
  0x41   :  { %4877 = vst [vmem:[#allocation52_spill] sm:$0xff] %v2758_v23  ;;  %367 = vmatpush.msrb.mxu3 %v2758_v23  ;;  %v2787_v23 = vld [vmem:[%s4678_s4 + $0x230] sm:$0xff] }
  0x42   :  { %386 = vmatpush.msra.mxu0 %v2739_v11  ;;  %v2763_v11 = vld [vmem:[%s4678_s4 + $0x278] sm:$0xff]  ;;  %4882 = vst [vmem:[#allocation57_spill] sm:$0xff] %v2787_v23 }
  0x43   :  { %4878 = vst [vmem:[#allocation53_spill] sm:$0xff] %v2763_v11  ;;  %368 = vmatpush.msrb.mxu3 %v2780_v8  ;;  %v2811_v8 = vld [vmem:[%s4678_s4 + $0x1e8] sm:$0xff] }
  0x44   :  { %387 = vmatpush.msra.mxu0 %v2763_v11  ;;  %v2794_v11 = vld [vmem:[%s4678_s4 + $0xb0] sm:$0xff]  ;;  %4885 = vst [vmem:[#allocation60_spill] sm:$0xff] %v2804_v5 }
  0x45   :  { %4883 = vst [vmem:[#allocation58_spill] sm:$0xff] %v2794_v11  ;;  %333 = vmatpush.msrb.mxu1 %v2794_v11  ;;  %369 = vmatpush.msrb.mxu3 %v2804_v5  ;;  %v2823_v11 = vld [vmem:[%s4678_s4 + $0x190] sm:$0xff]  ;;  %v2835_v5 = vld [vmem:[%s4678_s4 + $0x1a0] sm:$0xff] }
  0x46   :  { %388 = vmatpush.msra.mxu0 %v2787_v23  ;;  %4886 = vst [vmem:[#allocation61_spill] sm:$0xff] %v2811_v8  ;;  %v2818_v23 = vld [vmem:[%s4678_s4 + $0x68] sm:$0xff]  ;;  %350 = vmatpush.msrb.mxu2 %v2823_v11 }
  0x47   :  { %4887 = vst [vmem:[#allocation62_spill] sm:$0xff] %v2818_v23  ;;  %334 = vmatpush.msrb.mxu1 %v2818_v23  ;;  %370 = vmatpush.msrb.mxu3 %v2828_v22  ;;  %v2847_v23 = vld [vmem:[%s4678_s4 + $0x148] sm:$0xff] }
  0x48   :  { %389 = vmatpush.msra.mxu0 %v2811_v8  ;;  %4888 = vst [vmem:[#allocation63_spill] sm:$0xff] %v2823_v11  ;;  %v2842_v8 = vld [vmem:[%s4678_s4 + $0x20] sm:$0xff]  ;;  %v2852_v11 = vld [vmem:[%s4678_s4 + $0x150] sm:$0xff]  ;;  %351 = vmatpush.msrb.mxu2 %v2847_v23 }
  0x49   :  { %4889 = vst [vmem:[#allocation64_spill] sm:$0xff] %v2828_v22  ;;  %335 = vmatpush.msrb.mxu1 %v2842_v8  ;;  %v2859_v22 = vld [vmem:[%s4678_s4 + $0x158] sm:$0xff]  ;;  %371 = vmatpush.msrb.mxu3 %v2852_v11 }
  0x4a   :  { %4890 = vst [vmem:[#allocation65_spill] sm:$0xff] %v2835_v5  ;;  %390 = vmatpush.msra.mxu0 %v2835_v5  ;;  %v2866_v5 = vld [vmem:[%s4678_s4 + $0x100] sm:$0xff] }
  0x4b   :  { %4891 = vst [vmem:[#allocation66_spill] sm:$0xff] %v2842_v8  ;;  %v2871_v8 = vld [vmem:[%s4678_s4 + $0x108] sm:$0xff]  ;;  %352 = vmatpush.msrb.mxu2 %v2866_v5 }
  0x4c   :  { %4892 = vst [vmem:[#allocation67_spill] sm:$0xff] %v2847_v23  ;;  %391 = vmatpush.msra.mxu0 %v2859_v22  ;;  %v2876_v23 = vld [vmem:[%s4678_s4 + $0x110] sm:$0xff]  ;;  %372 = vmatpush.msrb.mxu3 %v2871_v8 }
  0x4d   :  { %4893 = vst [vmem:[#allocation68_spill] sm:$0xff] %v2852_v11  ;;  %v2884_v11 = vld [vmem:[%s4678_s4 + $0xb8] sm:$0xff] }
  0x4e   :  { %4894 = vst [vmem:[#allocation69_spill] sm:$0xff] %v2859_v22  ;;  %392 = vmatpush.msra.mxu0 %v2876_v23  ;;  %v2889_v22 = vld [vmem:[%s4678_s4 + $0xc0] sm:$0xff]  ;;  %353 = vmatpush.msrb.mxu2 %v2884_v11 }
  0x4f   :  { %4895 = vst [vmem:[#allocation70_spill] sm:$0xff] %v2866_v5  ;;  %373 = vmatpush.msrb.mxu3 %v2889_v22  ;;  %v2912_v5 = vld [vmem:[%s4678_s4 + $0x80] sm:$0xff] }
  0x50   :  { %4896 = vst [vmem:[#allocation71_spill] sm:$0xff] %v2871_v8  ;;  %393 = vmatpush.msra.mxu0 %v2894_v15  ;;  %v2902_v8 = vld [vmem:[%s4678_s4 + $0x70] sm:$0xff] }
  0x51   :  { %4897 = vst [vmem:[#allocation72_spill] sm:$0xff] %v2876_v23  ;;  %v2907_v23 = vld [vmem:[%s4678_s4 + $0x78] sm:$0xff]  ;;  %354 = vmatpush.msrb.mxu2 %v2902_v8 }
  0x52   :  { %4898 = vst [vmem:[#allocation73_spill] sm:$0xff] %v2884_v11  ;;  %374 = vmatpush.msrb.mxu3 %v2907_v23  ;;  %394 = vmatpush.msra.mxu0 %v2912_v5  ;;  %v2930_v11 = vld [vmem:[%s4678_s4 + $0x38] sm:$0xff] }
  0x53   :  { %4899 = vst [vmem:[#allocation74_spill] sm:$0xff] %v2889_v22  ;;  %v2920_v22 = vld [vmem:[%s4678_s4 + $0x28] sm:$0xff] }
  0x54   :  { %4900 = vst [vmem:[#allocation75_spill] sm:$0xff] %v2894_v15  ;;  %v2925_v15 = vld [vmem:[%s4678_s4 + $0x30] sm:$0xff]  ;;  %355 = vmatpush.msrb.mxu2 %v2920_v22  ;;  %395 = vmatpush.msra.mxu0 %v2930_v11 }
  0x55   :  { %4901 = vst [vmem:[#allocation76_spill] sm:$0xff] %v2902_v8  ;;  %375 = vmatpush.msrb.mxu3 %v2925_v15 }
  0x56   :  { %4902 = vst [vmem:[#allocation77_spill] sm:$0xff] %v2907_v23  ;;  %v84_v23 = vld [vmem:[%s4676_s2] sm:$0x1] }
  0x57   :  { %4903 = vst [vmem:[#allocation78_spill] sm:$0xff] %v2912_v5  ;;  %v91_v5 = vlaneseq }
  0x58   :  { %4904 = vst [vmem:[#allocation79_spill] sm:$0xff] %v2920_v22 }
  0x59   :  { %4905 = vst [vmem:[#allocation80_spill] sm:$0xff] %v2925_v15  ;;  %v2941_v36 = vshrl.u32 %v91_v5, 7 }
  0x5a   :  { %4906 = vst [vmem:[#allocation81_spill] sm:$0xff] %v2930_v11  ;;  %v2949_v11 = vld [vmem:[%s4678_s4 + $0x478] sm:$0xff] }
  0x5b   :  { %vm93_vm2 = vcmp.eq.s32.totalorder %v2941_v36, 0  ;;  %v4919_v36 = vld [vmem:[#allocation28_spill] sm:$0xff] }
  0x61   :  { %v4949_v5 = vld [vmem:[#allocation81_spill] sm:$0xff] }
  0x92   :  { %v81_v8 = vpop.f32.mrf.mxu0 }
  0x93   :  { %v85_v63 = vmul.f32 %v84_v23, %v81_v8  ;;  %v2966_v8 = vld [vmem:[%s4678_s4 + $0x430] sm:$0xff] }
  0x95   :  { %v87_v48 = vadd.f32 %v86_v1, %v85_v63  ;;  %v4945_v63 = vld [vmem:[#allocation69_spill] sm:$0xff]  ;;  %v4947_v1 = vld [vmem:[#allocation75_spill] sm:$0xff] }
  0x97   :  { %vm88_vm1 = vcmp.gt.f32.partialorder %v87_v48, 0.0  ;;  %v89_v22 = vmul.f32 0.01, %v87_v48 }
  0x99   :  { %v90_v59 = vsel %vm88_vm1, %v87_v48, %v89_v22  ;;  %v2973_v22 = vld [vmem:[%s4678_s4 + $0x3e8] sm:$0xff]  ;;  %v2981_v48 = vld [vmem:[%s4678_s4 + $0x3a0] sm:$0xff] }
  0x9a   :  { %v2944_v15 = vperm.slane %v90_v59, 0  ;;  %v4941_v59 = vld [vmem:[#allocation53_spill] sm:$0xff] }
  0x9c   :  { %1919 = vmatmul.msk.f32.vlgmr.msra.gmra.mxu1 %vm93_vm2, %v2944_v15  ;;  %1920 = vmatmul.msk.f32.vlgmr.msra.gmra.mxu2 %vm93_vm2, %v2944_v15 }
  0x9d   :  { %1921 = vmatmul.msk.f32.vlgmr.msra.gmra.mxu3 %vm93_vm2, %v2944_v15  ;;  %1922 = vmatmul.msk.f32.vlgmr.msrb.gmra.mxu0 %vm93_vm2, %v2944_v15 }
  0x9e   :  { %400 = vmatpush.msra.mxu1 %v2949_v11  ;;  %614 = vmatpush.msra.mxu3 %v2152_v3  ;;  %v2989_v3 = vld [vmem:[%s4678_s4 + $0x358] sm:$0xff] }
  0x9f   :  { %634 = vmatpush.msrb.mxu0 %v2166_v6  ;;  %v3014_v6 = vld [vmem:[%s4678_s4 + $0x2c8] sm:$0xff] }
  0xa0   :  { %401 = vmatpush.msra.mxu1 %v2966_v8  ;;  %615 = vmatpush.msra.mxu3 %v2157_v4  ;;  %v3005_v4 = vld [vmem:[%s4678_s4 + $0x310] sm:$0xff] }
  0xa1   :  { %635 = vmatpush.msrb.mxu0 %v2187_v10  ;;  %v3030_v10 = vld [vmem:[%s4678_s4 + $0x238] sm:$0xff] }
  0xa2   :  { %402 = vmatpush.msra.mxu1 %v2973_v22  ;;  %616 = vmatpush.msra.mxu3 %v2171_v7  ;;  %v3022_v7 = vld [vmem:[%s4678_s4 + $0x280] sm:$0xff] }
  0xa3   :  { %636 = vmatpush.msrb.mxu0 %v2203_v13  ;;  %v3046_v13 = vld [vmem:[%s4678_s4 + $0x1a8] sm:$0xff] }
  0xa4   :  { %403 = vmatpush.msra.mxu1 %v2981_v48  ;;  %1924 = vmatmul.msk.f32.vlgmr.msrb.gmra.mxu2 %vm93_vm2, %v2944_v15 }
  0xa5   :  { %1923 = vmatmul.msk.f32.vlgmr.msrb.gmra.mxu1 %vm93_vm2, %v2944_v15  ;;  %1925 = vmatmul.msk.f32.vlgmr.msrb.gmra.mxu3 %vm93_vm2, %v2944_v15 }
  0xa6   :  { %1926 = vmatmul.msk.f32.vlgmr.msra.gmra.mxu0 %vm93_vm2, %v2944_v15  ;;  %404 = vmatpush.msra.mxu1 %v2989_v3 }
  0xa7   :  { %617 = vmatpush.msra.mxu3 %v2197_v12  ;;  %637 = vmatpush.msrb.mxu0 %v2218_v16  ;;  %v3038_v12 = vld [vmem:[%s4678_s4 + $0x1f0] sm:$0xff]  ;;  %v3054_v16 = vld [vmem:[%s4678_s4 + $0x160] sm:$0xff] }
  0xa8   :  { %405 = vmatpush.msra.mxu1 %v3005_v4 }
  0xa9   :  { %618 = vmatpush.msra.mxu3 %v2223_v17  ;;  %638 = vmatpush.msrb.mxu0 %v2239_v20  ;;  %v3062_v17 = vld [vmem:[%s4678_s4 + $0x118] sm:$0xff]  ;;  %v3070_v20 = vld [vmem:[%s4678_s4 + $0xd0] sm:$0xff] }
  0xaa   :  { %406 = vmatpush.msra.mxu1 %v3014_v6 }
  0xab   :  { %619 = vmatpush.msra.mxu3 %v2244_v21  ;;  %639 = vmatpush.msrb.mxu0 %v2260_v24  ;;  %v3078_v21 = vld [vmem:[%s4678_s4 + $0x88] sm:$0xff]  ;;  %v3086_v24 = vld [vmem:[%s4678_s4 + $0x40] sm:$0xff] }
  0xac   :  { %407 = vmatpush.msra.mxu1 %v3022_v7 }
  0xad   :  { %620 = vmatpush.msra.mxu3 %v2268_v26  ;;  %640 = vmatpush.msrb.mxu0 %v2292_v30  ;;  %v4907_v26 = vld [vmem:[#allocation20_spill] sm:$0xff]  ;;  %v4910_v30 = vld [vmem:[#allocation22_spill] sm:$0xff] }
  0xae   :  { %408 = vmatpush.msra.mxu1 %v3030_v10 }
  0xaf   :  { %621 = vmatpush.msra.mxu3 %v2286_v29  ;;  %641 = vmatpush.msrb.mxu0 %v2315_v34  ;;  %v4909_v29 = vld [vmem:[#allocation41_spill] sm:$0xff]  ;;  %v4917_v34 = vld [vmem:[#allocation46_spill] sm:$0xff] }
  0xb0   :  { %409 = vmatpush.msra.mxu1 %v3038_v12 }
  0xb1   :  { %622 = vmatpush.msra.mxu3 %v2309_v33  ;;  %642 = vmatpush.msrb.mxu0 %v2339_v38  ;;  %v4915_v33 = vld [vmem:[#allocation55_spill] sm:$0xff] }
  0xb2   :  { %410 = vmatpush.msra.mxu1 %v3046_v13  ;;  %v4921_v38 = vld [vmem:[#allocation63_spill] sm:$0xff] }
  0xb3   :  { %623 = vmatpush.msra.mxu3 %v2333_v37  ;;  %643 = vmatpush.msrb.mxu0 %v2363_v42  ;;  %v4920_v37 = vld [vmem:[#allocation50_spill] sm:$0xff]  ;;  %v4925_v42 = vld [vmem:[#allocation32_spill] sm:$0xff] }
  0xb4   :  { %411 = vmatpush.msra.mxu1 %v3054_v16 }
  0xb5   :  { %624 = vmatpush.msra.mxu3 %v2357_v41  ;;  %644 = vmatpush.msrb.mxu0 %v2387_v46  ;;  %v4924_v41 = vld [vmem:[#allocation67_spill] sm:$0xff]  ;;  %v4929_v46 = vld [vmem:[#allocation62_spill] sm:$0xff] }
  0xb6   :  { %412 = vmatpush.msra.mxu1 %v3062_v17 }
  0xb7   :  { %625 = vmatpush.msra.mxu3 %v2381_v45  ;;  %645 = vmatpush.msrb.mxu0 %v2411_v50  ;;  %v4928_v45 = vld [vmem:[#allocation34_spill] sm:$0xff] }
  0xb8   :  { %413 = vmatpush.msra.mxu1 %v3070_v20  ;;  %v4932_v50 = vld [vmem:[#allocation66_spill] sm:$0xff] }
  0xb9   :  { %626 = vmatpush.msra.mxu3 %v2405_v49  ;;  %646 = vmatpush.msrb.mxu0 %v2435_v54  ;;  %v4931_v49 = vld [vmem:[#allocation73_spill] sm:$0xff]  ;;  %v4936_v54 = vld [vmem:[#allocation79_spill] sm:$0xff] }
  0xba   :  { %414 = vmatpush.msra.mxu1 %v3078_v21 }
  0xbb   :  { %627 = vmatpush.msra.mxu3 %v2429_v53  ;;  %647 = vmatpush.msrb.mxu0 %v2459_v58  ;;  %v4935_v53 = vld [vmem:[#allocation42_spill] sm:$0xff]  ;;  %v4940_v58 = vld [vmem:[#allocation49_spill] sm:$0xff] }
  0xbc   :  { %415 = vmatpush.msra.mxu1 %v3086_v24 }
  0xbd   :  { %1927 = vmatmul.msk.f32.vlgmr.msra.gmra.mxu1 %vm93_vm2, %v2944_v15  ;;  %628 = vmatpush.msra.mxu3 %v2453_v57  ;;  %v4939_v57 = vld [vmem:[#allocation48_spill] sm:$0xff] }
  0xbe   :  { %674 = vmatpush.msrb.mxu1 %v2274_v27  ;;  %648 = vmatpush.msrb.mxu0 %v2483_v62  ;;  %v4908_v27 = vld [vmem:[#allocation37_spill] sm:$0xff] }
  0xbf   :  { %629 = vmatpush.msra.mxu3 %v2477_v61  ;;  %v4943_v61 = vld [vmem:[#allocation61_spill] sm:$0xff] }
  0xc0   :  { %675 = vmatpush.msrb.mxu1 %v2297_v31  ;;  %649 = vmatpush.msrb.mxu0 %v2507_v2  ;;  %v4911_v31 = vld [vmem:[#allocation40_spill] sm:$0xff]  ;;  %v4944_v62 = vld [vmem:[#allocation65_spill] sm:$0xff]  ;;  %v4948_v2 = vld [vmem:[#allocation78_spill] sm:$0xff] }
  0xc1   :  { %694 = vmatpush.msrb.mxu3 %v2494_v0  ;;  %v4946_v0 = vld [vmem:[#allocation72_spill] sm:$0xff] }
  0xc2   :  { %676 = vmatpush.msrb.mxu1 %v2320_v35  ;;  %714 = vmatpush.msra.mxu0 %v2531_v19  ;;  %v4918_v35 = vld [vmem:[#allocation59_spill] sm:$0xff] }
  0xc3   :  { %695 = vmatpush.msrb.mxu3 %v2518_v9 }
  0xc4   :  { %677 = vmatpush.msrb.mxu1 %v2344_v39  ;;  %715 = vmatpush.msra.mxu0 %v2555_v56  ;;  %v4922_v39 = vld [vmem:[#allocation30_spill] sm:$0xff]  ;;  %v4938_v56 = vld [vmem:[#allocation47_spill] sm:$0xff] }
  0xc5   :  { %696 = vmatpush.msrb.mxu3 %v2541_v25 }
  0xc6   :  { %678 = vmatpush.msrb.mxu1 %v2368_v43  ;;  %716 = vmatpush.msra.mxu0 %v2579_v44  ;;  %v4926_v43 = vld [vmem:[#allocation58_spill] sm:$0xff] }
  0xc7   :  { %697 = vmatpush.msrb.mxu3 %v2565_v52  ;;  %v4927_v44 = vld [vmem:[#allocation70_spill] sm:$0xff]  ;;  %v4934_v52 = vld [vmem:[#allocation76_spill] sm:$0xff] }
  0xc8   :  { %679 = vmatpush.msrb.mxu1 %v2392_v47  ;;  %717 = vmatpush.msra.mxu0 %v2603_v32  ;;  %v4912_v32 = vld [vmem:[#allocation51_spill] sm:$0xff] }
  0xc9   :  { %698 = vmatpush.msrb.mxu3 %v2589_v40  ;;  %v4923_v40 = vld [vmem:[#allocation54_spill] sm:$0xff]  ;;  %v4930_v47 = vld [vmem:[#allocation35_spill] sm:$0xff] }
  0xca   :  { %680 = vmatpush.msrb.mxu1 %v2416_v51  ;;  %718 = vmatpush.msra.mxu0 %v2627_v18  ;;  %v4914_v18 = vld [vmem:[#allocation44_spill] sm:$0xff]  ;;  %v4933_v51 = vld [vmem:[#allocation38_spill] sm:$0xff] }
  0xcb   :  { %699 = vmatpush.msrb.mxu3 %v2613_v28  ;;  %v4913_v28 = vld [vmem:[#allocation24_spill] sm:$0xff] }
  0xcc   :  { %681 = vmatpush.msrb.mxu1 %v2440_v55  ;;  %719 = vmatpush.msra.mxu0 %v2663_v60  ;;  %v4937_v55 = vld [vmem:[#allocation45_spill] sm:$0xff] }
  0xcd   :  { %700 = vmatpush.msrb.mxu3 %v2637_v14  ;;  %v4916_v14 = vld [vmem:[#allocation26_spill] sm:$0xff]  ;;  %v4942_v60 = vld [vmem:[#allocation57_spill] sm:$0xff] }
  0xce   :  { %682 = vmatpush.msrb.mxu1 %v4907_v26  ;;  %720 = vmatpush.msra.mxu0 %v4909_v29 }
  0xcf   :  { %701 = vmatpush.msrb.mxu3 %v4908_v27 }
  0xd0   :  { %683 = vmatpush.msrb.mxu1 %v4910_v30  ;;  %721 = vmatpush.msra.mxu0 %v4912_v32  ;;  %v4950_v32 = vld [vmem:[#allocation7_spill] sm:$0xff] }
  0xd1   :  { %702 = vmatpush.msrb.mxu3 %v4911_v31  ;;  %v429_v31 = vld [vmem:[%s4679_s5] sm:$0xff] }
  0xd2   :  { %684 = vmatpush.msrb.mxu1 %v4913_v28  ;;  %722 = vmatpush.msra.mxu0 %v4915_v33  ;;  %v4951_v28 = vld [vmem:[#allocation8_spill] sm:$0xff]  ;;  %v4953_v33 = vld [vmem:[#allocation10_spill] sm:$0xff] }
  0xd3   :  { %703 = vmatpush.msrb.mxu3 %v4914_v18  ;;  %v4952_v18 = vld [vmem:[#allocation9_spill] sm:$0xff] }
  0xd4   :  { %685 = vmatpush.msrb.mxu1 %v4916_v14  ;;  %723 = vmatpush.msra.mxu0 %v4918_v35  ;;  %v4954_v14 = vld [vmem:[#allocation11_spill] sm:$0xff]  ;;  %v4956_v35 = vld [vmem:[#allocation13_spill] sm:$0xff] }
  0xd5   :  { %704 = vmatpush.msrb.mxu3 %v4917_v34  ;;  %v4955_v34 = vld [vmem:[#allocation12_spill] sm:$0xff] }
  0xd6   :  { %686 = vmatpush.msrb.mxu1 %v4919_v36  ;;  %724 = vmatpush.msra.mxu0 %v4921_v38  ;;  %v4957_v36 = vld [vmem:[#allocation14_spill] sm:$0xff]  ;;  %v4959_v38 = vld [vmem:[#allocation16_spill] sm:$0xff] }
  0xd7   :  { %705 = vmatpush.msrb.mxu3 %v4920_v37  ;;  %v4958_v37 = vld [vmem:[#allocation15_spill] sm:$0xff] }
  0xd8   :  { %687 = vmatpush.msrb.mxu1 %v4922_v39  ;;  %725 = vmatpush.msra.mxu0 %v4924_v41  ;;  %v4960_v39 = vld [vmem:[#allocation17_spill] sm:$0xff]  ;;  %v4962_v41 = vld [vmem:[#allocation19_spill] sm:$0xff] }
  0xd9   :  { %706 = vmatpush.msrb.mxu3 %v4923_v40  ;;  %v4961_v40 = vld [vmem:[#allocation18_spill] sm:$0xff] }
  0xda   :  { %688 = vmatpush.msrb.mxu1 %v4925_v42  ;;  %726 = vmatpush.msra.mxu0 %v4927_v44  ;;  %v4963_v42 = vld [vmem:[#allocation21_spill] sm:$0xff] }
  0xdb   :  { %707 = vmatpush.msrb.mxu3 %v4926_v43  ;;  %v4964_v43 = vld [vmem:[#allocation23_spill] sm:$0xff]  ;;  %v4965_v44 = vld [vmem:[#allocation25_spill] sm:$0xff] }
  0xdc   :  { %689 = vmatpush.msrb.mxu1 %v4928_v45  ;;  %727 = vmatpush.msra.mxu0 %v4931_v49  ;;  %v4966_v45 = vld [vmem:[#allocation27_spill] sm:$0xff]  ;;  %v4969_v49 = vld [vmem:[#allocation33_spill] sm:$0xff] }
  0xdd   :  { %708 = vmatpush.msrb.mxu3 %v4929_v46  ;;  %v4967_v46 = vld [vmem:[#allocation29_spill] sm:$0xff] }
  0xde   :  { %754 = vmatpush.msra.mxu1 %v4930_v47  ;;  %728 = vmatpush.msra.mxu0 %v4934_v52  ;;  %v4968_v47 = vld [vmem:[#allocation31_spill] sm:$0xff] }
  0xdf   :  { %709 = vmatpush.msrb.mxu3 %v4932_v50  ;;  %v4970_v50 = vld [vmem:[#allocation36_spill] sm:$0xff]  ;;  %v4972_v52 = vld [vmem:[#allocation43_spill] sm:$0xff] }
  0xe0   :  { %755 = vmatpush.msra.mxu1 %v4933_v51  ;;  %729 = vmatpush.msra.mxu0 %v4936_v54  ;;  %v4971_v51 = vld [vmem:[#allocation39_spill] sm:$0xff]  ;;  %v4974_v54 = vld [vmem:[#allocation56_spill] sm:$0xff] }
  0xe2   :  { %756 = vmatpush.msra.mxu1 %v4935_v53  ;;  %v4973_v53 = vld [vmem:[#allocation52_spill] sm:$0xff] }
  0xe4   :  { %757 = vmatpush.msra.mxu1 %v4937_v55  ;;  %v4975_v55 = vld [vmem:[#allocation60_spill] sm:$0xff] }
  0xe6   :  { %758 = vmatpush.msra.mxu1 %v4938_v56  ;;  %v4976_v56 = vld [vmem:[#allocation64_spill] sm:$0xff] }
  0xe8   :  { %759 = vmatpush.msra.mxu1 %v4939_v57  ;;  %v4977_v57 = vld [vmem:[#allocation68_spill] sm:$0xff] }
  0xea   :  { %760 = vmatpush.msra.mxu1 %v4940_v58  ;;  %v4978_v58 = vld [vmem:[#allocation71_spill] sm:$0xff] }
  0xec   :  { %761 = vmatpush.msra.mxu1 %v4941_v59  ;;  %v4979_v59 = vld [vmem:[#allocation74_spill] sm:$0xff] }
  0xee   :  { %762 = vmatpush.msra.mxu1 %v4942_v60  ;;  %v4980_v60 = vld [vmem:[#allocation77_spill] sm:$0xff] }
  0xf0   :  { %763 = vmatpush.msra.mxu1 %v4943_v61  ;;  %v4981_v61 = vld [vmem:[#allocation80_spill] sm:$0xff] }
  0xf2   :  { %764 = vmatpush.msra.mxu1 %v4944_v62  ;;  %v463_v62 = vld [vmem:[%s4680_s6] sm:$0xff] }
  0xf4   :  { %765 = vmatpush.msra.mxu1 %v4945_v63 }
  0xf6   :  { %766 = vmatpush.msra.mxu1 %v4946_v0  ;;  %v465_v0 = vld [vmem:[#allocation4] sm:$0xff] }
  0xf8   :  { %767 = vmatpush.msra.mxu1 %v4947_v1 }
  0xfa   :  { %768 = vmatpush.msra.mxu1 %v4948_v2 }
  0xfc   :  { %769 = vmatpush.msra.mxu1 %v4949_v5 }
 0x119   :  { %v257_v9 = vpop.f32.mrf.mxu1 }
 0x11a   :  { %v317_v15 = vpop.f32.mrf.mxu0 }
 0x11f   :  { %v277_v25 = vpop.f32.mrf.mxu2 }
 0x120   :  { %v297_v23 = vpop.f32.mrf.mxu3 }
 0x122   :  { %v337_v19 = vpop.f32.mrf.mxu1 }
 0x123   :  { %v397_v27 = vpop.f32.mrf.mxu0 }
 0x127   :  { %v357_v30 = vpop.f32.mrf.mxu2 }
 0x128   :  { %v377_v29 = vpop.f32.mrf.mxu3 }
 0x13a   :  { %v417_v26 = vpop.f32.mrf.mxu1 }
 0x13b   :  { %450 = vmatpush.msra.mxu2 %v417_v26  ;;  %v3322_v26 = vld [vmem:[%s4678_s4 + $0x2d8] sm:$0xff] }
 0x13d   :  { %451 = vmatpush.msra.mxu2 %v397_v27 }
 0x13f   :  { %452 = vmatpush.msra.mxu2 %v377_v29  ;;  %v3329_v29 = vld [vmem:[%s4678_s4 + $0x288] sm:$0xff] }
 0x141   :  { %453 = vmatpush.msra.mxu2 %v357_v30  ;;  %v3335_v30 = vld [vmem:[%s4678_s4 + $0x2e0] sm:$0xff] }
 0x142   :  { %4987 = vst [vmem:[#allocation51_spill] sm:$0xff] %v3335_v30 }
 0x143   :  { %454 = vmatpush.msra.mxu2 %v337_v19 }
 0x145   :  { %455 = vmatpush.msra.mxu2 %v317_v15  ;;  %v3302_v15 = vld [vmem:[%s4678_s4 + $0x320] sm:$0xff] }
 0x147   :  { %456 = vmatpush.msra.mxu2 %v297_v23  ;;  %v3309_v23 = vld [vmem:[%s4678_s4 + $0x2d0] sm:$0xff] }
 0x149   :  { %457 = vmatpush.msra.mxu2 %v277_v25  ;;  %v3315_v25 = vld [vmem:[%s4678_s4 + $0x328] sm:$0xff] }
 0x14a   :  { %4986 = vst [vmem:[#allocation40_spill] sm:$0xff] %v3315_v25 }
 0x14b   :  { %458 = vmatpush.msra.mxu2 %v257_v9 }
 0x14c   :  { %1928 = vmatmul.msk.f32.vlgmr.msra.gmra.mxu2 %vm439_vm3, %v429_v31  ;;  %v3342_v31 = vld [vmem:[%s4678_s4 + $0x290] sm:$0xff] }
 0x14d   :  { %654 = vmatpush.msrb.mxu2 %v4950_v32  ;;  %v3347_v32 = vld [vmem:[%s4678_s4 + $0x240] sm:$0xff] }
 0x14f   :  { %655 = vmatpush.msrb.mxu2 %v4951_v28  ;;  %v3355_v28 = vld [vmem:[%s4678_s4 + $0x298] sm:$0xff] }
 0x150   :  { %4988 = vst [vmem:[#allocation24_spill] sm:$0xff] %v3355_v28 }
 0x151   :  { %656 = vmatpush.msrb.mxu2 %v4952_v18  ;;  %v3360_v18 = vld [vmem:[%s4678_s4 + $0x248] sm:$0xff] }
 0x153   :  { %657 = vmatpush.msrb.mxu2 %v4953_v33 }
 0x155   :  { %658 = vmatpush.msrb.mxu2 %v4954_v14  ;;  %v3365_v14 = vld [vmem:[%s4678_s4 + $0x1f8] sm:$0xff] }
 0x157   :  { %659 = vmatpush.msrb.mxu2 %v4955_v34  ;;  %v3372_v34 = vld [vmem:[%s4678_s4 + $0x250] sm:$0xff] }
 0x158   :  { %4989 = vst [vmem:[#allocation44_spill] sm:$0xff] %v3372_v34 }
 0x159   :  { %660 = vmatpush.msrb.mxu2 %v4956_v35  ;;  %v3377_v35 = vld [vmem:[%s4678_s4 + $0x200] sm:$0xff] }
 0x15b   :  { %661 = vmatpush.msrb.mxu2 %v4957_v36 }
 0x15d   :  { %662 = vmatpush.msrb.mxu2 %v4958_v37  ;;  %v3382_v37 = vld [vmem:[%s4678_s4 + $0x1b0] sm:$0xff] }
 0x15f   :  { %663 = vmatpush.msrb.mxu2 %v4959_v38  ;;  %v3390_v38 = vld [vmem:[%s4678_s4 + $0x208] sm:$0xff] }
 0x160   :  { %4990 = vst [vmem:[#allocation55_spill] sm:$0xff] %v3390_v38 }
 0x161   :  { %664 = vmatpush.msrb.mxu2 %v4960_v39  ;;  %v3395_v39 = vld [vmem:[%s4678_s4 + $0x1b8] sm:$0xff] }
 0x163   :  { %665 = vmatpush.msrb.mxu2 %v4961_v40 }
 0x165   :  { %666 = vmatpush.msrb.mxu2 %v4962_v41  ;;  %v3400_v41 = vld [vmem:[%s4678_s4 + $0x168] sm:$0xff] }
 0x167   :  { %667 = vmatpush.msrb.mxu2 %v4963_v42  ;;  %v3408_v42 = vld [vmem:[%s4678_s4 + $0x1c0] sm:$0xff] }
 0x168   :  { %4991 = vst [vmem:[#allocation26_spill] sm:$0xff] %v3408_v42 }
 0x169   :  { %668 = vmatpush.msrb.mxu2 %v4964_v43  ;;  %v3413_v43 = vld [vmem:[%s4678_s4 + $0x170] sm:$0xff] }
 0x16b   :  { %669 = vmatpush.msrb.mxu2 %v4965_v44 }
 0x16d   :  { %734 = vmatpush.msra.mxu2 %v4966_v45  ;;  %v3418_v45 = vld [vmem:[%s4678_s4 + $0x120] sm:$0xff] }
 0x16f   :  { %735 = vmatpush.msra.mxu2 %v4967_v46  ;;  %v3426_v46 = vld [vmem:[%s4678_s4 + $0x178] sm:$0xff] }
 0x170   :  { %4992 = vst [vmem:[#allocation46_spill] sm:$0xff] %v3426_v46 }
 0x171   :  { %736 = vmatpush.msra.mxu2 %v4968_v47  ;;  %v3431_v47 = vld [vmem:[%s4678_s4 + $0x128] sm:$0xff] }
 0x173   :  { %737 = vmatpush.msra.mxu2 %v4969_v49  ;;  %v3436_v49 = vld [vmem:[%s4678_s4 + $0xd8] sm:$0xff] }
 0x175   :  { %738 = vmatpush.msra.mxu2 %v4970_v50  ;;  %v3444_v50 = vld [vmem:[%s4678_s4 + $0x130] sm:$0xff] }
 0x176   :  { %4993 = vst [vmem:[#allocation59_spill] sm:$0xff] %v3444_v50 }
 0x177   :  { %739 = vmatpush.msra.mxu2 %v4971_v51  ;;  %v3449_v51 = vld [vmem:[%s4678_s4 + $0xe0] sm:$0xff] }
 0x179   :  { %740 = vmatpush.msra.mxu2 %v4972_v52  ;;  %v3454_v52 = vld [vmem:[%s4678_s4 + $0x90] sm:$0xff] }
 0x17b   :  { %741 = vmatpush.msra.mxu2 %v4973_v53  ;;  %v3463_v53 = vld [vmem:[%s4678_s4 + $0xe8] sm:$0xff] }
 0x17c   :  { %4994 = vst [vmem:[#allocation28_spill] sm:$0xff] %v3463_v53 }
 0x17d   :  { %742 = vmatpush.msra.mxu2 %v4974_v54  ;;  %v3468_v54 = vld [vmem:[%s4678_s4 + $0x98] sm:$0xff] }
 0x17f   :  { %743 = vmatpush.msra.mxu2 %v4975_v55  ;;  %v3473_v55 = vld [vmem:[%s4678_s4 + $0x48] sm:$0xff] }
 0x181   :  { %744 = vmatpush.msra.mxu2 %v4976_v56  ;;  %v3482_v56 = vld [vmem:[%s4678_s4 + $0xa0] sm:$0xff] }
 0x182   :  { %4995 = vst [vmem:[#allocation50_spill] sm:$0xff] %v3482_v56 }
 0x183   :  { %745 = vmatpush.msra.mxu2 %v4977_v57  ;;  %v3487_v57 = vld [vmem:[%s4678_s4 + $0x50] sm:$0xff] }
 0x185   :  { %746 = vmatpush.msra.mxu2 %v4978_v58  ;;  %v3492_v58 = vld [vmem:[%s4678_s4] sm:$0xff] }
 0x187   :  { %747 = vmatpush.msra.mxu2 %v4979_v59  ;;  %v1929_v59 = vld [vmem:[%s4679_s5 + $0x8] sm:$0xff] }
 0x189   :  { %748 = vmatpush.msra.mxu2 %v4980_v60  ;;  %v3504_v60 = vld [vmem:[%s4678_s4 + $0x458] sm:$0xff] }
 0x18b   :  { %749 = vmatpush.msra.mxu2 %v4981_v61  ;;  %v3509_v61 = vld [vmem:[%s4678_s4 + $0x450] sm:$0xff] }
 0x1cf   :  { %v460_v63 = vpop.f32.mrf.mxu2 }
 0x1d0   :  { %v464_v1 = vmul.f32 %v463_v62, %v460_v63  ;;  %v3516_v62 = vld [vmem:[%s4678_s4 + $0x58] sm:$0xff]  ;;  %v3523_v63 = vld [vmem:[%s4678_s4 + $0x410] sm:$0xff] }
 0x1d1   :  { %4996 = vst [vmem:[#allocation63_spill] sm:$0xff] %v3516_v62 }
 0x1d2   :  { %v466_v2 = vadd.f32 %v465_v0, %v464_v1  ;;  %v3528_v0 = vld [vmem:[%s4678_s4 + $0x8] sm:$0xff] }
 0x1d3   :  { %v3534_v1 = vld [vmem:[%s4678_s4 + $0x408] sm:$0xff] }
 0x1d4   :  { %vm467_vm4 = vcmp.gt.f32.partialorder %v466_v2, 0.0  ;;  %v468_v5 = vmul.f32 0.01, %v466_v2 }
 0x1d6   :  { %v469_v9 = vsel %vm467_vm4, %v466_v2, %v468_v5  ;;  %v3540_v2 = vld [vmem:[%s4678_s4 + $0x10] sm:$0xff]  ;;  %v3546_v5 = vld [vmem:[%s4678_s4 + $0x3c8] sm:$0xff] }
 0x1d7   :  { %630 = vmatmul.f32.vlgmr.msra.gmra.mxu3 %v469_v9  ;;  %650 = vmatmul.f32.vlgmr.msrb.gmra.mxu0 %v469_v9  ;;  %4997 = vst [vmem:[#allocation30_spill] sm:$0xff] %v3540_v2 }
 0x1d8   :  { %670 = vmatmul.f32.vlgmr.msrb.gmra.mxu2 %v469_v9  ;;  %690 = vmatmul.f32.vlgmr.msrb.gmra.mxu1 %v469_v9 }
 0x1d9   :  { %774 = vmatpush.msra.mxu3 %v2949_v11 }
 0x1db   :  { %775 = vmatpush.msra.mxu3 %v2966_v8  ;;  %v3225_v8 = vld [vmem:[%s4678_s4 + $0x438] sm:$0xff] }
 0x1dc   :  { %990 = vmatpush.msrb.mxu2 %v3225_v8 }
 0x1dd   :  { %776 = vmatpush.msra.mxu3 %v2973_v22  ;;  %v3230_v22 = vld [vmem:[%s4678_s4 + $0x3f0] sm:$0xff] }
 0x1de   :  { %991 = vmatpush.msrb.mxu2 %v3230_v22 }
 0x1df   :  { %777 = vmatpush.msra.mxu3 %v2981_v48  ;;  %730 = vmatmul.f32.vlgmr.msra.gmra.mxu0 %v469_v9  ;;  %v3236_v48 = vld [vmem:[%s4678_s4 + $0x440] sm:$0xff] }
 0x1e0   :  { %710 = vmatmul.f32.vlgmr.msrb.gmra.mxu3 %v469_v9  ;;  %750 = vmatmul.f32.vlgmr.msra.gmra.mxu2 %v469_v9 }
 0x1e1   :  { %770 = vmatmul.f32.vlgmr.msra.gmra.mxu1 %v469_v9  ;;  %778 = vmatpush.msra.mxu3 %v2989_v3  ;;  %v3241_v3 = vld [vmem:[%s4678_s4 + $0x3a8] sm:$0xff] }
 0x1e2   :  { %1010 = vmatpush.msrb.mxu1 %v3236_v48  ;;  %992 = vmatpush.msrb.mxu2 %v3241_v3 }
 0x1e3   :  { %779 = vmatpush.msra.mxu3 %v3005_v4  ;;  %v3247_v4 = vld [vmem:[%s4678_s4 + $0x448] sm:$0xff] }
 0x1e4   :  { %4982 = vst [vmem:[#allocation20_spill] sm:$0xff] %v3247_v4 }
 0x1e5   :  { %780 = vmatpush.msra.mxu3 %v3014_v6  ;;  %v3254_v6 = vld [vmem:[%s4678_s4 + $0x3f8] sm:$0xff] }
 0x1e6   :  { %1011 = vmatpush.msrb.mxu1 %v3254_v6 }
 0x1e7   :  { %781 = vmatpush.msra.mxu3 %v3022_v7  ;;  %v3259_v7 = vld [vmem:[%s4678_s4 + $0x400] sm:$0xff] }
 0x1e8   :  { %4983 = vst [vmem:[#allocation37_spill] sm:$0xff] %v3259_v7 }
 0x1e9   :  { %782 = vmatpush.msra.mxu3 %v3030_v10  ;;  %v3264_v10 = vld [vmem:[%s4678_s4 + $0x360] sm:$0xff] }
 0x1ea   :  { %993 = vmatpush.msrb.mxu2 %v3264_v10 }
 0x1eb   :  { %783 = vmatpush.msra.mxu3 %v3038_v12  ;;  %v3270_v12 = vld [vmem:[%s4678_s4 + $0x3b0] sm:$0xff] }
 0x1ec   :  { %1012 = vmatpush.msrb.mxu1 %v3270_v12 }
 0x1ed   :  { %784 = vmatpush.msra.mxu3 %v3046_v13  ;;  %v3275_v13 = vld [vmem:[%s4678_s4 + $0x3b8] sm:$0xff] }
 0x1ee   :  { %4984 = vst [vmem:[#allocation41_spill] sm:$0xff] %v3275_v13 }
 0x1ef   :  { %785 = vmatpush.msra.mxu3 %v3054_v16  ;;  %v3282_v16 = vld [vmem:[%s4678_s4 + $0x368] sm:$0xff] }
 0x1f0   :  { %1013 = vmatpush.msrb.mxu1 %v3282_v16 }
 0x1f1   :  { %786 = vmatpush.msra.mxu3 %v3062_v17 }
 0x1f2   :  { %1014 = vmatpush.msrb.mxu1 %v3302_v15 }
 0x1f3   :  { %787 = vmatpush.msra.mxu3 %v3070_v20 }
 0x1f4   :  { %1015 = vmatpush.msrb.mxu1 %v3322_v26 }
 0x1f5   :  { %788 = vmatpush.msra.mxu3 %v3078_v21  ;;  %v3289_v21 = vld [vmem:[%s4678_s4 + $0x318] sm:$0xff] }
 0x1f6   :  { %994 = vmatpush.msrb.mxu2 %v3289_v21  ;;  %1016 = vmatpush.msrb.mxu1 %v3342_v31 }
 0x1f7   :  { %789 = vmatpush.msra.mxu3 %v3086_v24  ;;  %v3295_v24 = vld [vmem:[%s4678_s4 + $0x370] sm:$0xff] }
 0x1f8   :  { %790 = vmatmul.f32.vlgmr.msra.gmra.mxu3 %v469_v9  ;;  %4985 = vst [vmem:[#allocation22_spill] sm:$0xff] %v3295_v24  ;;  %995 = vmatpush.msrb.mxu2 %v3309_v23  ;;  %v3552_v9 = vld [vmem:[%s4678_s4 + $0x460] sm:$0xff] }
 0x1f9   :  { %1030 = vmatpush.msrb.mxu3 %v3247_v4  ;;  %1017 = vmatpush.msrb.mxu1 %v3360_v18  ;;  %v3744_v4 = vld [vmem:[%s4678_s4 + $0x180] sm:$0xff] }
 0x1fa   :  { %996 = vmatpush.msrb.mxu2 %v3329_v29  ;;  %5013 = vst [vmem:[#allocation47_spill] sm:$0xff] %v3744_v4 }
 0x1fb   :  { %1031 = vmatpush.msrb.mxu3 %v3259_v7  ;;  %1018 = vmatpush.msrb.mxu1 %v3377_v35  ;;  %v3732_v7 = vld [vmem:[%s4678_s4 + $0x270] sm:$0xff] }
 0x1fc   :  { %997 = vmatpush.msrb.mxu2 %v3347_v32  ;;  %5011 = vst [vmem:[#allocation79_spill] sm:$0xff] %v3732_v7 }
 0x1fd   :  { %1032 = vmatpush.msrb.mxu3 %v3275_v13  ;;  %1019 = vmatpush.msrb.mxu1 %v3395_v39  ;;  %v3725_v13 = vld [vmem:[%s4678_s4 + $0x1c8] sm:$0xff] }
 0x1fe   :  { %998 = vmatpush.msrb.mxu2 %v3365_v14  ;;  %5010 = vst [vmem:[#allocation42_spill] sm:$0xff] %v3725_v13 }
 0x1ff   :  { %1033 = vmatpush.msrb.mxu3 %v3295_v24  ;;  %1020 = vmatpush.msrb.mxu1 %v3413_v43  ;;  %v3720_v24 = vld [vmem:[%s4678_s4 + $0x268] sm:$0xff] }
 0x200   :  { %999 = vmatpush.msrb.mxu2 %v3382_v37  ;;  %5009 = vst [vmem:[#allocation76_spill] sm:$0xff] %v3720_v24 }
 0x201   :  { %1034 = vmatpush.msrb.mxu3 %v3315_v25  ;;  %1021 = vmatpush.msrb.mxu1 %v3431_v47  ;;  %v3708_v25 = vld [vmem:[%s4678_s4 + $0x2b8] sm:$0xff] }
 0x202   :  { %1000 = vmatpush.msrb.mxu2 %v3400_v41  ;;  %5007 = vst [vmem:[#allocation66_spill] sm:$0xff] %v3708_v25 }
 0x203   :  { %1035 = vmatpush.msrb.mxu3 %v3335_v30  ;;  %1022 = vmatpush.msrb.mxu1 %v3449_v51  ;;  %v3701_v30 = vld [vmem:[%s4678_s4 + $0x210] sm:$0xff] }
 0x204   :  { %1001 = vmatpush.msrb.mxu2 %v3418_v45 }
 0x205   :  { %1036 = vmatpush.msrb.mxu3 %v3355_v28  ;;  %1023 = vmatpush.msrb.mxu1 %v3468_v54  ;;  %v3696_v28 = vld [vmem:[%s4678_s4 + $0x2b0] sm:$0xff] }
 0x206   :  { %1002 = vmatpush.msrb.mxu2 %v3436_v49  ;;  %5006 = vst [vmem:[#allocation73_spill] sm:$0xff] %v3696_v28 }
 0x207   :  { %1037 = vmatpush.msrb.mxu3 %v3372_v34  ;;  %1024 = vmatpush.msrb.mxu1 %v3487_v57  ;;  %v3684_v34 = vld [vmem:[%s4678_s4 + $0x300] sm:$0xff] }
 0x208   :  { %1003 = vmatpush.msrb.mxu2 %v3454_v52  ;;  %5004 = vst [vmem:[#allocation62_spill] sm:$0xff] %v3684_v34 }
 0x209   :  { %1038 = vmatpush.msrb.mxu3 %v3390_v38  ;;  %1025 = vmatpush.msrb.mxu1 %v3528_v0  ;;  %v3677_v38 = vld [vmem:[%s4678_s4 + $0x258] sm:$0xff] }
 0x20a   :  { %1004 = vmatpush.msrb.mxu2 %v3473_v55 }
 0x20b   :  { %1039 = vmatpush.msrb.mxu3 %v3408_v42  ;;  %1090 = vmatpush.msra.mxu1 %v3552_v9  ;;  %v3672_v42 = vld [vmem:[%s4678_s4 + $0x2f8] sm:$0xff] }
 0x20c   :  { %1005 = vmatpush.msrb.mxu2 %v3492_v58 }
 0x20d   :  { %1040 = vmatpush.msrb.mxu3 %v3426_v46  ;;  %v3660_v46 = vld [vmem:[%s4678_s4 + $0x348] sm:$0xff] }
 0x20e   :  { %1070 = vmatpush.msra.mxu2 %v3504_v60  ;;  %5002 = vst [vmem:[#allocation70_spill] sm:$0xff] %v3660_v46 }
 0x20f   :  { %1041 = vmatpush.msrb.mxu3 %v3444_v50  ;;  %v3653_v50 = vld [vmem:[%s4678_s4 + $0x2a0] sm:$0xff] }
 0x210   :  { %1071 = vmatpush.msra.mxu2 %v3523_v63 }
 0x211   :  { %1042 = vmatpush.msrb.mxu3 %v3463_v53  ;;  %v3648_v53 = vld [vmem:[%s4678_s4 + $0x340] sm:$0xff] }
 0x212   :  { %1072 = vmatpush.msra.mxu2 %v3546_v5 }
 0x213   :  { %1043 = vmatpush.msrb.mxu3 %v3482_v56  ;;  %v3636_v56 = vld [vmem:[%s4678_s4 + $0x390] sm:$0xff] }
 0x214   :  { %5001 = vst [vmem:[#allocation58_spill] sm:$0xff] %v3636_v56 }
 0x215   :  { %1044 = vmatpush.msrb.mxu3 %v3516_v62  ;;  %v3629_v62 = vld [vmem:[%s4678_s4 + $0x2e8] sm:$0xff] }
 0x217   :  { %1045 = vmatpush.msrb.mxu3 %v3540_v2  ;;  %v3624_v2 = vld [vmem:[%s4678_s4 + $0x388] sm:$0xff] }
 0x254   :  { %v3324_v27 = vpop.f32.mrf.mxu0 }
 0x255   :  { %v3284_v17 = vpop.f32.mrf.mxu1 }
 0x25a   :  { %v3220_v11 = vpop.f32.mrf.mxu3 }
 0x25b   :  { %v3304_v19 = vpop.f32.mrf.mxu2 }
 0x25c   :  { %v731_v44 = vpop.f32.mrf.mxu0 }
 0x25e   :  { %v771_v36 = vpop.f32.mrf.mxu1 }
 0x263   :  { %v711_v20 = vpop.f32.mrf.mxu3  ;;  %v751_v40 = vpop.f32.mrf.mxu2 }
 0x27b   :  { %v791_v33 = vpop.f32.mrf.mxu3 }
 0x27c   :  { %824 = vmatpush.msrb.mxu0 %v791_v33  ;;  %v3588_v33 = vld [vmem:[%s4678_s4 + $0x420] sm:$0xff] }
 0x27d   :  { %4999 = vst [vmem:[#allocation67_spill] sm:$0xff] %v3588_v33 }
 0x27e   :  { %825 = vmatpush.msrb.mxu0 %v771_v36  ;;  %v3594_v36 = vld [vmem:[%s4678_s4 + $0x338] sm:$0xff] }
 0x280   :  { %826 = vmatpush.msrb.mxu0 %v751_v40  ;;  %v3600_v40 = vld [vmem:[%s4678_s4 + $0x3d0] sm:$0xff] }
 0x282   :  { %827 = vmatpush.msrb.mxu0 %v731_v44  ;;  %v3605_v44 = vld [vmem:[%s4678_s4 + $0x330] sm:$0xff] }
 0x284   :  { %828 = vmatpush.msrb.mxu0 %v711_v20  ;;  %v3570_v20 = vld [vmem:[%s4678_s4 + $0x380] sm:$0xff] }
 0x285   :  { %1073 = vmatpush.msra.mxu2 %v3570_v20 }
 0x286   :  { %829 = vmatpush.msrb.mxu0 %v3284_v17  ;;  %v3564_v17 = vld [vmem:[%s4678_s4 + $0x468] sm:$0xff] }
 0x287   :  { %4998 = vst [vmem:[#allocation54_spill] sm:$0xff] %v3564_v17  ;;  %1110 = vmatpush.msra.mxu3 %v3564_v17  ;;  %v3618_v17 = vld [vmem:[%s4678_s4 + $0x2f0] sm:$0xff]  ;;  %1074 = vmatpush.msra.mxu2 %v3594_v36 }
 0x288   :  { %830 = vmatpush.msrb.mxu0 %v3304_v19  ;;  %v3576_v19 = vld [vmem:[%s4678_s4 + $0x418] sm:$0xff] }
 0x289   :  { %1091 = vmatpush.msra.mxu1 %v3576_v19  ;;  %1111 = vmatpush.msra.mxu3 %v3588_v33  ;;  %v3642_v33 = vld [vmem:[%s4678_s4 + $0x2a8] sm:$0xff] }
 0x28a   :  { %831 = vmatpush.msrb.mxu0 %v3324_v27  ;;  %v3581_v27 = vld [vmem:[%s4678_s4 + $0x378] sm:$0xff]  ;;  %1075 = vmatpush.msra.mxu2 %v3618_v17 }
 0x28b   :  { %1092 = vmatpush.msra.mxu1 %v3600_v40 }
 0x28c   :  { %832 = vmatpush.msrb.mxu0 %v3220_v11  ;;  %v3557_v11 = vld [vmem:[%s4678_s4 + $0x3c0] sm:$0xff]  ;;  %1076 = vmatpush.msra.mxu2 %v3642_v33 }
 0x28d   :  { %1930 = vmatmul.msk.f32.vlgmr.msrb.gmra.mxu0 %vm439_vm3, %v1929_v59  ;;  %v3612_v59 = vld [vmem:[%s4678_s4 + $0x3d8] sm:$0xff]  ;;  %1093 = vmatpush.msra.mxu1 %v3624_v2 }
 0x28e   :  { %1050 = vmatpush.msra.mxu0 %v3509_v61  ;;  %5000 = vst [vmem:[#allocation32_spill] sm:$0xff] %v3612_v59  ;;  %1112 = vmatpush.msra.mxu3 %v3612_v59  ;;  %v3666_v59 = vld [vmem:[%s4678_s4 + $0x260] sm:$0xff] }
 0x28f   :  { %5003 = vst [vmem:[#allocation34_spill] sm:$0xff] %v3666_v59  ;;  %1094 = vmatpush.msra.mxu1 %v3648_v53  ;;  %1077 = vmatpush.msra.mxu2 %v3666_v59 }
 0x290   :  { %1051 = vmatpush.msra.mxu0 %v3534_v1  ;;  %1113 = vmatpush.msra.mxu3 %v3636_v56  ;;  %v3690_v56 = vld [vmem:[%s4678_s4 + $0x218] sm:$0xff] }
 0x291   :  { %5005 = vst [vmem:[#allocation35_spill] sm:$0xff] %v3690_v56  ;;  %1095 = vmatpush.msra.mxu1 %v3672_v42  ;;  %1078 = vmatpush.msra.mxu2 %v3690_v56  ;;  %v3752_v56 = vld [vmem:[%s4678_s4 + $0x140] sm:$0xff] }
 0x292   :  { %1052 = vmatpush.msra.mxu0 %v3557_v11  ;;  %1114 = vmatpush.msra.mxu3 %v3660_v46  ;;  %v3714_v46 = vld [vmem:[%s4678_s4 + $0x1d0] sm:$0xff]  ;;  %5014 = vst [vmem:[#allocation48_spill] sm:$0xff] %v3752_v56 }
 0x293   :  { %5008 = vst [vmem:[#allocation38_spill] sm:$0xff] %v3714_v46  ;;  %1096 = vmatpush.msra.mxu1 %v3696_v28  ;;  %1079 = vmatpush.msra.mxu2 %v3714_v46  ;;  %v3765_v46 = vld [vmem:[%s4678_s4 + $0xf0] sm:$0xff] }
 0x294   :  { %1053 = vmatpush.msra.mxu0 %v3581_v27  ;;  %1115 = vmatpush.msra.mxu3 %v3684_v34  ;;  %v3738_v34 = vld [vmem:[%s4678_s4 + $0x188] sm:$0xff]  ;;  %5016 = vst [vmem:[#allocation53_spill] sm:$0xff] %v3765_v46 }
 0x295   :  { %5012 = vst [vmem:[#allocation45_spill] sm:$0xff] %v3738_v34  ;;  %1097 = vmatpush.msra.mxu1 %v3720_v24  ;;  %1080 = vmatpush.msra.mxu2 %v3738_v34  ;;  %v3778_v34 = vld [vmem:[%s4678_s4 + $0x60] sm:$0xff] }
 0x296   :  { %1054 = vmatpush.msra.mxu0 %v3605_v44  ;;  %1116 = vmatpush.msra.mxu3 %v3708_v25  ;;  %v3758_v25 = vld [vmem:[%s4678_s4 + $0x138] sm:$0xff]  ;;  %5018 = vst [vmem:[#allocation61_spill] sm:$0xff] %v3778_v34 }
 0x297   :  { %5015 = vst [vmem:[#allocation49_spill] sm:$0xff] %v3758_v25  ;;  %1081 = vmatpush.msra.mxu2 %v3752_v56  ;;  %v3784_v56 = vld [vmem:[%s4678_s4 + $0x18] sm:$0xff] }
 0x298   :  { %1055 = vmatpush.msra.mxu0 %v3629_v62  ;;  %1117 = vmatpush.msra.mxu3 %v3732_v7  ;;  %v3772_v7 = vld [vmem:[%s4678_s4 + $0xa8] sm:$0xff]  ;;  %5019 = vst [vmem:[#allocation65_spill] sm:$0xff] %v3784_v56 }
 0x299   :  { %5017 = vst [vmem:[#allocation57_spill] sm:$0xff] %v3772_v7 }
 0x29a   :  { %1056 = vmatpush.msra.mxu0 %v3653_v50 }
 0x29c   :  { %1057 = vmatpush.msra.mxu0 %v3677_v38 }
 0x29e   :  { %1058 = vmatpush.msra.mxu0 %v3701_v30 }
 0x2a0   :  { %1059 = vmatpush.msra.mxu0 %v3725_v13 }
 0x2a2   :  { %1060 = vmatpush.msra.mxu0 %v3744_v4  ;;  %v3963_v4 = vld [vmem:[%s4678_s4 + $0xc8] sm:$0xff] }
 0x2a3   :  { %5049 = vst [vmem:[#allocation56_spill] sm:$0xff] %v3963_v4 }
 0x2a4   :  { %1061 = vmatpush.msra.mxu0 %v3758_v25  ;;  %v3790_v25 = vld [vmem:[%s4678_s4 + $0x470] sm:$0xff] }
 0x2a5   :  { %5020 = vst [vmem:[#allocation69_spill] sm:$0xff] %v3790_v25 }
 0x2a6   :  { %1062 = vmatpush.msra.mxu0 %v3765_v46  ;;  %v3796_v46 = vld [vmem:[%s4678_s4 + $0x428] sm:$0xff] }
 0x2a7   :  { %5021 = vst [vmem:[#allocation72_spill] sm:$0xff] %v3796_v46 }
 0x2a8   :  { %1063 = vmatpush.msra.mxu0 %v3772_v7  ;;  %v3802_v7 = vld [vmem:[%s4678_s4 + $0x3e0] sm:$0xff] }
 0x2a9   :  { %5022 = vst [vmem:[#allocation75_spill] sm:$0xff] %v3802_v7 }
 0x2aa   :  { %1064 = vmatpush.msra.mxu0 %v3778_v34  ;;  %v3808_v34 = vld [vmem:[%s4678_s4 + $0x398] sm:$0xff] }
 0x2ab   :  { %5023 = vst [vmem:[#allocation78_spill] sm:$0xff] %v3808_v34 }
 0x2ac   :  { %1065 = vmatpush.msra.mxu0 %v3784_v56  ;;  %v3814_v56 = vld [vmem:[%s4678_s4 + $0x350] sm:$0xff] }
 0x2ad   :  { %5024 = vst [vmem:[#allocation81_spill] sm:$0xff] %v3814_v56 }
 0x2ae   :  { %1130 = vmatpush.msrb.mxu0 %v3790_v25  ;;  %v3820_v25 = vld [vmem:[%s4678_s4 + $0x308] sm:$0xff] }
 0x2af   :  { %5025 = vst [vmem:[#allocation7_spill] sm:$0xff] %v3820_v25 }
 0x2b0   :  { %1131 = vmatpush.msrb.mxu0 %v3796_v46  ;;  %v3826_v46 = vld [vmem:[%s4678_s4 + $0x2c0] sm:$0xff] }
 0x2b1   :  { %5026 = vst [vmem:[#allocation8_spill] sm:$0xff] %v3826_v46 }
 0x2b2   :  { %1132 = vmatpush.msrb.mxu0 %v3802_v7  ;;  %v3832_v7 = vld [vmem:[%s4678_s4 + $0x278] sm:$0xff] }
 0x2b3   :  { %5027 = vst [vmem:[#allocation9_spill] sm:$0xff] %v3832_v7 }
 0x2b4   :  { %1133 = vmatpush.msrb.mxu0 %v3808_v34  ;;  %v3844_v34 = vld [vmem:[%s4678_s4 + $0x220] sm:$0xff] }
 0x2b5   :  { %5029 = vst [vmem:[#allocation11_spill] sm:$0xff] %v3844_v34  ;;  %1098 = vmatpush.msra.mxu1 %v3844_v34  ;;  %v3873_v34 = vld [vmem:[%s4678_s4 + $0x1e0] sm:$0xff] }
 0x2b6   :  { %1134 = vmatpush.msrb.mxu0 %v3814_v56  ;;  %v3839_v56 = vld [vmem:[%s4678_s4 + $0xf8] sm:$0xff]  ;;  %5034 = vst [vmem:[#allocation16_spill] sm:$0xff] %v3873_v34 }
 0x2b7   :  { %5028 = vst [vmem:[#allocation10_spill] sm:$0xff] %v3839_v56  ;;  %1082 = vmatpush.msra.mxu2 %v3839_v56  ;;  %v3868_v56 = vld [vmem:[%s4678_s4 + $0x1d8] sm:$0xff] }
 0x2b8   :  { %1135 = vmatpush.msrb.mxu0 %v3820_v25  ;;  %v3863_v25 = vld [vmem:[%s4678_s4 + $0xb0] sm:$0xff]  ;;  %5033 = vst [vmem:[#allocation15_spill] sm:$0xff] %v3868_v56  ;;  %1099 = vmatpush.msra.mxu1 %v3868_v56  ;;  %v3897_v56 = vld [vmem:[%s4678_s4 + $0x198] sm:$0xff] }
 0x2b9   :  { %5032 = vst [vmem:[#allocation14_spill] sm:$0xff] %v3863_v25  ;;  %1083 = vmatpush.msra.mxu2 %v3863_v25  ;;  %v3892_v25 = vld [vmem:[%s4678_s4 + $0x190] sm:$0xff] }
 0x2ba   :  { %1136 = vmatpush.msrb.mxu0 %v3826_v46  ;;  %v3851_v46 = vld [vmem:[%s4678_s4 + $0x228] sm:$0xff]  ;;  %5037 = vst [vmem:[#allocation19_spill] sm:$0xff] %v3892_v25  ;;  %1100 = vmatpush.msra.mxu1 %v3892_v25  ;;  %v3921_v25 = vld [vmem:[%s4678_s4 + $0x150] sm:$0xff] }
 0x2bb   :  { %5030 = vst [vmem:[#allocation12_spill] sm:$0xff] %v3851_v46  ;;  %1118 = vmatpush.msra.mxu3 %v3851_v46  ;;  %v3880_v46 = vld [vmem:[%s4678_s4 + $0x1e8] sm:$0xff] }
 0x2bc   :  { %1137 = vmatpush.msrb.mxu0 %v3832_v7  ;;  %v3856_v7 = vld [vmem:[%s4678_s4 + $0x230] sm:$0xff]  ;;  %5035 = vst [vmem:[#allocation17_spill] sm:$0xff] %v3880_v46 }
 0x2bd   :  { %5031 = vst [vmem:[#allocation13_spill] sm:$0xff] %v3856_v7  ;;  %1119 = vmatpush.msra.mxu3 %v3873_v34  ;;  %v3904_v34 = vld [vmem:[%s4678_s4 + $0x1a0] sm:$0xff] }
 0x2be   :  { %1138 = vmatpush.msrb.mxu0 %v3856_v7  ;;  %v3887_v7 = vld [vmem:[%s4678_s4 + $0x68] sm:$0xff]  ;;  %5038 = vst [vmem:[#allocation21_spill] sm:$0xff] %v3897_v56 }
 0x2bf   :  { %5036 = vst [vmem:[#allocation18_spill] sm:$0xff] %v3887_v7  ;;  %1084 = vmatpush.msra.mxu2 %v3887_v7  ;;  %1120 = vmatpush.msra.mxu3 %v3897_v56  ;;  %v3916_v7 = vld [vmem:[%s4678_s4 + $0x148] sm:$0xff]  ;;  %v3928_v56 = vld [vmem:[%s4678_s4 + $0x158] sm:$0xff] }
 0x2c0   :  { %1139 = vmatpush.msrb.mxu0 %v3880_v46  ;;  %5039 = vst [vmem:[#allocation23_spill] sm:$0xff] %v3904_v34  ;;  %v3911_v46 = vld [vmem:[%s4678_s4 + $0x20] sm:$0xff]  ;;  %1101 = vmatpush.msra.mxu1 %v3916_v7 }
 0x2c1   :  { %5040 = vst [vmem:[#allocation25_spill] sm:$0xff] %v3911_v46  ;;  %1085 = vmatpush.msra.mxu2 %v3911_v46  ;;  %1121 = vmatpush.msra.mxu3 %v3921_v25  ;;  %v3940_v46 = vld [vmem:[%s4678_s4 + $0x108] sm:$0xff] }
 0x2c2   :  { %1140 = vmatpush.msrb.mxu0 %v3904_v34  ;;  %5041 = vst [vmem:[#allocation27_spill] sm:$0xff] %v3916_v7  ;;  %v3935_v34 = vld [vmem:[%s4678_s4 + $0x100] sm:$0xff]  ;;  %v3945_v7 = vld [vmem:[%s4678_s4 + $0x110] sm:$0xff] }
 0x2c3   :  { %5042 = vst [vmem:[#allocation29_spill] sm:$0xff] %v3921_v25  ;;  %1102 = vmatpush.msra.mxu1 %v3935_v34  ;;  %1122 = vmatpush.msra.mxu3 %v3940_v46  ;;  %v3953_v25 = vld [vmem:[%s4678_s4 + $0xb8] sm:$0xff] }
 0x2c4   :  { %5043 = vst [vmem:[#allocation31_spill] sm:$0xff] %v3928_v56  ;;  %1141 = vmatpush.msrb.mxu0 %v3928_v56  ;;  %v3958_v56 = vld [vmem:[%s4678_s4 + $0xc0] sm:$0xff] }
 0x2c5   :  { %5044 = vst [vmem:[#allocation33_spill] sm:$0xff] %v3935_v34  ;;  %1103 = vmatpush.msra.mxu1 %v3953_v25  ;;  %1123 = vmatpush.msra.mxu3 %v3958_v56  ;;  %v3981_v34 = vld [vmem:[%s4678_s4 + $0x80] sm:$0xff] }
 0x2c6   :  { %5045 = vst [vmem:[#allocation36_spill] sm:$0xff] %v3940_v46  ;;  %1142 = vmatpush.msrb.mxu0 %v3945_v7  ;;  %v3971_v46 = vld [vmem:[%s4678_s4 + $0x70] sm:$0xff] }
 0x2c7   :  { %5046 = vst [vmem:[#allocation39_spill] sm:$0xff] %v3945_v7  ;;  %v3976_v7 = vld [vmem:[%s4678_s4 + $0x78] sm:$0xff]  ;;  %1104 = vmatpush.msra.mxu1 %v3971_v46 }
 0x2c8   :  { %5047 = vst [vmem:[#allocation43_spill] sm:$0xff] %v3953_v25  ;;  %1143 = vmatpush.msrb.mxu0 %v3963_v4  ;;  %1124 = vmatpush.msra.mxu3 %v3976_v7  ;;  %v3994_v4 = vld [vmem:[%s4678_s4 + $0x30] sm:$0xff]  ;;  %v3999_v25 = vld [vmem:[%s4678_s4 + $0x38] sm:$0xff] }
 0x2c9   :  { %5048 = vst [vmem:[#allocation52_spill] sm:$0xff] %v3958_v56  ;;  %v3989_v56 = vld [vmem:[%s4678_s4 + $0x28] sm:$0xff] }
 0x2ca   :  { %5050 = vst [vmem:[#allocation60_spill] sm:$0xff] %v3971_v46  ;;  %1144 = vmatpush.msrb.mxu0 %v3981_v34  ;;  %1105 = vmatpush.msra.mxu1 %v3989_v56  ;;  %v841_v46 = vld [vmem:[#allocation4 + $0x8] sm:$0xff] }
 0x2cb   :  { %5051 = vst [vmem:[#allocation64_spill] sm:$0xff] %v3976_v7  ;;  %1125 = vmatpush.msra.mxu3 %v3994_v4  ;;  %v1931_v7 = vld [vmem:[%s4680_s6 + $0x8] sm:$0xff] }
 0x2cc   :  { %5052 = vst [vmem:[#allocation68_spill] sm:$0xff] %v3981_v34  ;;  %1145 = vmatpush.msrb.mxu0 %v3999_v25 }
 0x2cd   :  { %5053 = vst [vmem:[#allocation71_spill] sm:$0xff] %v3989_v56  ;;  %v4012_v56 = vld [vmem:[%s4678_s4 + $0x478] sm:$0xff] }
 0x30a   :  { %v834_v34 = vpop.f32.mrf.mxu0 }
 0x30b   :  { %v839_v24 = vmul.f32 %v1931_v7, %v834_v34  ;;  %v4021_v7 = vld [vmem:[%s4678_s4 + $0x430] sm:$0xff]  ;;  %v5060_v34 = vld [vmem:[#allocation38_spill] sm:$0xff] }
 0x30d   :  { %v842_v13 = vadd.f32 %v841_v46, %v839_v24  ;;  %v4036_v24 = vld [vmem:[%s4678_s4 + $0x3a0] sm:$0xff]  ;;  %v5070_v46 = vld [vmem:[#allocation27_spill] sm:$0xff] }
 0x30f   :  { %vm843_vm5 = vcmp.gt.f32.partialorder %v842_v13, 0.0  ;;  %v844_v28 = vmul.f32 0.01, %v842_v13 }
 0x311   :  { %v4007_v59 = vsel %vm843_vm5, %v842_v13, %v844_v28  ;;  %v4028_v13 = vld [vmem:[%s4678_s4 + $0x3e8] sm:$0xff] }
 0x312   :  { %1006 = vmatmul.f32.vlgmr.msrb.gmra.mxu2 %v4007_v59  ;;  %1026 = vmatmul.f32.vlgmr.msrb.gmra.mxu1 %v4007_v59  ;;  %v5057_v28 = vld [vmem:[#allocation35_spill] sm:$0xff] }
 0x313   :  { %1046 = vmatmul.f32.vlgmr.msrb.gmra.mxu3 %v4007_v59  ;;  %1066 = vmatmul.f32.vlgmr.msra.gmra.mxu0 %v4007_v59 }
 0x314   :  { %1150 = vmatpush.msrb.mxu2 %v4012_v56  ;;  %1366 = vmatpush.msrb.mxu3 %v3225_v8  ;;  %v4044_v8 = vld [vmem:[%s4678_s4 + $0x358] sm:$0xff] }
 0x315   :  { %1386 = vmatpush.msra.mxu0 %v3236_v48  ;;  %v4061_v48 = vld [vmem:[%s4678_s4 + $0x2c8] sm:$0xff] }
 0x316   :  { %1151 = vmatpush.msrb.mxu2 %v4021_v7  ;;  %1367 = vmatpush.msrb.mxu3 %v3230_v22  ;;  %v4054_v22 = vld [vmem:[%s4678_s4 + $0x310] sm:$0xff] }
 0x317   :  { %1387 = vmatpush.msra.mxu0 %v3254_v6  ;;  %v4077_v6 = vld [vmem:[%s4678_s4 + $0x238] sm:$0xff] }
 0x318   :  { %1152 = vmatpush.msrb.mxu2 %v4028_v13  ;;  %1368 = vmatpush.msrb.mxu3 %v3241_v3  ;;  %v4069_v3 = vld [vmem:[%s4678_s4 + $0x280] sm:$0xff] }
 0x319   :  { %1388 = vmatpush.msra.mxu0 %v3270_v12  ;;  %v4093_v12 = vld [vmem:[%s4678_s4 + $0x1a8] sm:$0xff] }
 0x31a   :  { %1153 = vmatpush.msrb.mxu2 %v4036_v24  ;;  %1106 = vmatmul.f32.vlgmr.msra.gmra.mxu1 %v4007_v59 }
 0x31b   :  { %1086 = vmatmul.f32.vlgmr.msra.gmra.mxu2 %v4007_v59  ;;  %1126 = vmatmul.f32.vlgmr.msra.gmra.mxu3 %v4007_v59 }
 0x31c   :  { %1146 = vmatmul.f32.vlgmr.msrb.gmra.mxu0 %v4007_v59  ;;  %1154 = vmatpush.msrb.mxu2 %v4044_v8 }
 0x31d   :  { %1369 = vmatpush.msrb.mxu3 %v3264_v10  ;;  %1389 = vmatpush.msra.mxu0 %v3282_v16  ;;  %v4085_v10 = vld [vmem:[%s4678_s4 + $0x1f0] sm:$0xff]  ;;  %v4101_v16 = vld [vmem:[%s4678_s4 + $0x160] sm:$0xff] }
 0x31e   :  { %1155 = vmatpush.msrb.mxu2 %v4054_v22 }
 0x31f   :  { %1370 = vmatpush.msrb.mxu3 %v3289_v21  ;;  %1390 = vmatpush.msra.mxu0 %v3302_v15  ;;  %v4109_v21 = vld [vmem:[%s4678_s4 + $0x118] sm:$0xff]  ;;  %v4117_v15 = vld [vmem:[%s4678_s4 + $0xd0] sm:$0xff] }
 0x320   :  { %1156 = vmatpush.msrb.mxu2 %v4061_v48 }
 0x321   :  { %1371 = vmatpush.msrb.mxu3 %v3309_v23  ;;  %1391 = vmatpush.msra.mxu0 %v3322_v26  ;;  %v4125_v23 = vld [vmem:[%s4678_s4 + $0x88] sm:$0xff]  ;;  %v4133_v26 = vld [vmem:[%s4678_s4 + $0x40] sm:$0xff] }
 0x322   :  { %1157 = vmatpush.msrb.mxu2 %v4069_v3 }
 0x323   :  { %1372 = vmatpush.msrb.mxu3 %v3329_v29  ;;  %1392 = vmatpush.msra.mxu0 %v3342_v31  ;;  %v5054_v29 = vld [vmem:[#allocation34_spill] sm:$0xff]  ;;  %v5055_v31 = vld [vmem:[#allocation73_spill] sm:$0xff] }
 0x324   :  { %1158 = vmatpush.msrb.mxu2 %v4077_v6 }
 0x325   :  { %1373 = vmatpush.msrb.mxu3 %v3347_v32  ;;  %1393 = vmatpush.msra.mxu0 %v3360_v18  ;;  %v5056_v32 = vld [vmem:[#allocation42_spill] sm:$0xff]  ;;  %v5058_v18 = vld [vmem:[#allocation76_spill] sm:$0xff] }
 0x326   :  { %1159 = vmatpush.msrb.mxu2 %v4085_v10 }
 0x327   :  { %1374 = vmatpush.msrb.mxu3 %v3365_v14  ;;  %1394 = vmatpush.msra.mxu0 %v3377_v35  ;;  %v5059_v14 = vld [vmem:[#allocation47_spill] sm:$0xff] }
 0x328   :  { %1160 = vmatpush.msrb.mxu2 %v4093_v12  ;;  %v5061_v35 = vld [vmem:[#allocation11_spill] sm:$0xff] }
 0x329   :  { %1375 = vmatpush.msrb.mxu3 %v3382_v37  ;;  %1395 = vmatpush.msra.mxu0 %v3395_v39  ;;  %v5062_v37 = vld [vmem:[#allocation49_spill] sm:$0xff] }
 0x32a   :  { %1161 = vmatpush.msrb.mxu2 %v4101_v16  ;;  %v5065_v39 = vld [vmem:[#allocation53_spill] sm:$0xff] }
 0x32b   :  { %1376 = vmatpush.msrb.mxu3 %v3400_v41  ;;  %1396 = vmatpush.msra.mxu0 %v3413_v43  ;;  %v5066_v41 = vld [vmem:[#allocation48_spill] sm:$0xff]  ;;  %v5068_v43 = vld [vmem:[#allocation57_spill] sm:$0xff] }
 0x32c   :  { %1162 = vmatpush.msrb.mxu2 %v4109_v21 }
 0x32d   :  { %1377 = vmatpush.msrb.mxu3 %v3418_v45  ;;  %1397 = vmatpush.msra.mxu0 %v3431_v47  ;;  %v5069_v45 = vld [vmem:[#allocation10_spill] sm:$0xff]  ;;  %v5071_v47 = vld [vmem:[#allocation61_spill] sm:$0xff] }
 0x32e   :  { %1163 = vmatpush.msrb.mxu2 %v4117_v15 }
 0x32f   :  { %1378 = vmatpush.msrb.mxu3 %v3436_v49  ;;  %1398 = vmatpush.msra.mxu0 %v3449_v51  ;;  %v5072_v49 = vld [vmem:[#allocation14_spill] sm:$0xff]  ;;  %v5074_v51 = vld [vmem:[#allocation65_spill] sm:$0xff] }
 0x330   :  { %1164 = vmatpush.msrb.mxu2 %v4125_v23 }
 0x331   :  { %1379 = vmatpush.msrb.mxu3 %v3454_v52  ;;  %1399 = vmatpush.msra.mxu0 %v3468_v54  ;;  %v5075_v52 = vld [vmem:[#allocation18_spill] sm:$0xff]  ;;  %v5077_v54 = vld [vmem:[#allocation43_spill] sm:$0xff] }
 0x332   :  { %1165 = vmatpush.msrb.mxu2 %v4133_v26 }
 0x333   :  { %1166 = vmatmul.f32.vlgmr.msrb.gmra.mxu2 %v4007_v59  ;;  %1380 = vmatpush.msrb.mxu3 %v3473_v55  ;;  %v5078_v55 = vld [vmem:[#allocation25_spill] sm:$0xff] }
 0x334   :  { %1426 = vmatpush.msra.mxu2 %v3509_v61  ;;  %1400 = vmatpush.msra.mxu0 %v3487_v57  ;;  %v5079_v57 = vld [vmem:[#allocation72_spill] sm:$0xff]  ;;  %v5082_v61 = vld [vmem:[#allocation71_spill] sm:$0xff] }
 0x335   :  { %1381 = vmatpush.msrb.mxu3 %v3492_v58  ;;  %v5080_v58 = vld [vmem:[#allocation60_spill] sm:$0xff] }
 0x336   :  { %1427 = vmatpush.msra.mxu2 %v3534_v1  ;;  %1401 = vmatpush.msra.mxu0 %v3528_v0  ;;  %v5085_v0 = vld [vmem:[#allocation7_spill] sm:$0xff]  ;;  %v5086_v1 = vld [vmem:[#allocation8_spill] sm:$0xff] }
 0x337   :  { %1446 = vmatpush.msra.mxu3 %v3504_v60  ;;  %v5081_v60 = vld [vmem:[#allocation75_spill] sm:$0xff] }
 0x338   :  { %1428 = vmatpush.msra.mxu2 %v3557_v11  ;;  %1466 = vmatpush.msrb.mxu0 %v3552_v9  ;;  %v5089_v9 = vld [vmem:[#allocation17_spill] sm:$0xff]  ;;  %v5090_v11 = vld [vmem:[#allocation23_spill] sm:$0xff] }
 0x339   :  { %1447 = vmatpush.msra.mxu3 %v3523_v63  ;;  %v5084_v63 = vld [vmem:[#allocation81_spill] sm:$0xff] }
 0x33a   :  { %1429 = vmatpush.msra.mxu2 %v3581_v27  ;;  %1467 = vmatpush.msrb.mxu0 %v3576_v19  ;;  %v5093_v19 = vld [vmem:[#allocation56_spill] sm:$0xff] }
 0x33b   :  { %1448 = vmatpush.msra.mxu3 %v3546_v5  ;;  %v5088_v5 = vld [vmem:[#allocation13_spill] sm:$0xff]  ;;  %v5094_v27 = vld [vmem:[#allocation68_spill] sm:$0xff] }
 0x33c   :  { %1430 = vmatpush.msra.mxu2 %v3605_v44  ;;  %1468 = vmatpush.msrb.mxu0 %v3600_v40 }
 0x33d   :  { %1449 = vmatpush.msra.mxu3 %v3570_v20  ;;  %v5092_v20 = vld [vmem:[#allocation39_spill] sm:$0xff] }
 0x33e   :  { %1431 = vmatpush.msra.mxu2 %v3629_v62  ;;  %1469 = vmatpush.msrb.mxu0 %v3624_v2  ;;  %v5083_v62 = vld [vmem:[#allocation78_spill] sm:$0xff]  ;;  %v5087_v2 = vld [vmem:[#allocation9_spill] sm:$0xff] }
 0x33f   :  { %1450 = vmatpush.msra.mxu3 %v3594_v36 }
 0x340   :  { %1432 = vmatpush.msra.mxu2 %v3653_v50  ;;  %1470 = vmatpush.msrb.mxu0 %v3648_v53  ;;  %v5073_v50 = vld [vmem:[#allocation33_spill] sm:$0xff] }
 0x341   :  { %1451 = vmatpush.msra.mxu3 %v3618_v17  ;;  %v5076_v53 = vld [vmem:[#allocation69_spill] sm:$0xff]  ;;  %v5091_v17 = vld [vmem:[#allocation31_spill] sm:$0xff] }
 0x342   :  { %1433 = vmatpush.msra.mxu2 %v3677_v38  ;;  %1471 = vmatpush.msrb.mxu0 %v3672_v42  ;;  %v5063_v38 = vld [vmem:[#allocation45_spill] sm:$0xff]  ;;  %v5067_v42 = vld [vmem:[#allocation19_spill] sm:$0xff] }
 0x343   :  { %1452 = vmatpush.msra.mxu3 %v3642_v33 }
 0x344   :  { %1434 = vmatpush.msra.mxu2 %v3701_v30  ;;  %1472 = vmatpush.msrb.mxu0 %v5055_v31  ;;  %v5064_v30 = vld [vmem:[#allocation15_spill] sm:$0xff] }
 0x345   :  { %1453 = vmatpush.msra.mxu3 %v5054_v29 }
 0x346   :  { %1435 = vmatpush.msra.mxu2 %v5056_v32  ;;  %1473 = vmatpush.msrb.mxu0 %v5058_v18  ;;  %v5095_v18 = vld [vmem:[#allocation20_spill] sm:$0xff] }
 0x347   :  { %1454 = vmatpush.msra.mxu3 %v5057_v28 }
 0x348   :  { %1436 = vmatpush.msra.mxu2 %v5059_v14  ;;  %1474 = vmatpush.msrb.mxu0 %v5061_v35  ;;  %v5096_v14 = vld [vmem:[#allocation37_spill] sm:$0xff]  ;;  %v5098_v35 = vld [vmem:[#allocation22_spill] sm:$0xff] }
 0x349   :  { %1455 = vmatpush.msra.mxu3 %v5060_v34  ;;  %v5097_v34 = vld [vmem:[#allocation41_spill] sm:$0xff] }
 0x34a   :  { %1437 = vmatpush.msra.mxu2 %v5062_v37  ;;  %1475 = vmatpush.msrb.mxu0 %v5064_v30  ;;  %v5099_v37 = vld [vmem:[#allocation40_spill] sm:$0xff] }
 0x34b   :  { %1456 = vmatpush.msra.mxu3 %v5063_v38  ;;  %v5100_v38 = vld [vmem:[#allocation51_spill] sm:$0xff]  ;;  %v5101_v30 = vld [vmem:[#allocation24_spill] sm:$0xff] }
 0x34c   :  { %1438 = vmatpush.msra.mxu2 %v5065_v39  ;;  %1476 = vmatpush.msrb.mxu0 %v5067_v42  ;;  %v5102_v39 = vld [vmem:[#allocation44_spill] sm:$0xff]  ;;  %v5104_v42 = vld [vmem:[#allocation26_spill] sm:$0xff] }
 0x34d   :  { %1457 = vmatpush.msra.mxu3 %v5066_v41  ;;  %v5103_v41 = vld [vmem:[#allocation55_spill] sm:$0xff] }
 0x34e   :  { %1439 = vmatpush.msra.mxu2 %v5068_v43  ;;  %1477 = vmatpush.msrb.mxu0 %v5070_v46  ;;  %v5105_v43 = vld [vmem:[#allocation46_spill] sm:$0xff]  ;;  %v5107_v46 = vld [vmem:[#allocation28_spill] sm:$0xff] }
 0x34f   :  { %1458 = vmatpush.msra.mxu3 %v5069_v45  ;;  %v5106_v45 = vld [vmem:[#allocation59_spill] sm:$0xff] }
 0x350   :  { %1440 = vmatpush.msra.mxu2 %v5071_v47  ;;  %1478 = vmatpush.msrb.mxu0 %v5073_v50  ;;  %v5108_v47 = vld [vmem:[#allocation50_spill] sm:$0xff] }
 0x351   :  { %1459 = vmatpush.msra.mxu3 %v5072_v49  ;;  %v5109_v49 = vld [vmem:[#allocation63_spill] sm:$0xff]  ;;  %v5110_v50 = vld [vmem:[#allocation30_spill] sm:$0xff] }
 0x352   :  { %1441 = vmatpush.msra.mxu2 %v5074_v51  ;;  %1479 = vmatpush.msrb.mxu0 %v5077_v54  ;;  %v5111_v51 = vld [vmem:[#allocation54_spill] sm:$0xff] }
 0x353   :  { %1460 = vmatpush.msra.mxu3 %v5075_v52  ;;  %v5112_v52 = vld [vmem:[#allocation67_spill] sm:$0xff]  ;;  %v5114_v54 = vld [vmem:[#allocation58_spill] sm:$0xff] }
 0x354   :  { %1506 = vmatpush.msrb.mxu2 %v5076_v53  ;;  %1480 = vmatpush.msrb.mxu0 %v5080_v58  ;;  %v5113_v53 = vld [vmem:[#allocation32_spill] sm:$0xff]  ;;  %v5117_v58 = vld [vmem:[#allocation66_spill] sm:$0xff] }
 0x355   :  { %1461 = vmatpush.msra.mxu3 %v5078_v55  ;;  %v5115_v55 = vld [vmem:[#allocation70_spill] sm:$0xff] }
 0x356   :  { %1507 = vmatpush.msrb.mxu2 %v5079_v57  ;;  %1481 = vmatpush.msrb.mxu0 %v5082_v61  ;;  %v5116_v57 = vld [vmem:[#allocation62_spill] sm:$0xff]  ;;  %v5119_v61 = vld [vmem:[#allocation12_spill] sm:$0xff] }
 0x358   :  { %1508 = vmatpush.msrb.mxu2 %v5081_v60  ;;  %v5118_v60 = vld [vmem:[#allocation79_spill] sm:$0xff] }
 0x35a   :  { %1509 = vmatpush.msrb.mxu2 %v5083_v62  ;;  %v5120_v62 = vld [vmem:[#allocation16_spill] sm:$0xff] }
 0x35c   :  { %1510 = vmatpush.msrb.mxu2 %v5084_v63  ;;  %v5121_v63 = vld [vmem:[#allocation21_spill] sm:$0xff] }
 0x35e   :  { %1511 = vmatpush.msrb.mxu2 %v5085_v0  ;;  %v5122_v0 = vld [vmem:[#allocation29_spill] sm:$0xff] }
 0x360   :  { %1512 = vmatpush.msrb.mxu2 %v5086_v1  ;;  %v5123_v1 = vld [vmem:[#allocation36_spill] sm:$0xff] }
 0x362   :  { %1513 = vmatpush.msrb.mxu2 %v5087_v2  ;;  %v5124_v2 = vld [vmem:[#allocation52_spill] sm:$0xff] }
 0x364   :  { %1514 = vmatpush.msrb.mxu2 %v5088_v5  ;;  %v5125_v5 = vld [vmem:[#allocation64_spill] sm:$0xff] }
 0x366   :  { %1515 = vmatpush.msrb.mxu2 %v5089_v9  ;;  %v1934_v9 = vld [vmem:[%s4680_s6 + $0x10] sm:$0xff] }
 0x368   :  { %1516 = vmatpush.msrb.mxu2 %v5090_v11 }
 0x36a   :  { %1517 = vmatpush.msrb.mxu2 %v5091_v17  ;;  %v1217_v17 = vld [vmem:[#allocation4 + $0x10] sm:$0xff] }
 0x36c   :  { %1518 = vmatpush.msrb.mxu2 %v5092_v20 }
 0x36e   :  { %1519 = vmatpush.msrb.mxu2 %v5093_v19 }
 0x370   :  { %1520 = vmatpush.msrb.mxu2 %v5094_v27 }
 0x372   :  { %1521 = vmatpush.msrb.mxu2 %v3999_v25  ;;  %v1932_v25 = vld [vmem:[%s4679_s5 + $0x10] sm:$0xff] }
 0x38f   :  { %v1027_v59 = vpop.f32.mrf.mxu1 }
 0x390   :  { %v1067_v36 = vpop.f32.mrf.mxu0 }
 0x395   :  { %v1007_v33 = vpop.f32.mrf.mxu2 }
 0x396   :  { %v1047_v44 = vpop.f32.mrf.mxu3 }
 0x397   :  { %v1107_v28 = vpop.f32.mrf.mxu1 }
 0x399   :  { %v1147_v31 = vpop.f32.mrf.mxu0 }
 0x39e   :  { %v1087_v40 = vpop.f32.mrf.mxu2  ;;  %v1127_v32 = vpop.f32.mrf.mxu3 }
 0x3b6   :  { %v1167_v29 = vpop.f32.mrf.mxu2 }
 0x3b7   :  { %1200 = vmatpush.msrb.mxu1 %v1167_v29 }
 0x3b9   :  { %1201 = vmatpush.msrb.mxu1 %v1147_v31  ;;  %v1980_v31 = vld [vmem:[%s4682_s8 + $0x1d0] sm:$0xff] }
 0x3bb   :  { %1202 = vmatpush.msrb.mxu1 %v1127_v32  ;;  %v1610_v32 = vld [vmem:[%s4682_s8 + $0x48] sm:$0xff] }
 0x3bd   :  { %1203 = vmatpush.msrb.mxu1 %v1107_v28  ;;  %v1947_v28 = vld [vmem:[%s4682_s8 + $0xc8] sm:$0xff] }
 0x3bf   :  { %1204 = vmatpush.msrb.mxu1 %v1087_v40  ;;  %v1981_v40 = vld [vmem:[%s4682_s8 + $0x1d8] sm:$0xff] }
 0x3c1   :  { %1205 = vmatpush.msrb.mxu1 %v1067_v36 }
 0x3c3   :  { %1206 = vmatpush.msrb.mxu1 %v1047_v44  ;;  %v1611_v44 = vld [vmem:[%s4682_s8 + $0x50] sm:$0xff] }
 0x3c5   :  { %1207 = vmatpush.msrb.mxu1 %v1027_v59  ;;  %v1948_v59 = vld [vmem:[%s4682_s8 + $0xd0] sm:$0xff] }
 0x3c7   :  { %1208 = vmatpush.msrb.mxu1 %v1007_v33 }
 0x3c8   :  { %1933 = vmatmul.msk.f32.vlgmr.msrb.gmra.mxu1 %vm439_vm3, %v1932_v25  ;;  %v1979_v25 = vld [vmem:[%s4682_s8 + $0x1c8] sm:$0xff] }
 0x3c9   :  { %1406 = vmatpush.msra.mxu1 %v5095_v18  ;;  %v1609_v18 = vld [vmem:[%s4682_s8 + $0x40] sm:$0xff] }
 0x3cb   :  { %1407 = vmatpush.msra.mxu1 %v5096_v14  ;;  %v1946_v14 = vld [vmem:[%s4682_s8 + $0xc0] sm:$0xff] }
 0x3cd   :  { %1408 = vmatpush.msra.mxu1 %v5097_v34 }
 0x3cf   :  { %1409 = vmatpush.msra.mxu1 %v5098_v35  ;;  %v1978_v35 = vld [vmem:[%s4682_s8 + $0x1c0] sm:$0xff] }
 0x3d1   :  { %1410 = vmatpush.msra.mxu1 %v5099_v37  ;;  %v1608_v37 = vld [vmem:[%s4682_s8 + $0x38] sm:$0xff] }
 0x3d3   :  { %1411 = vmatpush.msra.mxu1 %v5100_v38  ;;  %v1945_v38 = vld [vmem:[%s4682_s8 + $0xb8] sm:$0xff] }
 0x3d5   :  { %1412 = vmatpush.msra.mxu1 %v5101_v30 }
 0x3d7   :  { %1413 = vmatpush.msra.mxu1 %v5102_v39  ;;  %v1977_v39 = vld [vmem:[%s4682_s8 + $0x1b8] sm:$0xff] }
 0x3d9   :  { %1414 = vmatpush.msra.mxu1 %v5103_v41  ;;  %v1607_v41 = vld [vmem:[%s4682_s8 + $0x30] sm:$0xff] }
 0x3db   :  { %1415 = vmatpush.msra.mxu1 %v5104_v42  ;;  %v1944_v42 = vld [vmem:[%s4682_s8 + $0xb0] sm:$0xff] }
 0x3dd   :  { %1416 = vmatpush.msra.mxu1 %v5105_v43 }
 0x3df   :  { %1417 = vmatpush.msra.mxu1 %v5106_v45  ;;  %v1976_v45 = vld [vmem:[%s4682_s8 + $0x1b0] sm:$0xff] }
 0x3e1   :  { %1418 = vmatpush.msra.mxu1 %v5107_v46  ;;  %v1606_v46 = vld [vmem:[%s4682_s8 + $0x28] sm:$0xff] }
 0x3e3   :  { %1419 = vmatpush.msra.mxu1 %v5108_v47  ;;  %v1943_v47 = vld [vmem:[%s4682_s8 + $0xa8] sm:$0xff] }
 0x3e5   :  { %1420 = vmatpush.msra.mxu1 %v5109_v49 }
 0x3e7   :  { %1421 = vmatpush.msra.mxu1 %v5110_v50  ;;  %v1975_v50 = vld [vmem:[%s4682_s8 + $0x1a8] sm:$0xff] }
 0x3e9   :  { %1486 = vmatpush.msrb.mxu1 %v5111_v51  ;;  %v1605_v51 = vld [vmem:[%s4682_s8 + $0x20] sm:$0xff] }
 0x3eb   :  { %1487 = vmatpush.msrb.mxu1 %v5112_v52  ;;  %v1942_v52 = vld [vmem:[%s4682_s8 + $0xa0] sm:$0xff] }
 0x3ed   :  { %1488 = vmatpush.msrb.mxu1 %v5113_v53  ;;  %v1974_v53 = vld [vmem:[%s4682_s8 + $0x1a0] sm:$0xff] }
 0x3ef   :  { %1489 = vmatpush.msrb.mxu1 %v5114_v54  ;;  %v1604_v54 = vld [vmem:[%s4682_s8 + $0x18] sm:$0xff] }
 0x3f1   :  { %1490 = vmatpush.msrb.mxu1 %v5115_v55  ;;  %v1941_v55 = vld [vmem:[%s4682_s8 + $0x98] sm:$0xff] }
 0x3f3   :  { %1491 = vmatpush.msrb.mxu1 %v5116_v57  ;;  %v1973_v57 = vld [vmem:[%s4682_s8 + $0x198] sm:$0xff] }
 0x3f5   :  { %1492 = vmatpush.msrb.mxu1 %v5117_v58  ;;  %v1603_v58 = vld [vmem:[%s4682_s8 + $0x10] sm:$0xff] }
 0x3f7   :  { %1493 = vmatpush.msrb.mxu1 %v5118_v60  ;;  %v1940_v60 = vld [vmem:[%s4682_s8 + $0x90] sm:$0xff] }
 0x3f9   :  { %1494 = vmatpush.msrb.mxu1 %v5119_v61  ;;  %v1972_v61 = vld [vmem:[%s4682_s8 + $0x190] sm:$0xff] }
 0x3fb   :  { %1495 = vmatpush.msrb.mxu1 %v5120_v62  ;;  %v1602_v62 = vld [vmem:[%s4682_s8 + $0x8] sm:$0xff] }
 0x3fd   :  { %1496 = vmatpush.msrb.mxu1 %v5121_v63  ;;  %v1939_v63 = vld [vmem:[%s4682_s8 + $0x88] sm:$0xff] }
 0x3ff   :  { %1497 = vmatpush.msrb.mxu1 %v5122_v0  ;;  %v1935_v0 = vld [vmem:[%s4679_s5 + $0x18] sm:$0xff] }
 0x401   :  { %1498 = vmatpush.msrb.mxu1 %v5123_v1  ;;  %v1971_v1 = vld [vmem:[%s4682_s8 + $0x188] sm:$0xff] }
 0x403   :  { %1499 = vmatpush.msrb.mxu1 %v5124_v2  ;;  %v1601_v2 = vld [vmem:[%s4682_s8] sm:$0xff] }
 0x405   :  { %1500 = vmatpush.msrb.mxu1 %v5125_v5  ;;  %v1938_v5 = vld [vmem:[%s4682_s8 + $0x80] sm:$0xff] }
 0x407   :  { %1501 = vmatpush.msrb.mxu1 %v3994_v4 }
 0x445   :  { %v1210_v11 = vpop.f32.mrf.mxu1 }
 0x446   :  { %v1215_v20 = vmul.f32 %v1934_v9, %v1210_v11  ;;  %v1969_v9 = vld [vmem:[%s4682_s8 + $0x178] sm:$0xff]  ;;  %v1970_v11 = vld [vmem:[%s4682_s8 + $0x180] sm:$0xff] }
 0x448   :  { %v1218_v19 = vadd.f32 %v1217_v17, %v1215_v20  ;;  %v2001_v17 = vld [vmem:[%s4682_s8 + $0x278] sm:$0xff] }
 0x449   :  { %v2017_v20 = vld [vmem:[%s4682_s8 + $0x2f8] sm:$0xff] }
 0x44a   :  { %vm1219_vm6 = vcmp.gt.f32.partialorder %v1218_v19, 0.0  ;;  %v1220_v27 = vmul.f32 0.01, %v1218_v19 }
 0x44c   :  { %v1221_v33 = vsel %vm1219_vm6, %v1218_v19, %v1220_v27  ;;  %v1968_v19 = vld [vmem:[%s4682_s8 + $0x170] sm:$0xff]  ;;  %v2049_v27 = vld [vmem:[%s4682_s8 + $0x3f8] sm:$0xff] }
 0x44d   :  { %1382 = vmatmul.f32.vlgmr.msrb.gmra.mxu3 %v1221_v33  ;;  %1402 = vmatmul.f32.vlgmr.msra.gmra.mxu0 %v1221_v33 }
 0x44e   :  { %1422 = vmatmul.f32.vlgmr.msra.gmra.mxu1 %v1221_v33  ;;  %1442 = vmatmul.f32.vlgmr.msra.gmra.mxu2 %v1221_v33 }
 0x44f   :  { %1526 = vmatpush.msrb.mxu3 %v4012_v56  ;;  %v1616_v56 = vld [vmem:[%s4682_s8 + $0x78] sm:$0xff] }
 0x450   :  { %1617 = vmatpush.msra.mxu1 %v1616_v56  ;;  %v1967_v56 = vld [vmem:[%s4682_s8 + $0x168] sm:$0xff] }
 0x451   :  { %1527 = vmatpush.msrb.mxu3 %v4021_v7  ;;  %v1953_v7 = vld [vmem:[%s4682_s8 + $0xf8] sm:$0xff] }
 0x452   :  { %1656 = vmatpush.msra.mxu2 %v1953_v7  ;;  %v2048_v7 = vld [vmem:[%s4682_s8 + $0x3f0] sm:$0xff] }
 0x453   :  { %1528 = vmatpush.msrb.mxu3 %v4028_v13  ;;  %v1985_v13 = vld [vmem:[%s4682_s8 + $0x1f8] sm:$0xff] }
 0x455   :  { %1529 = vmatpush.msrb.mxu3 %v4036_v24  ;;  %1482 = vmatmul.f32.vlgmr.msrb.gmra.mxu0 %v1221_v33  ;;  %v1615_v24 = vld [vmem:[%s4682_s8 + $0x70] sm:$0xff] }
 0x456   :  { %1462 = vmatmul.f32.vlgmr.msra.gmra.mxu3 %v1221_v33  ;;  %1502 = vmatmul.f32.vlgmr.msrb.gmra.mxu1 %v1221_v33 }
 0x457   :  { %1522 = vmatmul.f32.vlgmr.msrb.gmra.mxu2 %v1221_v33  ;;  %1530 = vmatpush.msrb.mxu3 %v4044_v8  ;;  %v1952_v8 = vld [vmem:[%s4682_s8 + $0xf0] sm:$0xff] }
 0x458   :  { %1618 = vmatpush.msra.mxu1 %v1615_v24  ;;  %1657 = vmatpush.msra.mxu2 %v1952_v8  ;;  %v2015_v24 = vld [vmem:[%s4682_s8 + $0x2e8] sm:$0xff]  ;;  %v1966_v8 = vld [vmem:[%s4682_s8 + $0x160] sm:$0xff] }
 0x459   :  { %1531 = vmatpush.msrb.mxu3 %v4054_v22  ;;  %v1984_v22 = vld [vmem:[%s4682_s8 + $0x1f0] sm:$0xff] }
 0x45b   :  { %1532 = vmatpush.msrb.mxu3 %v4061_v48  ;;  %v1614_v48 = vld [vmem:[%s4682_s8 + $0x68] sm:$0xff] }
 0x45c   :  { %1619 = vmatpush.msra.mxu1 %v1614_v48  ;;  %v1998_v48 = vld [vmem:[%s4682_s8 + $0x260] sm:$0xff] }
 0x45d   :  { %1533 = vmatpush.msrb.mxu3 %v4069_v3  ;;  %v1951_v3 = vld [vmem:[%s4682_s8 + $0xe8] sm:$0xff] }
 0x45e   :  { %1658 = vmatpush.msra.mxu2 %v1951_v3  ;;  %v2014_v3 = vld [vmem:[%s4682_s8 + $0x2e0] sm:$0xff] }
 0x45f   :  { %1534 = vmatpush.msrb.mxu3 %v4077_v6  ;;  %v1983_v6 = vld [vmem:[%s4682_s8 + $0x1e8] sm:$0xff] }
 0x461   :  { %1535 = vmatpush.msrb.mxu3 %v4085_v10  ;;  %v1613_v10 = vld [vmem:[%s4682_s8 + $0x60] sm:$0xff] }
 0x462   :  { %1620 = vmatpush.msra.mxu1 %v1613_v10  ;;  %v2046_v10 = vld [vmem:[%s4682_s8 + $0x3e0] sm:$0xff] }
 0x463   :  { %1536 = vmatpush.msrb.mxu3 %v4093_v12  ;;  %v1950_v12 = vld [vmem:[%s4682_s8 + $0xe0] sm:$0xff] }
 0x464   :  { %1659 = vmatpush.msra.mxu2 %v1950_v12  ;;  %v1964_v12 = vld [vmem:[%s4682_s8 + $0x150] sm:$0xff] }
 0x465   :  { %1537 = vmatpush.msrb.mxu3 %v4101_v16 }
 0x467   :  { %1538 = vmatpush.msrb.mxu3 %v4109_v21 }
 0x469   :  { %1539 = vmatpush.msrb.mxu3 %v4117_v15  ;;  %v1982_v15 = vld [vmem:[%s4682_s8 + $0x1e0] sm:$0xff] }
 0x46b   :  { %1540 = vmatpush.msrb.mxu3 %v4125_v23  ;;  %v1612_v23 = vld [vmem:[%s4682_s8 + $0x58] sm:$0xff] }
 0x46c   :  { %1621 = vmatpush.msra.mxu1 %v1612_v23  ;;  %v1960_v23 = vld [vmem:[%s4682_s8 + $0x130] sm:$0xff] }
 0x46d   :  { %1541 = vmatpush.msrb.mxu3 %v4133_v26  ;;  %v1949_v26 = vld [vmem:[%s4682_s8 + $0xd8] sm:$0xff] }
 0x46e   :  { %1542 = vmatmul.f32.vlgmr.msrb.gmra.mxu3 %v1221_v33  ;;  %1660 = vmatpush.msra.mxu2 %v1949_v26  ;;  %v2000_v33 = vld [vmem:[%s4682_s8 + $0x270] sm:$0xff]  ;;  %v1959_v26 = vld [vmem:[%s4682_s8 + $0x128] sm:$0xff] }
 0x46f   :  { %1734 = vmatpush.msra.mxu3 %v1985_v13  ;;  %1622 = vmatpush.msra.mxu1 %v1611_v44  ;;  %v1999_v13 = vld [vmem:[%s4682_s8 + $0x268] sm:$0xff]  ;;  %v1956_v44 = vld [vmem:[%s4682_s8 + $0x110] sm:$0xff] }
 0x470   :  { %1661 = vmatpush.msra.mxu2 %v1948_v59  ;;  %v1955_v59 = vld [vmem:[%s4682_s8 + $0x108] sm:$0xff] }
 0x471   :  { %1735 = vmatpush.msra.mxu3 %v1984_v22  ;;  %1623 = vmatpush.msra.mxu1 %v1610_v32  ;;  %v2047_v22 = vld [vmem:[%s4682_s8 + $0x3e8] sm:$0xff]  ;;  %v2032_v32 = vld [vmem:[%s4682_s8 + $0x370] sm:$0xff] }
 0x472   :  { %1662 = vmatpush.msra.mxu2 %v1947_v28  ;;  %v2031_v28 = vld [vmem:[%s4682_s8 + $0x368] sm:$0xff] }
 0x473   :  { %1736 = vmatpush.msra.mxu3 %v1983_v6  ;;  %1624 = vmatpush.msra.mxu1 %v1609_v18  ;;  %v1965_v6 = vld [vmem:[%s4682_s8 + $0x158] sm:$0xff] }
 0x474   :  { %1663 = vmatpush.msra.mxu2 %v1946_v14  ;;  %v1997_v18 = vld [vmem:[%s4682_s8 + $0x258] sm:$0xff] }
 0x475   :  { %1737 = vmatpush.msra.mxu3 %v1982_v15  ;;  %1625 = vmatpush.msra.mxu1 %v1608_v37  ;;  %v1961_v15 = vld [vmem:[%s4682_s8 + $0x138] sm:$0xff]  ;;  %v1996_v37 = vld [vmem:[%s4682_s8 + $0x250] sm:$0xff] }
 0x476   :  { %1664 = vmatpush.msra.mxu2 %v1945_v38  ;;  %v2013_v14 = vld [vmem:[%s4682_s8 + $0x2d8] sm:$0xff]  ;;  %v2012_v38 = vld [vmem:[%s4682_s8 + $0x2d0] sm:$0xff] }
 0x477   :  { %1738 = vmatpush.msra.mxu3 %v1981_v40  ;;  %1626 = vmatpush.msra.mxu1 %v1607_v41  ;;  %v1957_v40 = vld [vmem:[%s4682_s8 + $0x118] sm:$0xff]  ;;  %v1995_v41 = vld [vmem:[%s4682_s8 + $0x248] sm:$0xff] }
 0x478   :  { %1665 = vmatpush.msra.mxu2 %v1944_v42  ;;  %v2011_v42 = vld [vmem:[%s4682_s8 + $0x2c8] sm:$0xff] }
 0x479   :  { %1739 = vmatpush.msra.mxu3 %v1980_v31  ;;  %1627 = vmatpush.msra.mxu1 %v1606_v46  ;;  %v2033_v31 = vld [vmem:[%s4682_s8 + $0x378] sm:$0xff]  ;;  %v1994_v46 = vld [vmem:[%s4682_s8 + $0x240] sm:$0xff] }
 0x47a   :  { %1666 = vmatpush.msra.mxu2 %v1943_v47  ;;  %v2010_v47 = vld [vmem:[%s4682_s8 + $0x2c0] sm:$0xff] }
 0x47b   :  { %1740 = vmatpush.msra.mxu3 %v1979_v25  ;;  %1628 = vmatpush.msra.mxu1 %v1605_v51  ;;  %v2030_v25 = vld [vmem:[%s4682_s8 + $0x360] sm:$0xff]  ;;  %v1993_v51 = vld [vmem:[%s4682_s8 + $0x238] sm:$0xff] }
 0x47c   :  { %1667 = vmatpush.msra.mxu2 %v1942_v52  ;;  %v2009_v52 = vld [vmem:[%s4682_s8 + $0x2b8] sm:$0xff] }
 0x47d   :  { %1741 = vmatpush.msra.mxu3 %v1978_v35  ;;  %1629 = vmatpush.msra.mxu1 %v1604_v54  ;;  %v2045_v35 = vld [vmem:[%s4682_s8 + $0x3d8] sm:$0xff] }
 0x47e   :  { %1668 = vmatpush.msra.mxu2 %v1941_v55  ;;  %v2041_v54 = vld [vmem:[%s4682_s8 + $0x3b8] sm:$0xff]  ;;  %v1992_v55 = vld [vmem:[%s4682_s8 + $0x230] sm:$0xff] }
 0x47f   :  { %1742 = vmatpush.msra.mxu3 %v1977_v39  ;;  %1630 = vmatpush.msra.mxu1 %v1603_v58  ;;  %v2044_v39 = vld [vmem:[%s4682_s8 + $0x3d0] sm:$0xff] }
 0x480   :  { %1669 = vmatpush.msra.mxu2 %v1940_v60  ;;  %v2024_v58 = vld [vmem:[%s4682_s8 + $0x330] sm:$0xff] }
 0x481   :  { %1743 = vmatpush.msra.mxu3 %v1976_v45  ;;  %1631 = vmatpush.msra.mxu1 %v1602_v62  ;;  %v2043_v45 = vld [vmem:[%s4682_s8 + $0x3c8] sm:$0xff]  ;;  %v2040_v60 = vld [vmem:[%s4682_s8 + $0x3b0] sm:$0xff] }
 0x482   :  { %1670 = vmatpush.msra.mxu2 %v1939_v63  ;;  %v2007_v62 = vld [vmem:[%s4682_s8 + $0x2a8] sm:$0xff] }
 0x483   :  { %1744 = vmatpush.msra.mxu3 %v1975_v50  ;;  %1632 = vmatpush.msra.mxu1 %v1601_v2  ;;  %v2042_v50 = vld [vmem:[%s4682_s8 + $0x3c0] sm:$0xff]  ;;  %v2023_v63 = vld [vmem:[%s4682_s8 + $0x328] sm:$0xff] }
 0x484   :  { %1671 = vmatpush.msra.mxu2 %v1938_v5  ;;  %v2006_v2 = vld [vmem:[%s4682_s8 + $0x2a0] sm:$0xff] }
 0x485   :  { %1745 = vmatpush.msra.mxu3 %v1974_v53  ;;  %1773 = vmatpush.msrb.mxu1 %v2001_v17  ;;  %v2025_v53 = vld [vmem:[%s4682_s8 + $0x338] sm:$0xff]  ;;  %v2022_v5 = vld [vmem:[%s4682_s8 + $0x320] sm:$0xff] }
 0x486   :  { %1812 = vmatpush.msrb.mxu2 %v2017_v20  ;;  %v2005_v17 = vld [vmem:[%s4682_s8 + $0x298] sm:$0xff] }
 0x487   :  { %1746 = vmatpush.msra.mxu3 %v1973_v57  ;;  %1774 = vmatpush.msrb.mxu1 %v2000_v33  ;;  %v2008_v57 = vld [vmem:[%s4682_s8 + $0x2b0] sm:$0xff]  ;;  %v2021_v20 = vld [vmem:[%s4682_s8 + $0x318] sm:$0xff] }
 0x488   :  { %v2004_v33 = vld [vmem:[%s4682_s8 + $0x290] sm:$0xff] }
 0x489   :  { %1747 = vmatpush.msra.mxu3 %v1972_v61  ;;  %1775 = vmatpush.msrb.mxu1 %v1999_v13  ;;  %v1991_v61 = vld [vmem:[%s4682_s8 + $0x228] sm:$0xff] }
 0x48a   :  { %v2003_v13 = vld [vmem:[%s4682_s8 + $0x288] sm:$0xff] }
 0x48b   :  { %1748 = vmatpush.msra.mxu3 %v1971_v1  ;;  %1776 = vmatpush.msrb.mxu1 %v1998_v48  ;;  %v1990_v1 = vld [vmem:[%s4682_s8 + $0x220] sm:$0xff] }
 0x48c   :  { %v2002_v48 = vld [vmem:[%s4682_s8 + $0x280] sm:$0xff] }
 0x48d   :  { %1749 = vmatpush.msra.mxu3 %v1970_v11  ;;  %1777 = vmatpush.msrb.mxu1 %v1997_v18  ;;  %v1989_v11 = vld [vmem:[%s4682_s8 + $0x218] sm:$0xff] }
 0x48f   :  { %1890 = vmatpush.msrb.mxu3 %v2049_v27  ;;  %1778 = vmatpush.msrb.mxu1 %v1996_v37  ;;  %v1988_v27 = vld [vmem:[%s4682_s8 + $0x210] sm:$0xff] }
 0x491   :  { %1891 = vmatpush.msrb.mxu3 %v2048_v7  ;;  %1779 = vmatpush.msrb.mxu1 %v1995_v41  ;;  %v1987_v7 = vld [vmem:[%s4682_s8 + $0x208] sm:$0xff] }
 0x493   :  { %1892 = vmatpush.msrb.mxu3 %v2047_v22  ;;  %1780 = vmatpush.msrb.mxu1 %v1994_v46  ;;  %v1986_v22 = vld [vmem:[%s4682_s8 + $0x200] sm:$0xff] }
 0x495   :  { %1893 = vmatpush.msrb.mxu3 %v2046_v10  ;;  %1781 = vmatpush.msrb.mxu1 %v1993_v51  ;;  %v1937_v10 = vld [vmem:[%s4680_s6 + $0x18] sm:$0xff] }
 0x497   :  { %1894 = vmatpush.msrb.mxu3 %v2045_v35  ;;  %1782 = vmatpush.msrb.mxu1 %v1992_v55 }
 0x499   :  { %1895 = vmatpush.msrb.mxu3 %v2044_v39  ;;  %1783 = vmatpush.msrb.mxu1 %v1991_v61 }
 0x49b   :  { %1896 = vmatpush.msrb.mxu3 %v2043_v45  ;;  %1784 = vmatpush.msrb.mxu1 %v1990_v1 }
 0x49d   :  { %1897 = vmatpush.msrb.mxu3 %v2042_v50  ;;  %1785 = vmatpush.msrb.mxu1 %v1989_v11 }
 0x49f   :  { %1898 = vmatpush.msrb.mxu3 %v2041_v54  ;;  %1786 = vmatpush.msrb.mxu1 %v1988_v27 }
 0x4a1   :  { %1899 = vmatpush.msrb.mxu3 %v2040_v60  ;;  %1787 = vmatpush.msrb.mxu1 %v1987_v7 }
 0x4a3   :  { %1788 = vmatpush.msrb.mxu1 %v1986_v22 }
 0x4ca   :  { %v4322_v29 = vpop.f32.mrf.mxu0 }
 0x4cb   :  { %v4311_v36 = vpop.f32.mrf.mxu1 }
 0x4d0   :  { %v4265_v4 = vpop.f32.mrf.mxu3 }
 0x4d1   :  { %v4300_v16 = vpop.f32.mrf.mxu2 }
 0x4d2   :  { %v1483_v49 = vpop.f32.mrf.mxu0 }
 0x4d3   :  { %v1503_v43 = vpop.f32.mrf.mxu1 }
 0x4d9   :  { %v1463_v21 = vpop.f32.mrf.mxu3 }
 0x4da   :  { %v1523_v30 = vpop.f32.mrf.mxu2 }
 0x4f1   :  { %v1543_v34 = vpop.f32.mrf.mxu3 }
 0x4f2   :  { %1576 = vmatpush.msra.mxu0 %v1543_v34  ;;  %v2029_v34 = vld [vmem:[%s4682_s8 + $0x358] sm:$0xff] }
 0x4f4   :  { %1577 = vmatpush.msra.mxu0 %v1523_v30  ;;  %v2028_v30 = vld [vmem:[%s4682_s8 + $0x350] sm:$0xff] }
 0x4f6   :  { %1578 = vmatpush.msra.mxu0 %v1503_v43  ;;  %v2027_v43 = vld [vmem:[%s4682_s8 + $0x348] sm:$0xff] }
 0x4f8   :  { %1579 = vmatpush.msra.mxu0 %v1483_v49  ;;  %v2026_v49 = vld [vmem:[%s4682_s8 + $0x340] sm:$0xff] }
 0x4fa   :  { %1580 = vmatpush.msra.mxu0 %v1463_v21  ;;  %v1962_v21 = vld [vmem:[%s4682_s8 + $0x140] sm:$0xff] }
 0x4fc   :  { %1581 = vmatpush.msra.mxu0 %v4300_v16  ;;  %v1963_v16 = vld [vmem:[%s4682_s8 + $0x148] sm:$0xff] }
 0x4fe   :  { %1582 = vmatpush.msra.mxu0 %v4311_v36  ;;  %v1958_v36 = vld [vmem:[%s4682_s8 + $0x120] sm:$0xff] }
 0x500   :  { %1583 = vmatpush.msra.mxu0 %v4322_v29  ;;  %v1954_v29 = vld [vmem:[%s4682_s8 + $0x100] sm:$0xff] }
 0x502   :  { %1584 = vmatpush.msra.mxu0 %v4265_v4  ;;  %v2016_v4 = vld [vmem:[%s4682_s8 + $0x2f0] sm:$0xff] }
 0x503   :  { %1936 = vmatmul.msk.f32.vlgmr.msra.gmra.mxu0 %vm439_vm3, %v1935_v0  ;;  %1813 = vmatpush.msrb.mxu2 %v2016_v4  ;;  %v2039_v0 = vld [vmem:[%s4682_s8 + $0x3a8] sm:$0xff]  ;;  %v2020_v4 = vld [vmem:[%s4682_s8 + $0x310] sm:$0xff] }
 0x504   :  { %1695 = vmatpush.msrb.mxu0 %v1969_v9  ;;  %v2038_v9 = vld [vmem:[%s4682_s8 + $0x3a0] sm:$0xff]  ;;  %1900 = vmatpush.msrb.mxu3 %v2039_v0 }
 0x505   :  { %1814 = vmatpush.msrb.mxu2 %v2015_v24  ;;  %v2019_v24 = vld [vmem:[%s4682_s8 + $0x308] sm:$0xff] }
 0x506   :  { %1696 = vmatpush.msrb.mxu0 %v1968_v19  ;;  %1901 = vmatpush.msrb.mxu3 %v2038_v9  ;;  %v2037_v19 = vld [vmem:[%s4682_s8 + $0x398] sm:$0xff] }
 0x507   :  { %1815 = vmatpush.msrb.mxu2 %v2014_v3  ;;  %v2018_v3 = vld [vmem:[%s4682_s8 + $0x300] sm:$0xff] }
 0x508   :  { %1697 = vmatpush.msrb.mxu0 %v1967_v56  ;;  %1902 = vmatpush.msrb.mxu3 %v2037_v19  ;;  %v2036_v56 = vld [vmem:[%s4682_s8 + $0x390] sm:$0xff] }
 0x509   :  { %1816 = vmatpush.msrb.mxu2 %v2013_v14 }
 0x50a   :  { %1698 = vmatpush.msrb.mxu0 %v1966_v8  ;;  %v2035_v8 = vld [vmem:[%s4682_s8 + $0x388] sm:$0xff]  ;;  %1903 = vmatpush.msrb.mxu3 %v2036_v56 }
 0x50b   :  { %1817 = vmatpush.msrb.mxu2 %v2012_v38 }
 0x50c   :  { %1699 = vmatpush.msrb.mxu0 %v1965_v6  ;;  %v2034_v6 = vld [vmem:[%s4682_s8 + $0x380] sm:$0xff]  ;;  %1904 = vmatpush.msrb.mxu3 %v2035_v8 }
 0x50d   :  { %1818 = vmatpush.msrb.mxu2 %v2011_v42 }
 0x50e   :  { %1700 = vmatpush.msrb.mxu0 %v1964_v12  ;;  %1905 = vmatpush.msrb.mxu3 %v2034_v6 }
 0x50f   :  { %1819 = vmatpush.msrb.mxu2 %v2010_v47 }
 0x510   :  { %1701 = vmatpush.msrb.mxu0 %v1963_v16  ;;  %v1593_v16 = vld [vmem:[#allocation4 + $0x18] sm:$0xff] }
 0x511   :  { %1820 = vmatpush.msrb.mxu2 %v2009_v52 }
 0x512   :  { %1702 = vmatpush.msrb.mxu0 %v1962_v21 }
 0x513   :  { %1821 = vmatpush.msrb.mxu2 %v2008_v57 }
 0x514   :  { %1703 = vmatpush.msrb.mxu0 %v1961_v15 }
 0x515   :  { %1822 = vmatpush.msrb.mxu2 %v2007_v62 }
 0x516   :  { %1704 = vmatpush.msrb.mxu0 %v1960_v23 }
 0x517   :  { %1823 = vmatpush.msrb.mxu2 %v2006_v2 }
 0x518   :  { %1705 = vmatpush.msrb.mxu0 %v1959_v26 }
 0x519   :  { %1824 = vmatpush.msrb.mxu2 %v2005_v17 }
 0x51a   :  { %1706 = vmatpush.msrb.mxu0 %v1958_v36 }
 0x51b   :  { %1825 = vmatpush.msrb.mxu2 %v2004_v33 }
 0x51c   :  { %1707 = vmatpush.msrb.mxu0 %v1957_v40 }
 0x51d   :  { %1826 = vmatpush.msrb.mxu2 %v2003_v13 }
 0x51e   :  { %1708 = vmatpush.msrb.mxu0 %v1956_v44 }
 0x51f   :  { %1827 = vmatpush.msrb.mxu2 %v2002_v48 }
 0x520   :  { %1709 = vmatpush.msrb.mxu0 %v1955_v59 }
 0x522   :  { %1710 = vmatpush.msrb.mxu0 %v1954_v29 }
 0x524   :  { %1851 = vmatpush.msra.mxu0 %v2033_v31 }
 0x526   :  { %1852 = vmatpush.msra.mxu0 %v2032_v32 }
 0x528   :  { %1853 = vmatpush.msra.mxu0 %v2031_v28 }
 0x52a   :  { %1854 = vmatpush.msra.mxu0 %v2030_v25  ;;  %v1599_v25 = vld [vmem:[%s4683_s9] sm:$0x1] }
 0x52c   :  { %1855 = vmatpush.msra.mxu0 %v2029_v34 }
 0x52e   :  { %1856 = vmatpush.msra.mxu0 %v2028_v30 }
 0x530   :  { %1857 = vmatpush.msra.mxu0 %v2027_v43 }
 0x532   :  { %1858 = vmatpush.msra.mxu0 %v2026_v49 }
 0x534   :  { %1859 = vmatpush.msra.mxu0 %v2025_v53 }
 0x536   :  { %1860 = vmatpush.msra.mxu0 %v2024_v58 }
 0x538   :  { %1861 = vmatpush.msra.mxu0 %v2023_v63 }
 0x53a   :  { %1862 = vmatpush.msra.mxu0 %v2022_v5 }
 0x53c   :  { %1863 = vmatpush.msra.mxu0 %v2021_v20 }
 0x53e   :  { %1864 = vmatpush.msra.mxu0 %v2020_v4 }
 0x540   :  { %1865 = vmatpush.msra.mxu0 %v2019_v24 }
 0x542   :  { %1866 = vmatpush.msra.mxu0 %v2018_v3 }
 0x580   :  { %v1586_v12 = vpop.f32.mrf.mxu0 }
 0x581   :  { %v1591_v21 = vmul.f32 %v1937_v10, %v1586_v12 }
 0x583   :  { %v1594_v15 = vadd.f32 %v1593_v16, %v1591_v21 }
 0x585   :  { %vm1595_vm7 = vcmp.gt.f32.partialorder %v1594_v15, 0.0  ;;  %v1596_v23 = vmul.f32 0.01, %v1594_v15 }
 0x587   :  { %v1597_v26 = vsel %vm1595_vm7, %v1594_v15, %v1596_v23 }
 0x588   :  { %1598 = vst [vmem:[#allocation3] sm:$0xff] %v1597_v26 }
 0x58f   :  { %v1600_v36 = vld [vmem:[#allocation3] sm:$0x1]  ;;  %v1638_v40 = vld [vmem:[#allocation3 + $0x1] sm:$0x1]  ;;  %v1677_v44 = vld [vmem:[#allocation3 + $0x2] sm:$0x1] }
 0x590   :  { %1633 = vmatmul.f32.vlgmr.msra.gmra.mxu1 %v1600_v36  ;;  %1672 = vmatmul.f32.vlgmr.msra.gmra.mxu2 %v1638_v40  ;;  %v1716_v59 = vld [vmem:[#allocation3 + $0x3] sm:$0x1]  ;;  %v1755_v29 = vld [vmem:[#allocation3 + $0x4] sm:$0x1]  ;;  %v1794_v31 = vld [vmem:[#allocation3 + $0x5] sm:$0x1] }
 0x591   :  { %1711 = vmatmul.f32.vlgmr.msrb.gmra.mxu0 %v1677_v44  ;;  %1750 = vmatmul.f32.vlgmr.msra.gmra.mxu3 %v1716_v59  ;;  %v1833_v32 = vld [vmem:[#allocation3 + $0x6] sm:$0x1]  ;;  %v1872_v28 = vld [vmem:[#allocation3 + $0x7] sm:$0x1] }
 0x598   :  { %1789 = vmatmul.f32.vlgmr.msrb.gmra.mxu1 %v1755_v29  ;;  %1828 = vmatmul.f32.vlgmr.msrb.gmra.mxu2 %v1794_v31 }
 0x599   :  { %1867 = vmatmul.f32.vlgmr.msra.gmra.mxu0 %v1833_v32  ;;  %1906 = vmatmul.f32.vlgmr.msrb.gmra.mxu3 %v1872_v28 }
 0x60d   :  { %v1634_v18 = vpop.f32.mrf.mxu1 }
 0x60e   :  { %v1637_v14 = vadd.f32 %v1634_v18, %v1599_v25  ;;  %v1712_v34 = vpop.f32.mrf.mxu0 }
 0x613   :  { %v1673_v35 = vpop.f32.mrf.mxu2 }
 0x614   :  { %v1676_v37 = vadd.f32 %v1673_v35, %v1637_v14  ;;  %v1751_v38 = vpop.f32.mrf.mxu3 }
 0x615   :  { %v1790_v41 = vpop.f32.mrf.mxu1 }
 0x616   :  { %v1715_v30 = vadd.f32 %v1712_v34, %v1676_v37  ;;  %v1868_v46 = vpop.f32.mrf.mxu0 }
 0x618   :  { %v1754_v39 = vadd.f32 %v1751_v38, %v1715_v30 }
 0x61a   :  { %v1793_v42 = vadd.f32 %v1790_v41, %v1754_v39 }
 0x61b   :  { %v1829_v43 = vpop.f32.mrf.mxu2 }
 0x61c   :  { %v1832_v45 = vadd.f32 %v1829_v43, %v1793_v42  ;;  %v1907_v49 = vpop.f32.mrf.mxu3 }
 0x61e   :  { %v1871_v47 = vadd.f32 %v1868_v46, %v1832_v45 }
 0x620   :  { %v1910_v50 = vadd.f32 %v1907_v49, %v1871_v47 }
 0x622   :  { %1912 = vst.msk [vmem:[%s4684_s10] sm:$0x1] %vm1911_vm8, %v1910_v50 }
 0x623   :  { %1917 = vsyncpa [#allocation5], 1 }

</bundles_post_ra>
